<compile_context>
chip_gen: v7x
topology: tpu7x:2x2x1
jax: 0.10.0
libtpu: 0.0.40
codegen_flags: <defaults>
</compile_context>

<pallas_src>
import functools

import jax
import jax.numpy as jnp
from jax.experimental import pallas as pl
from jax.experimental.pallas import tpu as pltpu


def _tree_reduce(op, xs):
    """Balanced-tree reduction (avoids long serial VALU dependency chains)."""
    xs = list(xs)
    while len(xs) > 1:
        nxt = [op(xs[i], xs[i + 1]) for i in range(0, len(xs) - 1, 2)]
        if len(xs) % 2:
            nxt.append(xs[-1])
        xs = nxt
    return xs[0]


def _sa_kernel(grp_ref, x_ref, w1a_ref, b1a_ref, kt_ref, bsq_ref,
               wc_ref, bc_ref, wp_ref, bp_ref, o_ref, *, G, Ch, HW, Bt):
    f32 = jnp.float32
    grp = grp_ref[...].astype(f32)          # [C, Bt*G*HW]   lane-dense
    xv = x_ref[...].astype(f32)             # [C, Bt*HW]

    # (1) shared conv1 over all Bt*G group members in ONE MXU matmul; the
    #     prepacked extra weight row directly yields each member's
    #     (channel-sum / (G*Ch)) contribution to the avg-pool (scale folded
    #     into the weights at prepack time -> no in-kernel multiply).
    attn_aug = jnp.dot(w1a_ref[...], grp,
                       preferred_element_type=f32) + b1a_ref[...]
    attn_all = attn_aug[:Ch, :]             # [Ch, Bt*G*HW]
    csum_all = attn_aug[Ch:, :]             # [1,  Bt*G*HW]  (pre-scaled)

    def chunk(a, b, g):                     # static, 128-aligned lane slice
        s = (b * G + g) * HW
        return a[:, s:s + HW]

    # (2) per-image avg / max over the 5*Ch "concatenated" channels.
    attn_chunks = [[chunk(attn_all, b, g) for g in range(G)] for b in range(Bt)]
    agg_rows = []
    for b in range(Bt):
        avg = _tree_reduce(jnp.add, [chunk(csum_all, b, g) for g in range(G)])
        gmax = _tree_reduce(jnp.maximum, attn_chunks[b])          # [Ch, HW]
        mx = jnp.max(gmax, axis=0, keepdims=True)                 # [1, HW]
        agg_rows.append(jnp.concatenate([avg, mx], axis=1))       # [1, 2*HW]
    agg = jnp.concatenate(agg_rows, axis=0)                       # [Bt, 2*HW]

    # (3) 7x7 conv_squeeze == one MXU matmul against the precomputed
    #     block-Toeplitz matrix, then sigmoid (EUP).
    logits = jnp.dot(agg, kt_ref[...], preferred_element_type=f32) + bsq_ref[...]
    sig = jax.nn.sigmoid(logits)                                  # [Bt, 5*HW]

    # (4) gate the five attn maps by their sigmoid channel, sum over groups.
    ws_cols = []
    for b in range(Bt):
        terms = [attn_chunks[b][g] * sig[b:b + 1, g * HW:(g + 1) * HW]
                 for g in range(G)]
        ws_cols.append(_tree_reduce(jnp.add, terms))              # [Ch, HW]
    ws = jnp.concatenate(ws_cols, axis=1)                         # [Ch, Bt*HW]

    # (5) conv (Ch->C), gate by x, proj_2, residual — lane-dense [C, Bt*HW]
    #     ending in an unmasked store.
    attn_full = jnp.dot(wc_ref[...], ws,
                        preferred_element_type=f32) + bc_ref[...]
    y = xv * attn_full
    out = jnp.dot(wp_ref[...], y, preferred_element_type=f32) + bp_ref[...] + xv
    o_ref[...] = out.astype(o_ref.dtype)


def _conv_squeeze_matrix(w, H, W):
    """Dense (Cin*HW, O*HW) matrix implementing stride-1 'SAME' 2-D
    cross-correlation (== nn.Conv2d, padding=k//2) with weights w [O,Cin,kH,kW].
    Every entry is either 0 or exactly one weight value (pure gather)."""
    O, Cin, kH, kW = w.shape
    HW = H * W
    yy, xx = jnp.meshgrid(jnp.arange(H), jnp.arange(W), indexing="ij")
    y = yy.reshape(HW)
    x = xx.reshape(HW)
    yi = y[:, None, None] + jnp.arange(kH)[None, :, None] - kH // 2   # [HW,kH,1]
    xi = x[:, None, None] + jnp.arange(kW)[None, None, :] - kW // 2   # [HW,1,kW]
    valid = (yi >= 0) & (yi < H) & (xi >= 0) & (xi < W)               # [HW,kH,kW]
    in_idx = jnp.where(valid, yi * W + xi, 0)                         # [HW,kH,kW]
    onehot = (in_idx[..., None] == jnp.arange(HW)) & valid[..., None]
    onehot = onehot.astype(jnp.float32)                               # [HW,kH,kW,HW]
    K = jnp.einsum('ocij,pijq->cqop', w.astype(jnp.float32), onehot,
                   precision=jax.lax.Precision.HIGHEST)               # [Cin,HW,O,HW]
    return K.reshape(Cin * HW, O * HW)


def prepare_sa_params(params, H, W, num_group=5):
    """One-time prepack of PyTorch-layout parameters into kernel operands.
    params = (w1 [Ch,C], b1 [Ch], wsq [5,2,7,7], bsq [5],
              wc [C,Ch], bc [C], wp [C,C], bp [C])."""
    w1, b1, wsq, bsq, wc, bc, wp, bp = params
    HW = H * W
    Ch = w1.shape[0]
    O = wsq.shape[0]
    f32 = jnp.float32
    inv = 1.0 / (num_group * Ch)
    # conv1 weight augmented with a pre-scaled channel-sum row: folds the
    # channel part of the mean-pool into the same MXU matmul.
    w1a = jnp.concatenate([w1, jnp.sum(w1, axis=0, keepdims=True) * inv], axis=0)
    b1a = jnp.concatenate([b1, jnp.sum(b1, keepdims=True) * inv]).reshape(Ch + 1, 1)
    kt = _conv_squeeze_matrix(wsq, H, W)                 # [2*HW, 5*HW]
    bsq_row = jnp.repeat(bsq, HW).reshape(1, O * HW)     # [1, 5*HW]
    return (w1a.astype(f32), b1a.astype(f32), kt.astype(f32),
            bsq_row.astype(f32), wc.astype(f32),
            bc.reshape(-1, 1).astype(f32), wp.astype(f32),
            bp.reshape(-1, 1).astype(f32))


def sa_forward(group, x, kparams, *, batch_tile=None):
    """Fused SA forward.
    group: [G=5, B, C, H, W] (PyTorch NCHW per group member); x: [B, C, H, W].
    Returns [B, C, H, W] float32."""
    w1a, b1a, kt, bsq_row, wc, bc, wp, bp = kparams
    G, B, C, H, W = group.shape
    HW = H * W
    Ch = w1a.shape[0] - 1

    if batch_tile is None:   # keep >= 2 parallel steps when possible (v7x 2 TCs)
        batch_tile = B // 2 if (B % 2 == 0 and B >= 4) else B
    Bt = batch_tile
    assert B % Bt == 0, (B, Bt)
    steps = B // Bt
    # Lane blocks must be a multiple of 128 (or the full extent when steps==1).
    assert (Bt * HW) % 128 == 0 or steps == 1, (Bt, HW)

    # Channels-first, lane-major layouts.  Per grid step the group DMA is C
    # contiguous runs of Bt*G*HW*4 bytes (no per-group strided chunks).
    grp_k = jnp.transpose(group, (2, 1, 0, 3, 4)).reshape(C, B * G * HW)
    x_k = jnp.transpose(x, (1, 0, 2, 3)).reshape(C, B * HW)

    kernel = functools.partial(_sa_kernel, G=G, Ch=Ch, HW=HW, Bt=Bt)

    def const_spec(arr):
        return pl.BlockSpec(arr.shape, lambda i, _n=arr.ndim: (0,) * _n)

    out = pl.pallas_call(
        kernel,
        out_shape=jax.ShapeDtypeStruct((C, B * HW), jnp.float32),
        grid=(steps,),
        in_specs=[
            pl.BlockSpec((C, Bt * G * HW), lambda i: (0, i)),
            pl.BlockSpec((C, Bt * HW), lambda i: (0, i)),
            const_spec(w1a), const_spec(b1a), const_spec(kt),
            const_spec(bsq_row), const_spec(wc), const_spec(bc),
            const_spec(wp), const_spec(bp),
        ],
        out_specs=pl.BlockSpec((C, Bt * HW), lambda i: (0, i)),
        compiler_params=pltpu.CompilerParams(
            dimension_semantics=("parallel",),
            vmem_limit_bytes=32 * 1024 * 1024,   # explicit headroom for blocks
        ),
    )(grp_k, x_k, w1a, b1a, kt, bsq_row, wc, bc, wp, bp)

    return jnp.transpose(out.reshape(C, B, H, W), (1, 0, 2, 3))


def reference(group, x, params):
    """Pure-JAX NCHW reference matching the PyTorch module (high precision)."""
    w1, b1, wsq, bsq, wc, bc, wp, bp = params
    hi = jax.lax.Precision.HIGHEST

    def c1x1(v, w, b):
        return jnp.einsum('bchw,oc->bohw', v, w, precision=hi) + b.reshape(1, -1, 1, 1)

    attns = [c1x1(group[i], w1, b1) for i in range(group.shape[0])]
    cat = jnp.concatenate(attns, axis=1)
    avg = jnp.mean(cat, axis=1, keepdims=True)
    mx = jnp.max(cat, axis=1, keepdims=True)
    agg = jnp.concatenate([avg, mx], axis=1)
    logits = jax.lax.conv_general_dilated(
        agg, wsq, window_strides=(1, 1), padding='SAME',
        dimension_numbers=('NCHW', 'OIHW', 'NCHW'),
        precision=hi) + bsq.reshape(1, -1, 1, 1)
    sig = jax.nn.sigmoid(logits)
    ws = sum(attns[i] * sig[:, i:i + 1] for i in range(len(attns)))
    attn = c1x1(ws, wc, bc)
    y = x * attn
    return c1x1(y, wp, bp) + x


if __name__ == "__main__":
    key = jax.random.PRNGKey(0)
    G, B, C, H, W = 5, 4, 8, 16, 16        # in_channels = 8, dim // 2 = 4
    Ch = C // 2
    ks = jax.random.split(key, 10)

    group = jax.random.normal(ks[0], (G, B, C, H, W), jnp.float32)
    x = jax.random.normal(ks[1], (B, C, H, W), jnp.float32)

    # PyTorch-layout parameters (1x1 conv weights squeezed to [out, in]).
    w1 = 0.2 * jax.random.normal(ks[2], (Ch, C), jnp.float32)        # conv1 (shared)
    b1 = 0.1 * jax.random.normal(ks[3], (Ch,), jnp.float32)
    wsq = 0.2 * jax.random.normal(ks[4], (5, 2, 7, 7), jnp.float32)  # conv_squeeze
    bsq = 0.1 * jax.random.normal(ks[5], (5,), jnp.float32)
    wc = 0.2 * jax.random.normal(ks[6], (C, Ch), jnp.float32)        # conv (C/2 -> C)
    bc = 0.1 * jax.random.normal(ks[7], (C,), jnp.float32)
    wp = 0.2 * jax.random.normal(ks[8], (C, C), jnp.float32)         # proj_2
    bp = 0.1 * jax.random.normal(ks[9], (C,), jnp.float32)

    params = (w1, b1, wsq, bsq, wc, bc, wp, bp)
    kparams = prepare_sa_params(params, H, W, num_group=G)   # one-time prepack

    out = jax.block_until_ready(sa_forward(group, x, kparams, batch_tile=2))
    ref = jax.block_until_ready(reference(group, x, params))

    assert out.shape == (B, C, H, W)
    err = float(jnp.max(jnp.abs(out - ref)))
    assert jnp.allclose(out, ref, rtol=1e-3, atol=1e-3), f"max abs err = {err}"
    print("KERNEL_OK")
</pallas_src>

<mosaic_0001>
module attributes {stable_mosaic.version = 11 : i64} {
  func.func @_sa_kernel(%arg0: i32, %arg1: memref<8x2560xf32, #tpu.memory_space<vmem>>, %arg2: memref<8x512xf32, #tpu.memory_space<vmem>>, %arg3: memref<5x8xf32, #tpu.memory_space<vmem>>, %arg4: memref<5x1xf32, #tpu.memory_space<vmem>>, %arg5: memref<512x1280xf32, #tpu.memory_space<vmem>>, %arg6: memref<1x1280xf32, #tpu.memory_space<vmem>>, %arg7: memref<8x4xf32, #tpu.memory_space<vmem>>, %arg8: memref<8x1xf32, #tpu.memory_space<vmem>>, %arg9: memref<8x8xf32, #tpu.memory_space<vmem>>, %arg10: memref<8x1xf32, #tpu.memory_space<vmem>>, %arg11: memref<8x512xf32, #tpu.memory_space<vmem>>) attributes {dimension_semantics = [#tpu.dimension_semantics<parallel>], iteration_bounds = array<i64: 2>, scalar_prefetch = 0 : i64, scratch_operands = 0 : i64, tpu.core_type = #tpu.core_type<tc>, window_params = [{transform_indices = @transform_0, window_bounds = array<i64: 8, 2560>}, {transform_indices = @transform_1, window_bounds = array<i64: 8, 512>}, {pipeline_mode = #tpu.pipeline_mode<synchronous>, transform_indices = @transform_2, window_bounds = array<i64: 5, 8>}, {pipeline_mode = #tpu.pipeline_mode<synchronous>, transform_indices = @transform_3, window_bounds = array<i64: 5, 1>}, {pipeline_mode = #tpu.pipeline_mode<synchronous>, transform_indices = @transform_4, window_bounds = array<i64: 512, 1280>}, {pipeline_mode = #tpu.pipeline_mode<synchronous>, transform_indices = @transform_5, window_bounds = array<i64: 1, 1280>}, {pipeline_mode = #tpu.pipeline_mode<synchronous>, transform_indices = @transform_6, window_bounds = array<i64: 8, 4>}, {pipeline_mode = #tpu.pipeline_mode<synchronous>, transform_indices = @transform_7, window_bounds = array<i64: 8, 1>}, {pipeline_mode = #tpu.pipeline_mode<synchronous>, transform_indices = @transform_8, window_bounds = array<i64: 8, 8>}, {pipeline_mode = #tpu.pipeline_mode<synchronous>, transform_indices = @transform_9, window_bounds = array<i64: 8, 1>}, {transform_indices = @transform_10, window_bounds = array<i64: 8, 512>}]} {
    %c0 = arith.constant 0 : index
    %c0_0 = arith.constant 0 : index
    %0 = vector.load %arg1[%c0, %c0_0] : memref<8x2560xf32, #tpu.memory_space<vmem>>, vector<8x2560xf32>
    %c0_1 = arith.constant 0 : index
    %c0_2 = arith.constant 0 : index
    %1 = vector.load %arg2[%c0_1, %c0_2] : memref<8x512xf32, #tpu.memory_space<vmem>>, vector<8x512xf32>
    %c0_3 = arith.constant 0 : index
    %c0_4 = arith.constant 0 : index
    %2 = vector.load %arg3[%c0_3, %c0_4] : memref<5x8xf32, #tpu.memory_space<vmem>>, vector<5x8xf32>
    %cst = arith.constant dense<0.000000e+00> : vector<5x2560xf32>
    %3 = tpu.matmul %2, %0, %cst {dimension_numbers = #tpu.dot_dimension_numbers<[1], [0], [0], [1], [0, 0, 1, 1], [], []>} : vector<5x8xf32>, vector<8x2560xf32>, vector<5x2560xf32> -> vector<5x2560xf32>
    %c0_5 = arith.constant 0 : index
    %c0_6 = arith.constant 0 : index
    %4 = vector.load %arg4[%c0_5, %c0_6] : memref<5x1xf32, #tpu.memory_space<vmem>>, vector<5x1xf32>
    %5 = vector.broadcast %4 : vector<5x1xf32> to vector<5x2560xf32>
    %6 = arith.addf %3, %5 : vector<5x2560xf32>
    %7 = vector.extract_strided_slice %6 {offsets = [0, 0], sizes = [4, 2560], strides = [1, 1]} : vector<5x2560xf32> to vector<4x2560xf32>
    %8 = vector.extract_strided_slice %6 {offsets = [4, 0], sizes = [1, 2560], strides = [1, 1]} : vector<5x2560xf32> to vector<1x2560xf32>
    %9 = vector.extract_strided_slice %7 {offsets = [0, 0], sizes = [4, 256], strides = [1, 1]} : vector<4x2560xf32> to vector<4x256xf32>
    %10 = vector.extract_strided_slice %7 {offsets = [0, 256], sizes = [4, 256], strides = [1, 1]} : vector<4x2560xf32> to vector<4x256xf32>
    %11 = vector.extract_strided_slice %7 {offsets = [0, 512], sizes = [4, 256], strides = [1, 1]} : vector<4x2560xf32> to vector<4x256xf32>
    %12 = vector.extract_strided_slice %7 {offsets = [0, 768], sizes = [4, 256], strides = [1, 1]} : vector<4x2560xf32> to vector<4x256xf32>
    %13 = vector.extract_strided_slice %7 {offsets = [0, 1024], sizes = [4, 256], strides = [1, 1]} : vector<4x2560xf32> to vector<4x256xf32>
    %14 = vector.extract_strided_slice %7 {offsets = [0, 1280], sizes = [4, 256], strides = [1, 1]} : vector<4x2560xf32> to vector<4x256xf32>
    %15 = vector.extract_strided_slice %7 {offsets = [0, 1536], sizes = [4, 256], strides = [1, 1]} : vector<4x2560xf32> to vector<4x256xf32>
    %16 = vector.extract_strided_slice %7 {offsets = [0, 1792], sizes = [4, 256], strides = [1, 1]} : vector<4x2560xf32> to vector<4x256xf32>
    %17 = vector.extract_strided_slice %7 {offsets = [0, 2048], sizes = [4, 256], strides = [1, 1]} : vector<4x2560xf32> to vector<4x256xf32>
    %18 = vector.extract_strided_slice %7 {offsets = [0, 2304], sizes = [4, 256], strides = [1, 1]} : vector<4x2560xf32> to vector<4x256xf32>
    %19 = vector.extract_strided_slice %8 {offsets = [0, 0], sizes = [1, 256], strides = [1, 1]} : vector<1x2560xf32> to vector<1x256xf32>
    %20 = vector.extract_strided_slice %8 {offsets = [0, 256], sizes = [1, 256], strides = [1, 1]} : vector<1x2560xf32> to vector<1x256xf32>
    %21 = vector.extract_strided_slice %8 {offsets = [0, 512], sizes = [1, 256], strides = [1, 1]} : vector<1x2560xf32> to vector<1x256xf32>
    %22 = vector.extract_strided_slice %8 {offsets = [0, 768], sizes = [1, 256], strides = [1, 1]} : vector<1x2560xf32> to vector<1x256xf32>
    %23 = vector.extract_strided_slice %8 {offsets = [0, 1024], sizes = [1, 256], strides = [1, 1]} : vector<1x2560xf32> to vector<1x256xf32>
    %24 = arith.addf %19, %20 : vector<1x256xf32>
    %25 = arith.addf %21, %22 : vector<1x256xf32>
    %26 = arith.addf %24, %25 : vector<1x256xf32>
    %27 = arith.addf %26, %23 : vector<1x256xf32>
    %28 = arith.maximumf %9, %10 : vector<4x256xf32>
    %29 = arith.maximumf %11, %12 : vector<4x256xf32>
    %30 = arith.maximumf %28, %29 : vector<4x256xf32>
    %31 = arith.maximumf %30, %13 : vector<4x256xf32>
    %cst_7 = arith.constant dense<0xFF800000> : vector<256xf32>
    %32 = vector.multi_reduction <maximumf>, %31, %cst_7 [0] : vector<4x256xf32> to vector<256xf32>
    %33 = vector.shape_cast %32 : vector<256xf32> to vector<1x256xf32>
    %34 = tpu.concatenate %27, %33 in 1 : vector<1x256xf32>, vector<1x256xf32> -> vector<1x512xf32>
    %35 = vector.extract_strided_slice %8 {offsets = [0, 1280], sizes = [1, 256], strides = [1, 1]} : vector<1x2560xf32> to vector<1x256xf32>
    %36 = vector.extract_strided_slice %8 {offsets = [0, 1536], sizes = [1, 256], strides = [1, 1]} : vector<1x2560xf32> to vector<1x256xf32>
    %37 = vector.extract_strided_slice %8 {offsets = [0, 1792], sizes = [1, 256], strides = [1, 1]} : vector<1x2560xf32> to vector<1x256xf32>
    %38 = vector.extract_strided_slice %8 {offsets = [0, 2048], sizes = [1, 256], strides = [1, 1]} : vector<1x2560xf32> to vector<1x256xf32>
    %39 = vector.extract_strided_slice %8 {offsets = [0, 2304], sizes = [1, 256], strides = [1, 1]} : vector<1x2560xf32> to vector<1x256xf32>
    %40 = arith.addf %35, %36 : vector<1x256xf32>
    %41 = arith.addf %37, %38 : vector<1x256xf32>
    %42 = arith.addf %40, %41 : vector<1x256xf32>
    %43 = arith.addf %42, %39 : vector<1x256xf32>
    %44 = arith.maximumf %14, %15 : vector<4x256xf32>
    %45 = arith.maximumf %16, %17 : vector<4x256xf32>
    %46 = arith.maximumf %44, %45 : vector<4x256xf32>
    %47 = arith.maximumf %46, %18 : vector<4x256xf32>
    %cst_8 = arith.constant dense<0xFF800000> : vector<256xf32>
    %48 = vector.multi_reduction <maximumf>, %47, %cst_8 [0] : vector<4x256xf32> to vector<256xf32>
    %49 = vector.shape_cast %48 : vector<256xf32> to vector<1x256xf32>
    %50 = tpu.concatenate %43, %49 in 1 : vector<1x256xf32>, vector<1x256xf32> -> vector<1x512xf32>
    %51 = tpu.concatenate %34, %50 in 0 : vector<1x512xf32>, vector<1x512xf32> -> vector<2x512xf32>
    %c0_9 = arith.constant 0 : index
    %c0_10 = arith.constant 0 : index
    %52 = vector.load %arg5[%c0_9, %c0_10] : memref<512x1280xf32, #tpu.memory_space<vmem>>, vector<512x1280xf32>
    %cst_11 = arith.constant dense<0.000000e+00> : vector<2x1280xf32>
    %53 = tpu.matmul %51, %52, %cst_11 {dimension_numbers = #tpu.dot_dimension_numbers<[1], [0], [0], [1], [0, 0, 1, 1], [], []>} : vector<2x512xf32>, vector<512x1280xf32>, vector<2x1280xf32> -> vector<2x1280xf32>
    %c0_12 = arith.constant 0 : index
    %c0_13 = arith.constant 0 : index
    %54 = vector.load %arg6[%c0_12, %c0_13] : memref<1x1280xf32, #tpu.memory_space<vmem>>, vector<1x1280xf32>
    %55 = vector.broadcast %54 : vector<1x1280xf32> to vector<2x1280xf32>
    %56 = arith.addf %53, %55 : vector<2x1280xf32>
    %57 = arith.negf %56 : vector<2x1280xf32>
    %58 = math.exp %57 : vector<2x1280xf32>
    %cst_14 = arith.constant 1.000000e+00 : f32
    %59 = vector.broadcast %cst_14 : f32 to vector<2x1280xf32>
    %60 = arith.addf %59, %58 : vector<2x1280xf32>
    %61 = arith.divf %59, %60 : vector<2x1280xf32>
    %62 = vector.extract_strided_slice %61 {offsets = [0, 0], sizes = [1, 256], strides = [1, 1]} : vector<2x1280xf32> to vector<1x256xf32>
    %63 = vector.broadcast %62 : vector<1x256xf32> to vector<4x256xf32>
    %64 = arith.mulf %9, %63 : vector<4x256xf32>
    %65 = vector.extract_strided_slice %61 {offsets = [0, 256], sizes = [1, 256], strides = [1, 1]} : vector<2x1280xf32> to vector<1x256xf32>
    %66 = vector.broadcast %65 : vector<1x256xf32> to vector<4x256xf32>
    %67 = arith.mulf %10, %66 : vector<4x256xf32>
    %68 = vector.extract_strided_slice %61 {offsets = [0, 512], sizes = [1, 256], strides = [1, 1]} : vector<2x1280xf32> to vector<1x256xf32>
    %69 = vector.broadcast %68 : vector<1x256xf32> to vector<4x256xf32>
    %70 = arith.mulf %11, %69 : vector<4x256xf32>
    %71 = vector.extract_strided_slice %61 {offsets = [0, 768], sizes = [1, 256], strides = [1, 1]} : vector<2x1280xf32> to vector<1x256xf32>
    %72 = vector.broadcast %71 : vector<1x256xf32> to vector<4x256xf32>
    %73 = arith.mulf %12, %72 : vector<4x256xf32>
    %74 = vector.extract_strided_slice %61 {offsets = [0, 1024], sizes = [1, 256], strides = [1, 1]} : vector<2x1280xf32> to vector<1x256xf32>
    %75 = vector.broadcast %74 : vector<1x256xf32> to vector<4x256xf32>
    %76 = arith.mulf %13, %75 : vector<4x256xf32>
    %77 = arith.addf %64, %67 : vector<4x256xf32>
    %78 = arith.addf %70, %73 : vector<4x256xf32>
    %79 = arith.addf %77, %78 : vector<4x256xf32>
    %80 = arith.addf %79, %76 : vector<4x256xf32>
    %81 = vector.extract_strided_slice %61 {offsets = [1, 0], sizes = [1, 256], strides = [1, 1]} : vector<2x1280xf32> to vector<1x256xf32>
    %82 = vector.broadcast %81 : vector<1x256xf32> to vector<4x256xf32>
    %83 = arith.mulf %14, %82 : vector<4x256xf32>
    %84 = vector.extract_strided_slice %61 {offsets = [1, 256], sizes = [1, 256], strides = [1, 1]} : vector<2x1280xf32> to vector<1x256xf32>
    %85 = vector.broadcast %84 : vector<1x256xf32> to vector<4x256xf32>
    %86 = arith.mulf %15, %85 : vector<4x256xf32>
    %87 = vector.extract_strided_slice %61 {offsets = [1, 512], sizes = [1, 256], strides = [1, 1]} : vector<2x1280xf32> to vector<1x256xf32>
    %88 = vector.broadcast %87 : vector<1x256xf32> to vector<4x256xf32>
    %89 = arith.mulf %16, %88 : vector<4x256xf32>
    %90 = vector.extract_strided_slice %61 {offsets = [1, 768], sizes = [1, 256], strides = [1, 1]} : vector<2x1280xf32> to vector<1x256xf32>
    %91 = vector.broadcast %90 : vector<1x256xf32> to vector<4x256xf32>
    %92 = arith.mulf %17, %91 : vector<4x256xf32>
    %93 = vector.extract_strided_slice %61 {offsets = [1, 1024], sizes = [1, 256], strides = [1, 1]} : vector<2x1280xf32> to vector<1x256xf32>
    %94 = vector.broadcast %93 : vector<1x256xf32> to vector<4x256xf32>
    %95 = arith.mulf %18, %94 : vector<4x256xf32>
    %96 = arith.addf %83, %86 : vector<4x256xf32>
    %97 = arith.addf %89, %92 : vector<4x256xf32>
    %98 = arith.addf %96, %97 : vector<4x256xf32>
    %99 = arith.addf %98, %95 : vector<4x256xf32>
    %100 = tpu.concatenate %80, %99 in 1 : vector<4x256xf32>, vector<4x256xf32> -> vector<4x512xf32>
    %c0_15 = arith.constant 0 : index
    %c0_16 = arith.constant 0 : index
    %101 = vector.load %arg7[%c0_15, %c0_16] : memref<8x4xf32, #tpu.memory_space<vmem>>, vector<8x4xf32>
    %cst_17 = arith.constant dense<0.000000e+00> : vector<8x512xf32>
    %102 = tpu.matmul %101, %100, %cst_17 {dimension_numbers = #tpu.dot_dimension_numbers<[1], [0], [0], [1], [0, 0, 1, 1], [], []>} : vector<8x4xf32>, vector<4x512xf32>, vector<8x512xf32> -> vector<8x512xf32>
    %c0_18 = arith.constant 0 : index
    %c0_19 = arith.constant 0 : index
    %103 = vector.load %arg8[%c0_18, %c0_19] : memref<8x1xf32, #tpu.memory_space<vmem>>, vector<8x1xf32>
    %104 = vector.broadcast %103 : vector<8x1xf32> to vector<8x512xf32>
    %105 = arith.addf %102, %104 : vector<8x512xf32>
    %106 = arith.mulf %1, %105 : vector<8x512xf32>
    %c0_20 = arith.constant 0 : index
    %c0_21 = arith.constant 0 : index
    %107 = vector.load %arg9[%c0_20, %c0_21] : memref<8x8xf32, #tpu.memory_space<vmem>>, vector<8x8xf32>
    %cst_22 = arith.constant dense<0.000000e+00> : vector<8x512xf32>
    %108 = tpu.matmul %107, %106, %cst_22 {dimension_numbers = #tpu.dot_dimension_numbers<[1], [0], [0], [1], [0, 0, 1, 1], [], []>} : vector<8x8xf32>, vector<8x512xf32>, vector<8x512xf32> -> vector<8x512xf32>
    %c0_23 = arith.constant 0 : index
    %c0_24 = arith.constant 0 : index
    %109 = vector.load %arg10[%c0_23, %c0_24] : memref<8x1xf32, #tpu.memory_space<vmem>>, vector<8x1xf32>
    %110 = vector.broadcast %109 : vector<8x1xf32> to vector<8x512xf32>
    %111 = arith.addf %108, %110 : vector<8x512xf32>
    %112 = arith.addf %111, %1 : vector<8x512xf32>
    %c0_25 = arith.constant 0 : index
    %c0_26 = arith.constant 0 : index
    %113 = vector.load %arg11[%c0_25, %c0_26] : memref<8x512xf32, #tpu.memory_space<vmem>>, vector<8x512xf32>
    tpu.vector_store %arg11[%c0_25, %c0_26], %112 {strides = array<i32>} : memref<8x512xf32, #tpu.memory_space<vmem>>, vector<8x512xf32>,
    return
  }
  func.func @transform_0(%arg0: i32) -> (i32, i32) {
    %c0_i32 = arith.constant 0 : i32
    %c0_i32_0 = arith.constant 0 : i32
    return %c0_i32, %arg0 : i32, i32
  }
  func.func @transform_1(%arg0: i32) -> (i32, i32) {
    %c0_i32 = arith.constant 0 : i32
    %c0_i32_0 = arith.constant 0 : i32
    return %c0_i32, %arg0 : i32, i32
  }
  func.func @transform_2(%arg0: i32) -> (i32, i32) {
    %c0_i32 = arith.constant 0 : i32
    %c0_i32_0 = arith.constant 0 : i32
    %c0_i32_1 = arith.constant 0 : i32
    return %c0_i32, %c0_i32_0 : i32, i32
  }
  func.func @transform_3(%arg0: i32) -> (i32, i32) {
    %c0_i32 = arith.constant 0 : i32
    %c0_i32_0 = arith.constant 0 : i32
    %c0_i32_1 = arith.constant 0 : i32
    return %c0_i32, %c0_i32_0 : i32, i32
  }
  func.func @transform_4(%arg0: i32) -> (i32, i32) {
    %c0_i32 = arith.constant 0 : i32
    %c0_i32_0 = arith.constant 0 : i32
    %c0_i32_1 = arith.constant 0 : i32
    return %c0_i32, %c0_i32_0 : i32, i32
  }
  func.func @transform_5(%arg0: i32) -> (i32, i32) {
    %c0_i32 = arith.constant 0 : i32
    %c0_i32_0 = arith.constant 0 : i32
    %c0_i32_1 = arith.constant 0 : i32
    return %c0_i32, %c0_i32_0 : i32, i32
  }
  func.func @transform_6(%arg0: i32) -> (i32, i32) {
    %c0_i32 = arith.constant 0 : i32
    %c0_i32_0 = arith.constant 0 : i32
    %c0_i32_1 = arith.constant 0 : i32
    return %c0_i32, %c0_i32_0 : i32, i32
  }
  func.func @transform_7(%arg0: i32) -> (i32, i32) {
    %c0_i32 = arith.constant 0 : i32
    %c0_i32_0 = arith.constant 0 : i32
    %c0_i32_1 = arith.constant 0 : i32
    return %c0_i32, %c0_i32_0 : i32, i32
  }
  func.func @transform_8(%arg0: i32) -> (i32, i32) {
    %c0_i32 = arith.constant 0 : i32
    %c0_i32_0 = arith.constant 0 : i32
    %c0_i32_1 = arith.constant 0 : i32
    return %c0_i32, %c0_i32_0 : i32, i32
  }
  func.func @transform_9(%arg0: i32) -> (i32, i32) {
    %c0_i32 = arith.constant 0 : i32
    %c0_i32_0 = arith.constant 0 : i32
    %c0_i32_1 = arith.constant 0 : i32
    return %c0_i32, %c0_i32_0 : i32, i32
  }
  func.func @transform_10(%arg0: i32) -> (i32, i32) {
    %c0_i32 = arith.constant 0 : i32
    %c0_i32_0 = arith.constant 0 : i32
    return %c0_i32, %arg0 : i32, i32
  }
}

</mosaic_0001>

<bundles_post_ra>
// kernel: tpu_custom_call.1
= control target key start
LH: loop header
LB: loop body
LE: loop exit
PB: predicated region body
PF: predicated region fallthrough
CT: control target
= control target key end

     0   :  { %s5133_s0 = inlined_call_operand.hbm [shape: f32[8,5120], index: 0, kind: input, shape index: {}]   ;;  %s5134_s1 = inlined_call_operand.hbm [shape: f32[8,1024], index: 1, kind: input, shape index: {}]   ;;  %s5135_s2 = inlined_call_operand.hbm [shape: f32[5,8], index: 2, kind: input, shape index: {}]   ;;  %s5136_s3 = inlined_call_operand.vmem [shape: f32[5,1], index: 3, kind: input, shape index: {}]   ;;  %s5137_s4 = inlined_call_operand.hbm [shape: f32[512,1280], index: 4, kind: input, shape index: {}]   ;;  %s5138_s5 = inlined_call_operand.hbm [shape: f32[1,1280], index: 5, kind: input, shape index: {}]   ;;  %s5139_s6 = inlined_call_operand.vmem [shape: f32[8,4], index: 6, kind: input, shape index: {}]   ;;  %s5140_s7 = inlined_call_operand.vmem [shape: f32[8,1], index: 7, kind: input, shape index: {}]   ;;  %s5141_s8 = inlined_call_operand.hbm [shape: f32[8,8], index: 8, kind: input, shape index: {}]   ;;  %s5142_s9 = inlined_call_operand.vmem [shape: f32[8,1], index: 9, kind: input, shape index: {}]   ;;  %s5143_s10 = inlined_call_operand.hbm [shape: f32[8,1024], index: 10, kind: output, shape index: {}]  }
   0x1   :  { %5148 = sst [smem:[#allocation21_spill]] %s5133_s0 }
   0x2   :  { %5149 = sst [smem:[#allocation22_spill]] %s5135_s2 }
   0x3   :  { %5150 = sst [smem:[#allocation23_spill]] %s5137_s4 }
   0x4   :  { %5151 = sst [smem:[#allocation24_spill]] %s5138_s5 }
   0x5   :  { %5152 = sst [smem:[#allocation25_spill]] %s5141_s8 }
   0x6   :  { %15 = vsyncpa [#allocation3], 0 }
   0x7   :  { %17 = vsyncpa [#allocation3 + $0x1], 0 }
   0x8   :  { %18 = vsyncpa [#allocation6], 0 }
   0x9   :  { %20 = vsyncpa [#allocation6 + $0x1], 0 }
   0xa   :  { %21 = vsyncpa [#allocation9], 0 }
   0xb   :  { %22 = vsyncpa [#allocation12], 0 }
   0xc   :  { %23 = vsyncpa [#allocation4], 0 }
   0xd   :  { %25 = vsyncpa [#allocation4 + $0x1], 0  ;;  %s4535_s13 = smov 0   ;;  %s4537_s14 = smov 0  }
   0xe   :  { %s4539_s15 = smov 0   ;;  %s4541_s16 = smov 0  }
   0xf LB: > { %s4469_s17 = smov [#allocation7]   ;;  %s4556_s19 = sadd.s32 4294967295, %s4467_s16   ;;  %s4467_s16 = sphi %s4541_s16, %s5183_s16   ;;  %s4463_s15 = sphi %s4539_s15, %s5182_s15   ;;  %s4459_s14 = sphi %s4537_s14, %s5181_s14   ;;  %s4455_s13 = sphi %s4535_s13, %s5180_s13  }
  0x10   : > { %s295_s18 = sshll.u32 %s4469_s17, 4  ;;  %p3360_p0 = scmp.ge.s32.totalorder %s4467_s16, 1  ;;  %s296_s18 = int_to_ptr.vmem [resolvable:$true] %s295_s18 }
  0x11   : > { %p5144_p1 = scmp.eq.s32.totalorder %s4556_s19, 0  ;;  %p282_p2 = scmp.lt.s32.totalorder %s4467_s16, 3 }
  0x12   : > { %s4470_s21 = smov [#allocation8]   ;;  %s4471_s24 = smov [#allocation10]  }
  0x13   : > { %p4561_p3 = pnand %p3360_p0, %p282_p2  ;;  %s308_s22 = sshll.u32 %s4470_s21, 4  ;;  %s4568_s22 = int_to_ptr.vmem [resolvable:$true] %s308_s22 }
  0x14   : > { %s322_s25 = sshll.u32 %s4471_s24, 4  ;;  %s5155_s2 = sld [smem:[#allocation22_spill]]  ;;  %s4576_s25 = int_to_ptr.vmem [resolvable:$true] %s322_s25 }
  0x15   : > { %s5153_s20 = scalar_select %p4561_p3, 1, 0 }
  0x16   : > { %p4097_p5 = pneg %p4561_p3 }
  0x18   : > { %p4572_p6 = pnand %p4097_p5, %p5144_p1 }
  0x1a   : > { %s4213_s28 = scalar_lea.hbm %s5155_s2, 128  ;;  %p4586_p8 = pneg %p4572_p6 }
  0x1b   : > { %p4214_p7 = scmp.ne.s32.totalorder %s5155_s2, %s4213_s28  ;;  %p4220_p11 = scmp.lt.u32.totalorder %s4213_s28, %s5155_s2 }
  0x1d   : > { %p4216_p9 = pnand %p4586_p8, %p4214_p7 }
  0x1f   : > { %p4217_p10 = pneg %p4216_p9 }
  0x21   : > { %p4222_p12 = pnand %p4220_p11, %p4217_p10 }
  0x23   : > { %4225 = shalt.err (!%p4222_p12)
}
  0x24   : > { %s4226_s21 = scalar_lea.vmem %s296_s18, 128  ;;  %p4234_p5 = scmp.lt.s32.totalorder %s296_s18, %s296_s18 }
  0x25   : > { %p4227_p13 = scmp.ne.s32.totalorder %s296_s18, %s4226_s21  ;;  %p4235_p4 = scmp.lt.s32.totalorder %s4226_s21, %s4226_s21 }
  0x27   : > { %p4229_p0 = pnand %p4227_p13, %p4586_p8  ;;  %p4236_p1 = por %p4235_p4, %p4234_p5 }
  0x29   : > { %p4230_p2 = pneg %p4229_p0 }
  0x2b   : > { %p4237_p3 = pnand %p4236_p1, %p4230_p2 }
  0x2d   : > { %4240 = shalt.err (!%p4237_p3)
}
  0x2e   : > { %4100 = dma.hbm_to_vmem [thread:$0]  (!%p4572_p6), %s5155_s2, 128, %s296_s18, [#allocation6]  }
  0x2f   : > { %s5157_s4 = sld [smem:[#allocation23_spill]] }
  0x35   : > { %s4241_s29 = scalar_lea.hbm %s5157_s4, 81920 }
  0x36   : > { %p4242_p7 = scmp.ne.s32.totalorder %s5157_s4, %s4241_s29  ;;  %p4248_p1 = scmp.lt.u32.totalorder %s4241_s29, %s5157_s4 }
  0x38   : > { %p4244_p9 = pnand %p4242_p7, %p4586_p8 }
  0x3a   : > { %p4245_p4 = pneg %p4244_p9 }
  0x3c   : > { %p4250_p3 = pnand %p4248_p1, %p4245_p4 }
  0x3e   : > { %4253 = shalt.err (!%p4250_p3)
}
  0x3f   : > { %s4254_s18 = scalar_lea.vmem %s4568_s22, 81920  ;;  %p4262_p13 = scmp.lt.s32.totalorder %s4568_s22, %s4568_s22 }
  0x40   : > { %p4255_p10 = scmp.ne.s32.totalorder %s4568_s22, %s4254_s18  ;;  %p4263_p0 = scmp.lt.s32.totalorder %s4254_s18, %s4254_s18 }
  0x42   : > { %p4257_p11 = pnand %p4255_p10, %p4586_p8  ;;  %p4264_p2 = por %p4263_p0, %p4262_p13 }
  0x44   : > { %p4258_p12 = pneg %p4257_p11 }
  0x46   : > { %p4265_p5 = pnand %p4264_p2, %p4258_p12 }
  0x48   : > { %4268 = shalt.err (!%p4265_p5)
}
  0x49   : > { %s4472_s24 = smov 1280   ;;  %s4473_s26 = smov 80  }
  0x4a   : > { %4103 = dma.hbm_to_vmem [thread:$0]  (!%p4572_p6), %s5157_s4, 81920, %s4568_s22, [#allocation9], %s4472_s24, %s4472_s24, %s4473_s26  }
  0x4b   : > { %s5158_s5 = sld [smem:[#allocation24_spill]] }
  0x51   : > { %s4269_s12 = scalar_lea.hbm %s5158_s5, 160 }
  0x52   : > { %p4270_p7 = scmp.ne.s32.totalorder %s5158_s5, %s4269_s12  ;;  %p4276_p1 = scmp.lt.u32.totalorder %s4269_s12, %s5158_s5 }
  0x54   : > { %p4272_p9 = pnand %p4270_p7, %p4586_p8 }
  0x56   : > { %p4273_p4 = pneg %p4272_p9 }
  0x58   : > { %p4278_p3 = pnand %p4276_p1, %p4273_p4 }
  0x5a   : > { %4281 = shalt.err (!%p4278_p3)
}
  0x5b   : > { %s4282_s22 = scalar_lea.vmem %s4576_s25, 160  ;;  %p4290_p13 = scmp.lt.s32.totalorder %s4576_s25, %s4576_s25 }
  0x5c   : > { %p4283_p10 = scmp.ne.s32.totalorder %s4576_s25, %s4282_s22  ;;  %p4291_p0 = scmp.lt.s32.totalorder %s4282_s22, %s4282_s22 }
  0x5e   : > { %p4285_p11 = pnand %p4283_p10, %p4586_p8  ;;  %p4292_p2 = por %p4291_p0, %p4290_p13 }
  0x60   : > { %p4286_p12 = pneg %p4285_p11 }
  0x62   : > { %p4293_p5 = pnand %p4292_p2, %p4286_p12 }
  0x64   : > { %4296 = shalt.err (!%p4293_p5)
}
  0x65   : > { %4106 = dma.hbm_to_vmem [thread:$0]  (!%p4572_p6), %s5158_s5, 160, %s4576_s25, [#allocation9]  }
  0x66   : > { %s4474_s26 = smov [#allocation11]   ;;  %s5159_s8 = sld [smem:[#allocation25_spill]] }
  0x67   : > { %s339_s27 = sshll.u32 %s4474_s26, 4  ;;  %s340_s27 = int_to_ptr.vmem [resolvable:$true] %s339_s27 }
  0x6c   : > { %s4297_s30 = scalar_lea.hbm %s5159_s8, 128 }
  0x6d   : > { %p4298_p7 = scmp.ne.s32.totalorder %s5159_s8, %s4297_s30  ;;  %p4304_p1 = scmp.lt.u32.totalorder %s4297_s30, %s5159_s8 }
  0x6f   : > { %p4300_p9 = pnand %p4298_p7, %p4586_p8 }
  0x71   : > { %p4301_p4 = pneg %p4300_p9 }
  0x73   : > { %p4306_p3 = pnand %p4304_p1, %p4301_p4 }
  0x75   : > { %4309 = shalt.err (!%p4306_p3)
}
  0x76   : > { %s4310_s25 = scalar_lea.vmem %s340_s27, 128  ;;  %p4318_p13 = scmp.lt.s32.totalorder %s340_s27, %s340_s27 }
  0x77   : > { %p4311_p10 = scmp.ne.s32.totalorder %s340_s27, %s4310_s25  ;;  %p4319_p0 = scmp.lt.s32.totalorder %s4310_s25, %s4310_s25 }
  0x79   : > { %p4313_p11 = pnand %p4311_p10, %p4586_p8  ;;  %p4320_p2 = por %p4319_p0, %p4318_p13 }
  0x7b   : > { %p4314_p12 = pneg %p4313_p11 }
  0x7d   : > { %p4321_p5 = pnand %p4320_p2, %p4314_p12 }
  0x7f   : > { %4324 = shalt.err (!%p4321_p5)
}
  0x80   : > { %4109 = dma.hbm_to_vmem [thread:$0]  (!%p4572_p6), %s5159_s8, 128, %s340_s27, [#allocation12]  }
  0x81   : > { %s3359_s11 = sadd.s32 4294967294, %s4467_s16   ;;  %s4668_s23 = sadd.s32 1, %s4467_s16  }
  0x82   : > { %s35_s24 = ssub.s32 %s4467_s16, %s4668_s23  ;;  %s38_s26 = sadd.s32 1, %s4463_s15 }
  0x83   : > { %p36_p8 = scmp.eq.s32.totalorder %s35_s24, 0  ;;  %p45_p7 = scmp.ne.s32.totalorder %s4463_s15, %s4459_s14 }
  0x84   : > { %p46_p9 = scmp.eq.s32.totalorder %s4467_s16, 0  ;;  %p51_p4 = scmp.ne.s32.totalorder %s4459_s14, %s4455_s13 }
  0x85   : > { %s4679_s28 = scalar_select %p36_p8, %s4463_s15, %s38_s26  }
  0x86   : > { %p47_p1 = por %p46_p9, %p45_p7  ;;  %p5161_p3 = scmp.eq.s32.totalorder %s4556_s19, 0 }
  0x87   : > { %5160 = sst [smem:[#allocation20_spill]] %s4679_s28  ;;  %p269_p6 = scmp.eq.s32.totalorder %s4556_s19, 1 }
  0x88   : > { %p4683_p10 = por %p5161_p3, %p51_p4  ;;  %p275_p11 = scmp.eq.s32.totalorder %s3359_s11, 1 }
  0x89   : > { %p4125_p12 = scmp.lt.s32.totalorder %s4467_s16, 2  ;;  %s4690_s27 = sand.u32 1, %s4463_s15  }
  0x8a   : > { %s5162_s29 = scalar_select %p4683_p10, 1, 0 }
  0x8b   : > { %p4692_p13 = por %p269_p6, %p45_p7  ;;  %p4696_p0 = por %p275_p11, %p51_p4 }
  0x8c   : > { %s4073_s17 = smul.u32 160, %s4690_s27  ;;  %p4702_p2 = pnand %p4125_p12, %p47_p1 }
  0x8d   : > { %s5163_s30 = scalar_select %p4692_p13, 1, 0 }
  0x8e   : > { %s5164_s12 = scalar_select %p4696_p0, 1, 0 }
  0x8f   : > { %s3410_s21 = smul.u32 2560, %s4467_s16  ;;  %s5166_s0 = sld [smem:[#allocation21_spill]] }
  0x90   : > { %s357_s24 = scalar_lea.vmem [#allocation2], %s4073_s17  ;;  %s354_s4 = scalar_lea.sflag [#allocation3], %s4690_s27 }
  0x91   : > { %s365_s26 = sshll.u32 %s357_s24, 4  ;;  %p4327_p8 = pneg %p4702_p2  ;;  %s4712_s26 = int_to_ptr.vmem [resolvable:$true] %s365_s26 }
  0x95   : > { %s4710_s11 = scalar_lea.hbm %s5166_s0, %s3410_s21  ;;  %s4330_s2 = scalar_lea.hbm %s5166_s0, 5120 }
  0x96   : > { %s4325_s5 = scalar_lea.hbm %s4710_s11, 2560  ;;  %p4331_p4 = scmp.lt.u32.totalorder %s4710_s11, %s5166_s0 }
  0x97   : > { %p4326_p5 = scmp.ne.s32.totalorder %s4710_s11, %s4325_s5  ;;  %p4332_p1 = scmp.lt.u32.totalorder %s4330_s2, %s4325_s5 }
  0x98   : > { %p4334_p6 = scmp.lt.u32.totalorder %s4325_s5, %s4710_s11 }
  0x99   : > { %p4328_p7 = pnand %p4327_p8, %p4326_p5  ;;  %p4333_p3 = por %p4332_p1, %p4331_p4 }
  0x9b   : > { %p4329_p9 = pneg %p4328_p7  ;;  %p4335_p11 = por %p4334_p6, %p4333_p3 }
  0x9d   : > { %p4336_p12 = pnand %p4335_p11, %p4329_p9 }
  0x9f   : > { %4339 = shalt.err (!%p4336_p12)
}
  0xa0   : > { %s4340_s17 = scalar_lea.vmem %s4712_s26, 2560  ;;  %s4475_s24 = smov [#allocation2]  }
  0xa1   : > { %p4341_p5 = scmp.ne.s32.totalorder %s4712_s26, %s4340_s17  ;;  %s4345_s22 = sshll.u32 %s4475_s24, 4  ;;  %s4346_s22 = int_to_ptr.vmem [resolvable:$false] %s4345_s22 }
  0xa2   : > { %s4347_s8 = scalar_lea.vmem %s4346_s22, 5120  ;;  %p4348_p13 = scmp.lt.s32.totalorder %s4712_s26, %s4346_s22 }
  0xa3   : > { %p4343_p7 = pnand %p4341_p5, %p4327_p8  ;;  %p4349_p4 = scmp.lt.s32.totalorder %s4347_s8, %s4340_s17 }
  0xa5   : > { %p4344_p0 = pneg %p4343_p7  ;;  %p4350_p1 = por %p4349_p4, %p4348_p13 }
  0xa7   : > { %p4351_p3 = pnand %p4350_p1, %p4344_p0 }
  0xa9   : > { %4354 = shalt.err (!%p4351_p3)
}
  0xaa   : > { %4113 = dma.hbm_to_vmem [thread:$0]  (!%p4702_p2), %s4710_s11, 2560, %s4712_s26, %s354_s4  }
  0xab   : > { %s3367_s5 = sshll.u32 %s4690_s27, 5  ;;  %s3411_s25 = sshll.u32 %s4467_s16, 9 }
  0xac   : > { %s4745_s24 = scalar_lea.hbm %s5134_s1, %s3411_s25  ;;  %s376_s17 = scalar_lea.vmem [#allocation5], %s3367_s5 }
  0xad   : > { %s384_s22 = sshll.u32 %s376_s17, 4  ;;  %s5167_s8 = sand.u32 1, %s4467_s16   ;;  %s385_s22 = int_to_ptr.vmem [resolvable:$true] %s384_s22 }
  0xae   : > { %s373_s0 = scalar_lea.sflag [#allocation6], %s5167_s8  ;;  %s4355_s28 = scalar_lea.hbm %s4745_s24, 512 }
  0xaf   : > { %p4356_p13 = scmp.ne.s32.totalorder %s4745_s24, %s4355_s28  ;;  %s4360_s11 = scalar_lea.hbm %s5134_s1, 1024 }
  0xb0   : > { %p4361_p6 = scmp.lt.u32.totalorder %s4745_s24, %s5134_s1  ;;  %p4362_p11 = scmp.lt.u32.totalorder %s4360_s11, %s4355_s28 }
  0xb1   : > { %p4358_p0 = pnand %p4356_p13, %p4327_p8  ;;  %p4364_p5 = scmp.lt.u32.totalorder %s4355_s28, %s4745_s24 }
  0xb2   : > { %p4363_p12 = por %p4362_p11, %p4361_p6 }
  0xb3   : > { %p4359_p9 = pneg %p4358_p0 }
  0xb4   : > { %p4365_p7 = por %p4364_p5, %p4363_p12 }
  0xb6   : > { %p4366_p4 = pnand %p4365_p7, %p4359_p9 }
  0xb8   : > { %4369 = shalt.err (!%p4366_p4)
}
  0xb9   : > { %s4370_s5 = scalar_lea.vmem %s385_s22, 512  ;;  %s4476_s21 = smov [#allocation5]  }
  0xba   : > { %p4371_p1 = scmp.ne.s32.totalorder %s385_s22, %s4370_s5  ;;  %s4375_s2 = sshll.u32 %s4476_s21, 4  ;;  %s4376_s2 = int_to_ptr.vmem [resolvable:$false] %s4375_s2 }
  0xbb   : > { %s4377_s17 = scalar_lea.vmem %s4376_s2, 1024  ;;  %p4378_p0 = scmp.lt.s32.totalorder %s385_s22, %s4376_s2 }
  0xbc   : > { %p4373_p3 = pnand %p4371_p1, %p4327_p8  ;;  %p4379_p10 = scmp.lt.s32.totalorder %s4377_s17, %s4370_s5 }
  0xbe   : > { %p4374_p13 = pneg %p4373_p3  ;;  %p4380_p6 = por %p4379_p10, %p4378_p0 }
  0xc0   : > { %p4381_p11 = pnand %p4380_p6, %p4374_p13 }
  0xc2   : > { %4384 = shalt.err (!%p4381_p11)
}
  0xc3   : > { %4116 = dma.hbm_to_vmem [thread:$0]  (!%p4702_p2), %s4745_s24, 512, %s385_s22, %s373_s0  }
  0xc4   : > { %p5168_p9 = scmp.ne.s32.totalorder %s5153_s20, 0 }
  0xc5   : > { %s4771_s28 = sand.u32 (!%p5168_p9), 1, %s4459_s14   ;;  %p5169_p10 = scmp.ne.s32.totalorder (!%p5168_p9), %s5162_s29, 0 }
  0xc6   : > { %393 = sbr.rel (%p5168_p9) target bundleno = 1446 (0x5a6), region = 60  ;;  %s396_s4 = scalar_lea.sflag (!%p5168_p9), [#allocation3], %s4771_s28 }
  0xc7   : > { %s4074_s8 = smul.u32 (!%p5168_p9), 160, %s4771_s28 }
  0xc9   : > { %s4775_s27 = scalar_lea.vmem (!%p5168_p9), [#allocation2], %s4074_s8 }
  0xcd   : > { %4430 = dma.done.wait (%p5169_p10), %s396_s4, 2560  }
  0xce   : > { %4432 = vsyncadd (%p5169_p10), %s396_s4, 4294964736  ;;  %s404_s0 = sand.u32 1, %s4556_s19   ;;  %s3371_s20 = sshll.u32 %s4771_s28, 5 }
  0xcf   : > { %s405_s18 = scalar_lea.sflag [#allocation6], %s404_s0  ;;  %s4785_s24 = scalar_lea.vmem [#allocation5], %s3371_s20 }
  0xd0   : > { %4434 = dma.done.wait (%p5169_p10), %s405_s18, 512  }
  0xd1   : > { %4436 = vsyncadd (%p5169_p10), %s405_s18, 4294966784  ;;  %p5170_p2 = scmp.eq.s32.totalorder %s4556_s19, 0 }
  0xd3   : > { %4438 = dma.done.wait (%p5170_p2), [#allocation6], 128   ;;  %p5171_p8 = pmov %p5170_p2 }
  0xd4   : > { %p5172_p12 = pmov %p5170_p2 }
  0xd5   : > { %4440 = vsyncadd (%p5171_p8), [#allocation6], 4294967168 }
  0xd6   : > { %4442 = dma.done.wait (%p5172_p12), [#allocation9], 82080   ;;  %p5173_p5 = pmov %p5170_p2 }
  0xd7   : > { %p5174_p7 = pmov %p5170_p2 }
  0xd8   : > { %4444 = vsyncadd (%p5173_p5), [#allocation9], 4294885216 }
  0xd9   : > { %4446 = dma.done.wait (%p5174_p7), [#allocation12], 128   ;;  %p5175_p4 = pmov %p5170_p2 }
  0xda   : > { %v4477_v0 = vmov 0.0   ;;  %v4478_v1 = vmov 0   ;;  %v470_v2 = vld [vmem:[%s4775_s27 + $0x8] sm:$0xff]  ;;  %v469_v3 = vld [vmem:[%s4775_s27] sm:$0xff]  ;;  %vm500_vm0 = vcmask 64512   ;;  %v472_v5 = vld [vmem:[%s4775_s27 + $0x18] sm:$0xff] }
  0xdb   : > { %4448 = vsyncadd (%p5175_p4), [#allocation12], 4294967168  ;;  %568 = vmatprep.mubr.f32.mxu0 %v4477_v0  ;;  %923 = vmatprep.mubr.f32.mxu1 %v4477_v0  ;;  %v4807_v4 = vld [vmem:[#allocation7] sm:$0x1f]  ;;  %v471_v6 = vld [vmem:[%s4775_s27 + $0x10] sm:$0xff]  ;;  %vm1230_vm1 = vcmask 1043456  }
  0xdc   : > { %4171 = vset.pattern.permute.xlu0 %v4478_v1  ;;  %4172 = vset.pattern.permute.xlu1 %v4478_v1  ;;  %v474_v7 = vld [vmem:[%s4775_s27 + $0x28] sm:$0xff]  ;;  %v480_v8 = vld [vmem:[%s4775_s27 + $0x58] sm:$0xff]  ;;  %v479_v9 = vld [vmem:[%s4775_s27 + $0x50] sm:$0xff]  ;;  %vm1299_vm2 = vcmask 1040384   ;;  %vm2891_vm3 = vcmask 31744   ;;  %s465_s17 = scalar_lea.vmem [#allocation13], %s3371_s20 }
  0xdd   : > { %504 = vmatprep.subr.mxu0 %v470_v2  ;;  %v473_v10 = vld [vmem:[%s4775_s27 + $0x20] sm:$0xff]  ;;  %859 = vmatprep.subr.mxu1 %v480_v8  ;;  %v476_v11 = vld [vmem:[%s4775_s27 + $0x38] sm:$0xff]  ;;  %v483_v13 = vld [vmem:[%s4775_s27 + $0x70] sm:$0xff]  ;;  %s3412_s8 = sshll.u32 %s4556_s19, 9  ;;  %s3228_s4 = sshll.u32 %s465_s17, 4  ;;  %s5091_s4 = int_to_ptr.vmem [resolvable:$true] %s3228_s4 }
  0xde   : > { %505 = vmatpush1.msra.mxu0 %v469_v3  ;;  %860 = vmatpush1.msra.mxu1 %v479_v9  ;;  %v484_v12 = vld [vmem:[%s4775_s27 + $0x78] sm:$0xff]  ;;  %v475_v14 = vld [vmem:[%s4775_s27 + $0x30] sm:$0xff]  ;;  %v478_v15 = vld [vmem:[%s4775_s27 + $0x48] sm:$0xff]  ;;  %s5089_s18 = scalar_lea.hbm %s5143_s10, %s3412_s8  ;;  %s3214_s20 = scalar_lea.sflag [#allocation4], %s4771_s28 }
  0xdf   : > { %3377 = vmatmul.mubr.msk.f32.vlgmr.msra.gmra.mrb[0].mxu0 %vm500_vm0, %v4807_v4  ;;  %575 = vmatprep.subr.mxu0 %v472_v5  ;;  %v488_v16 = vld [vmem:[%s4775_s27 + $0x98] sm:$0xff]  ;;  %v487_v17 = vld [vmem:[%s4775_s27 + $0x90] sm:$0xff]  ;;  %v1315_v19 = vld [vmem:[#allocation8 + $0x58] sm:$0xff]  ;;  %p5176_p3 = scmp.ne.s32.totalorder %s5163_s30, 0  ;;  %s4479_s19 = smov [#allocation13]  }
  0xe0   : > { %576 = vmatpush1.msra.mxu0 %v471_v6  ;;  %639 = vmatprep.mubr.f32.mxu0 %v4477_v0  ;;  %v1305_v18 = vld [vmem:[#allocation8 + $0x8] sm:$0xff]  ;;  %v1304_v20 = vld [vmem:[#allocation8] sm:$0xff]  ;;  %v1314_v21 = vld [vmem:[#allocation8 + $0x50] sm:$0xff]  ;;  %s4389_s29 = sshll.u32 %s4479_s19, 4  ;;  %s4390_s29 = int_to_ptr.vmem [resolvable:$false] %s4389_s29 }
  0xe1   : > { %646 = vmatprep.subr.mxu0 %v474_v7  ;;  %3382 = vmatmul.mubr.msk.f32.vlgmr.msra.gmra.mrb[0].mxu1 %vm500_vm0, %v4807_v4  ;;  %v477_v22 = vld [vmem:[%s4775_s27 + $0x40] sm:$0xff]  ;;  %v482_v23 = vld [vmem:[%s4775_s27 + $0x68] sm:$0xff]  ;;  %v3413_v25 = vpack.c.bf16 %v1315_v19, %v1305_v18  ;;  %v3415_v26 = vpack.c.bf16 %v1314_v21, %v1304_v20  ;;  %v1325_v27 = vld [vmem:[#allocation8 + $0xa8] sm:$0xff]  ;;  %s4391_s22 = scalar_lea.vmem %s4390_s29, 1024  ;;  %p4392_p6 = scmp.lt.s32.totalorder %s5091_s4, %s4390_s29 }
  0xe2   : > { %1001 = vmatprep.subr.mxu1 %v484_v12  ;;  %1065 = vmatprep.mubr.f32.mxu1 %v4477_v0  ;;  %v494_v24 = vld [vmem:[%s5136_s3] sm:$0x1f]  ;;  %v1324_v30 = vld [vmem:[#allocation8 + $0xa0] sm:$0xff]  ;;  %v1334_v31 = vld [vmem:[#allocation8 + $0xf0] sm:$0xff] }
  0xe3   : > { %3378 = vmatmul.mubr.msk.f32.vlgmr.msra.gmra.mrb[2].mxu0 %vm500_vm0, %v4807_v4  ;;  %1002 = vmatpush1.msra.mxu1 %v483_v13  ;;  %v1335_v28 = vld [vmem:[#allocation8 + $0xf8] sm:$0xff]  ;;  %v486_v32 = vld [vmem:[%s4775_s27 + $0x88] sm:$0xff]  ;;  %v1345_v34 = vld [vmem:[#allocation8 + $0x148] sm:$0xff]  ;;  %v3419_v40 = vpack.c.bf16 %v1334_v31, %v1324_v30 }
  0xe4   : > { %647 = vmatpush1.msra.mxu0 %v473_v10  ;;  %710 = vmatprep.mubr.f32.mxu0 %v4477_v0  ;;  %v481_v29 = vld [vmem:[%s4775_s27 + $0x60] sm:$0xff]  ;;  %v3417_v35 = vpack.c.bf16 %v1335_v28, %v1325_v27  ;;  %v1625_v37 = vld [vmem:[#allocation8 + $0xa08] sm:$0xff]  ;;  %v1344_v41 = vld [vmem:[#allocation8 + $0x140] sm:$0xff] }
  0xe5   : > { %717 = vmatprep.subr.mxu0 %v476_v11  ;;  %3384 = vmatmul.mubr.msk.f32.vlgmr.msra.gmra.mrb[2].mxu1 %vm500_vm0, %v4807_v4  ;;  %v2885_v33 = vld [vmem:[%s5140_s7] sm:$0xff]  ;;  %v1354_v42 = vld [vmem:[#allocation8 + $0x190] sm:$0xff]  ;;  %v1365_v43 = vld [vmem:[#allocation8 + $0x1e8] sm:$0xff] }
  0xe6   : > { %1143 = vmatprep.subr.mxu1 %v488_v16  ;;  %1207 = vmatprep.mubr.f32.mxu1 %v4477_v0  ;;  %v1355_v36 = vld [vmem:[#allocation8 + $0x198] sm:$0xff]  ;;  %v1624_v47 = vld [vmem:[#allocation8 + $0xa00] sm:$0xff]  ;;  %v1634_v48 = vld [vmem:[#allocation8 + $0xa50] sm:$0xff]  ;;  %v3423_v51 = vpack.c.bf16 %v1354_v42, %v1344_v41 }
  0xe7   : > { %3379 = vmatmul.mubr.msk.f32.vlgmr.msra.gmra.mrb[4].mxu0 %vm500_vm0, %v4807_v4  ;;  %1144 = vmatpush1.msra.mxu1 %v487_v17  ;;  %v1635_v38 = vld [vmem:[#allocation8 + $0xa58] sm:$0xff]  ;;  %v3421_v44 = vpack.c.bf16 %v1355_v36, %v1345_v34  ;;  %v1645_v49 = vld [vmem:[#allocation8 + $0xaa8] sm:$0xff]  ;;  %v1364_v53 = vld [vmem:[#allocation8 + $0x1e0] sm:$0xff]  ;;  %v3479_v55 = vpack.c.bf16 %v1634_v48, %v1624_v47 }
  0xe8   : > { %718 = vmatpush1.msra.mxu0 %v475_v14  ;;  %781 = vmatprep.mubr.f32.mxu0 %v4477_v0  ;;  %v485_v39 = vld [vmem:[%s4775_s27 + $0x80] sm:$0xff]  ;;  %v3477_v46 = vpack.c.bf16 %v1635_v38, %v1625_v37  ;;  %v1374_v54 = vld [vmem:[#allocation8 + $0x230] sm:$0xff]  ;;  %v1385_v56 = vld [vmem:[#allocation8 + $0x288] sm:$0xff] }
  0xe9   : > { %788 = vmatprep.subr.mxu0 %v478_v15  ;;  %3386 = vmatmul.mubr.msk.f32.vlgmr.msra.gmra.mrb[4].mxu1 %vm500_vm0, %v4807_v4  ;;  %v1375_v45 = vld [vmem:[#allocation8 + $0x238] sm:$0xff]  ;;  %v1644_v59 = vld [vmem:[#allocation8 + $0xaa0] sm:$0xff]  ;;  %v1654_v60 = vld [vmem:[#allocation8 + $0xaf0] sm:$0xff]  ;;  %v3427_v63 = vpack.c.bf16 %v1374_v54, %v1364_v53 }
  0xea   : > { %497 = vperm.xlu0 %4171, %v494_v24   ;;  %3414 = vmatprep.subr.bf16.mxu1 %v3413_v25  ;;  %v1655_v50 = vld [vmem:[#allocation8 + $0xaf8] sm:$0xff]  ;;  %v3425_v52 = vpack.c.bf16 %v1375_v45, %v1365_v43  ;;  %v1665_v61 = vld [vmem:[#allocation8 + $0xb48] sm:$0xff]  ;;  %v1384_v2 = vld [vmem:[#allocation8 + $0x280] sm:$0xff]  ;;  %v3483_v5 = vpack.c.bf16 %v1654_v60, %v1644_v59 }
  0xeb   : > { %3380 = vmatmul.mubr.msk.f32.vlgmr.msra.gmra.mrb[6].mxu0 %vm500_vm0, %v4807_v4  ;;  %3416 = vmatpush1.bf16.msra.mxu1 %v3415_v26  ;;  %v1395_v57 = vld [vmem:[#allocation8 + $0x2d8] sm:$0xff]  ;;  %v3481_v58 = vpack.c.bf16 %v1655_v50, %v1645_v49  ;;  %v1394_v3 = vld [vmem:[#allocation8 + $0x2d0] sm:$0xff]  ;;  %v1405_v6 = vld [vmem:[#allocation8 + $0x328] sm:$0xff] }
  0xec   : > { %789 = vmatpush1.msra.mxu0 %v477_v22  ;;  %852 = vmatprep.mubr.f32.mxu0 %v4477_v0  ;;  %v1675_v62 = vld [vmem:[#allocation8 + $0xb98] sm:$0xff]  ;;  %v3429_v1 = vpack.c.bf16 %v1395_v57, %v1385_v56  ;;  %v1664_v9 = vld [vmem:[#allocation8 + $0xb40] sm:$0xff]  ;;  %v1674_v10 = vld [vmem:[#allocation8 + $0xb90] sm:$0xff]  ;;  %v3431_v13 = vpack.c.bf16 %v1394_v3, %v1384_v2 }
  0xed   : > { %930 = vmatprep.subr.mxu0 %v482_v23  ;;  %3418 = vmatprep.subr.bf16.mxu1 %v3417_v35  ;;  %v1415_v7 = vld [vmem:[#allocation8 + $0x378] sm:$0xff]  ;;  %v3485_v8 = vpack.c.bf16 %v1675_v62, %v1665_v61  ;;  %v1685_v11 = vld [vmem:[#allocation8 + $0xbe8] sm:$0xff]  ;;  %v1404_v14 = vld [vmem:[#allocation8 + $0x320] sm:$0xff]  ;;  %v3487_v16 = vpack.c.bf16 %v1674_v10, %v1664_v9 }
  0xee   : > { %2888 = vperm.xlu0 %4171, %v2885_v33   ;;  %v1695_v12 = vld [vmem:[#allocation8 + $0xc38] sm:$0xff]  ;;  %v1414_v15 = vld [vmem:[#allocation8 + $0x370] sm:$0xff]  ;;  %v1425_v17 = vld [vmem:[#allocation8 + $0x3c8] sm:$0xff] }
  0xef   : > { %3381 = vmatmul.mubr.msk.f32.vlgmr.msra.gmra.mrb[8].mxu0 %vm500_vm0, %v4807_v4  ;;  %3420 = vmatpush1.bf16.msra.mxu1 %v3419_v40  ;;  %v1435_v18 = vld [vmem:[#allocation8 + $0x418] sm:$0xff]  ;;  %v3489_v19 = vpack.c.bf16 %v1695_v12, %v1685_v11  ;;  %v1684_v20 = vld [vmem:[#allocation8 + $0xbe0] sm:$0xff]  ;;  %v1694_v21 = vld [vmem:[#allocation8 + $0xc30] sm:$0xff]  ;;  %v3435_v22 = vpack.c.bf16 %v1414_v15, %v1404_v14 }
  0xf0   : > { %931 = vmatpush1.msra.mxu0 %v481_v29  ;;  %994 = vmatprep.mubr.f32.mxu0 %v4477_v0  ;;  %v3437_v23 = vpack.c.bf16 %v1435_v18, %v1425_v17  ;;  %v1424_v24 = vld [vmem:[#allocation8 + $0x3c0] sm:$0xff]  ;;  %v1434_v25 = vld [vmem:[#allocation8 + $0x410] sm:$0xff]  ;;  %v3491_v26 = vpack.c.bf16 %v1694_v21, %v1684_v20  ;;  %v1445_v28 = vld [vmem:[#allocation8 + $0x468] sm:$0xff] }
  0xf1   : > { %1072 = vmatprep.subr.mxu0 %v486_v32  ;;  %3422 = vmatprep.subr.bf16.mxu1 %v3421_v44  ;;  %v3439_v27 = vpack.c.bf16 %v1434_v25, %v1424_v24  ;;  %v1455_v29 = vld [vmem:[#allocation8 + $0x4b8] sm:$0xff]  ;;  %v1444_v31 = vld [vmem:[#allocation8 + $0x460] sm:$0xff]  ;;  %v1454_v32 = vld [vmem:[#allocation8 + $0x4b0] sm:$0xff] }
  0xf2   : > { %v3441_v30 = vpack.c.bf16 %v1455_v29, %v1445_v28  ;;  %v1705_v33 = vld [vmem:[#allocation8 + $0xc88] sm:$0xff]  ;;  %v3443_v34 = vpack.c.bf16 %v1454_v32, %v1444_v31  ;;  %v1715_v35 = vld [vmem:[#allocation8 + $0xcd8] sm:$0xff]  ;;  %v1704_v36 = vld [vmem:[#allocation8 + $0xc80] sm:$0xff] }
  0xf3   : > { %3383 = vmatmul.mubr.msk.f32.vlgmr.msra.gmra.mrb[10].mxu0 %vm500_vm0, %v4807_v4  ;;  %3424 = vmatpush1.bf16.msra.mxu1 %v3423_v51  ;;  %v1714_v37 = vld [vmem:[#allocation8 + $0xcd0] sm:$0xff]  ;;  %v3493_v38 = vpack.c.bf16 %v1715_v35, %v1705_v33  ;;  %v1465_v40 = vld [vmem:[#allocation8 + $0x508] sm:$0xff]  ;;  %v1475_v41 = vld [vmem:[#allocation8 + $0x558] sm:$0xff] }
  0xf4   : > { %1073 = vmatpush1.msra.mxu0 %v485_v39  ;;  %1136 = vmatprep.mubr.f32.mxu0 %v4477_v0  ;;  %v3495_v39 = vpack.c.bf16 %v1714_v37, %v1704_v36  ;;  %v3445_v42 = vpack.c.bf16 %v1475_v41, %v1465_v40  ;;  %v1464_v43 = vld [vmem:[#allocation8 + $0x500] sm:$0xff]  ;;  %v1474_v44 = vld [vmem:[#allocation8 + $0x550] sm:$0xff]  ;;  %v1725_v45 = vld [vmem:[#allocation8 + $0xd28] sm:$0xff] }
  0xf5   : > { %3478 = vmatprep.subr.bf16.mxu0 %v3477_v46  ;;  %3426 = vmatprep.subr.bf16.mxu1 %v3425_v52  ;;  %v3447_v46 = vpack.c.bf16 %v1474_v44, %v1464_v43  ;;  %v1735_v47 = vld [vmem:[#allocation8 + $0xd78] sm:$0xff]  ;;  %v1724_v48 = vld [vmem:[#allocation8 + $0xd20] sm:$0xff]  ;;  %v1734_v49 = vld [vmem:[#allocation8 + $0xd70] sm:$0xff] }
  0xf6   : > { %v3497_v50 = vpack.c.bf16 %v1735_v47, %v1725_v45  ;;  %v3499_v51 = vpack.c.bf16 %v1734_v49, %v1724_v48  ;;  %v1485_v52 = vld [vmem:[#allocation8 + $0x5a8] sm:$0xff]  ;;  %v1495_v53 = vld [vmem:[#allocation8 + $0x5f8] sm:$0xff]  ;;  %v1494_v56 = vld [vmem:[#allocation8 + $0x5f0] sm:$0xff] }
  0xf7   : > { %3385 = vmatmul.mubr.msk.f32.vlgmr.msra.gmra.mrb[12].mxu0 %vm500_vm0, %v4807_v4  ;;  %3428 = vmatpush1.bf16.msra.mxu1 %v3427_v63  ;;  %v3433_v4 = vpack.c.bf16 %v1415_v7, %v1405_v6  ;;  %v3449_v54 = vpack.c.bf16 %v1495_v53, %v1485_v52  ;;  %v1745_v57 = vld [vmem:[#allocation8 + $0xdc8] sm:$0xff]  ;;  %v1755_v59 = vld [vmem:[#allocation8 + $0xe18] sm:$0xff]  ;;  %v1744_v60 = vld [vmem:[#allocation8 + $0xdc0] sm:$0xff] }
  0xf8   : > { %3480 = vmatpush1.bf16.msra.mxu0 %v3479_v55  ;;  %3430 = vmatprep.subr.bf16.mxu1 %v3429_v1  ;;  %v1484_v55 = vld [vmem:[#allocation8 + $0x5a0] sm:$0xff]  ;;  %v1754_v61 = vld [vmem:[#allocation8 + $0xe10] sm:$0xff]  ;;  %v3501_v62 = vpack.c.bf16 %v1755_v59, %v1745_v57  ;;  %v1505_v1 = vld [vmem:[#allocation8 + $0x648] sm:$0xff] }
  0xf9   : > { %3482 = vmatprep.subr.bf16.mxu0 %v3481_v58  ;;  %v3451_v58 = vpack.c.bf16 %v1494_v56, %v1484_v55  ;;  %v3503_v63 = vpack.c.bf16 %v1754_v61, %v1744_v60  ;;  %v1515_v2 = vld [vmem:[#allocation8 + $0x698] sm:$0xff]  ;;  %v1514_v6 = vld [vmem:[#allocation8 + $0x690] sm:$0xff]  ;;  %v1765_v7 = vld [vmem:[#allocation8 + $0xe68] sm:$0xff] }
  0xfa   : > { %v3453_v3 = vpack.c.bf16 %v1515_v2, %v1505_v1  ;;  %v1775_v9 = vld [vmem:[#allocation8 + $0xeb8] sm:$0xff]  ;;  %v1764_v10 = vld [vmem:[#allocation8 + $0xe60] sm:$0xff]  ;;  %v1774_v11 = vld [vmem:[#allocation8 + $0xeb0] sm:$0xff] }
  0xfb   : > { %3432 = vmatpush1.bf16.msra.mxu1 %v3431_v13  ;;  %v3505_v12 = vpack.c.bf16 %v1775_v9, %v1765_v7  ;;  %v3507_v13 = vpack.c.bf16 %v1774_v11, %v1764_v10  ;;  %v1535_v14 = vld [vmem:[#allocation8 + $0x738] sm:$0xff]  ;;  %v1534_v17 = vld [vmem:[#allocation8 + $0x730] sm:$0xff]  ;;  %v1785_v18 = vld [vmem:[#allocation8 + $0xf08] sm:$0xff] }
  0xfc   : > { %3484 = vmatpush1.bf16.msra.mxu0 %v3483_v5  ;;  %3434 = vmatprep.subr.bf16.mxu1 %v3433_v4  ;;  %v1504_v5 = vld [vmem:[#allocation8 + $0x640] sm:$0xff]  ;;  %v1525_v4 = vld [vmem:[#allocation8 + $0x6e8] sm:$0xff]  ;;  %v1795_v20 = vld [vmem:[#allocation8 + $0xf58] sm:$0xff] }
  0xfd   : > { %3486 = vmatprep.subr.bf16.mxu0 %v3485_v8  ;;  %v3455_v8 = vpack.c.bf16 %v1514_v6, %v1504_v5  ;;  %v3457_v15 = vpack.c.bf16 %v1535_v14, %v1525_v4  ;;  %v1784_v21 = vld [vmem:[#allocation8 + $0xf00] sm:$0xff]  ;;  %v1545_v25 = vld [vmem:[#allocation8 + $0x788] sm:$0xff]  ;;  %v1554_v29 = vld [vmem:[#allocation8 + $0x7d0] sm:$0xff] }
  0xfe   : > { %v1544_v28 = vld [vmem:[#allocation8 + $0x780] sm:$0xff]  ;;  %v1815_v32 = vld [vmem:[#allocation8 + $0xff8] sm:$0xff]  ;;  %v1565_v37 = vld [vmem:[#allocation8 + $0x828] sm:$0xff] }
  0xff   : > { %3436 = vmatpush1.bf16.msra.mxu1 %v3435_v22  ;;  %v1794_v22 = vld [vmem:[#allocation8 + $0xf50] sm:$0xff]  ;;  %v3463_v31 = vpack.c.bf16 %v1554_v29, %v1544_v28  ;;  %v1804_v33 = vld [vmem:[#allocation8 + $0xfa0] sm:$0xff]  ;;  %v1835_v44 = vld [vmem:[#allocation8 + $0x1098] sm:$0xff] }
 0x100   : > { %3488 = vmatpush1.bf16.msra.mxu0 %v3487_v16  ;;  %3438 = vmatprep.subr.bf16.mxu1 %v3437_v23  ;;  %v1524_v16 = vld [vmem:[#allocation8 + $0x6e0] sm:$0xff]  ;;  %v3509_v23 = vpack.c.bf16 %v1795_v20, %v1785_v18  ;;  %v3511_v24 = vpack.c.bf16 %v1794_v22, %v1784_v21  ;;  %v1574_v41 = vld [vmem:[#allocation8 + $0x870] sm:$0xff]  ;;  %v1585_v49 = vld [vmem:[#allocation8 + $0x8c8] sm:$0xff] }
 0x101   : > { %3490 = vmatprep.subr.bf16.mxu0 %v3489_v19  ;;  %v3459_v19 = vpack.c.bf16 %v1534_v17, %v1524_v16  ;;  %v1564_v40 = vld [vmem:[#allocation8 + $0x820] sm:$0xff]  ;;  %v1594_v53 = vld [vmem:[#allocation8 + $0x910] sm:$0xff]  ;;  %v1855_v56 = vld [vmem:[#allocation8 + $0x1138] sm:$0xff] }
 0x102   : > { %v3467_v43 = vpack.c.bf16 %v1574_v41, %v1564_v40  ;;  %v1824_v45 = vld [vmem:[#allocation8 + $0x1040] sm:$0xff]  ;;  %v1605_v61 = vld [vmem:[#allocation8 + $0x968] sm:$0xff]  ;;  %v1614_v2 = vld [vmem:[#allocation8 + $0x9b0] sm:$0xff] }
 0x103   : > { %3440 = vmatpush1.bf16.msra.mxu1 %v3439_v27  ;;  %v1584_v52 = vld [vmem:[#allocation8 + $0x8c0] sm:$0xff]  ;;  %v1875_v6 = vld [vmem:[#allocation8 + $0x11d8] sm:$0xff]  ;;  %v1885_v4 = vld [vmem:[#allocation8 + $0x1228] sm:$0xff] }
 0x104   : > { %3492 = vmatpush1.bf16.msra.mxu0 %v3491_v26  ;;  %3442 = vmatprep.subr.bf16.mxu1 %v3441_v30  ;;  %v1555_v26 = vld [vmem:[#allocation8 + $0x7d8] sm:$0xff]  ;;  %v1805_v30 = vld [vmem:[#allocation8 + $0xfa8] sm:$0xff]  ;;  %v3471_v55 = vpack.c.bf16 %v1594_v53, %v1584_v52  ;;  %v1844_v57 = vld [vmem:[#allocation8 + $0x10e0] sm:$0xff] }
 0x105   : > { %3494 = vmatprep.subr.bf16.mxu0 %v3493_v38  ;;  %v3461_v27 = vpack.c.bf16 %v1555_v26, %v1545_v25  ;;  %v3513_v35 = vpack.c.bf16 %v1815_v32, %v1805_v30  ;;  %v1575_v38 = vld [vmem:[#allocation8 + $0x878] sm:$0xff]  ;;  %v1604_v1 = vld [vmem:[#allocation8 + $0x960] sm:$0xff]  ;;  %v1894_v17 = vld [vmem:[#allocation8 + $0x1270] sm:$0xff] }
 0x106   : > { %v3475_v5 = vpack.c.bf16 %v1614_v2, %v1604_v1  ;;  %v1864_v7 = vld [vmem:[#allocation8 + $0x1180] sm:$0xff]  ;;  %v1307_v11 = vld [vmem:[#allocation8 + $0x18] sm:$0xff]  ;;  %v1925_v25 = vld [vmem:[#allocation8 + $0x1368] sm:$0xff] }
 0x107   : > { %3444 = vmatpush1.bf16.msra.mxu1 %v3443_v34  ;;  %v1814_v34 = vld [vmem:[#allocation8 + $0xff0] sm:$0xff]  ;;  %v1895_v14 = vld [vmem:[#allocation8 + $0x1278] sm:$0xff]  ;;  %v1884_v16 = vld [vmem:[#allocation8 + $0x1220] sm:$0xff] }
 0x108   : > { %3496 = vmatpush1.bf16.msra.mxu0 %v3495_v39  ;;  %3446 = vmatprep.subr.bf16.mxu1 %v3445_v42  ;;  %v3515_v36 = vpack.c.bf16 %v1814_v34, %v1804_v33  ;;  %v3465_v39 = vpack.c.bf16 %v1575_v38, %v1565_v37  ;;  %v1825_v42 = vld [vmem:[#allocation8 + $0x1048] sm:$0xff]  ;;  %v3531_v18 = vpack.c.bf16 %v1894_v17, %v1884_v16  ;;  %v1915_v20 = vld [vmem:[#allocation8 + $0x1318] sm:$0xff]  ;;  %v1904_v22 = vld [vmem:[#allocation8 + $0x12c0] sm:$0xff] }
 0x109   : > { %3498 = vmatprep.subr.bf16.mxu0 %v3497_v50  ;;  %v3517_v47 = vpack.c.bf16 %v1835_v44, %v1825_v42  ;;  %v1595_v50 = vld [vmem:[#allocation8 + $0x918] sm:$0xff]  ;;  %v1924_v28 = vld [vmem:[#allocation8 + $0x1360] sm:$0xff]  ;;  %v1934_v29 = vld [vmem:[#allocation8 + $0x13b0] sm:$0xff] }
 0x10a   : > { %v1935_v26 = vld [vmem:[#allocation8 + $0x13b8] sm:$0xff]  ;;  %v3539_v30 = vpack.c.bf16 %v1934_v29, %v1924_v28 }
 0x10b   : > { %3448 = vmatpush1.bf16.msra.mxu1 %v3447_v46  ;;  %v1834_v46 = vld [vmem:[#allocation8 + $0x1090] sm:$0xff]  ;;  %v1319_v32 = vld [vmem:[#allocation8 + $0x78] sm:$0xff] }
 0x10c   : > { %3500 = vmatpush1.bf16.msra.mxu0 %v3499_v51  ;;  %3450 = vmatprep.subr.bf16.mxu1 %v3449_v54  ;;  %v3519_v48 = vpack.c.bf16 %v1834_v46, %v1824_v45  ;;  %v3469_v51 = vpack.c.bf16 %v1595_v50, %v1585_v49  ;;  %v1845_v54 = vld [vmem:[#allocation8 + $0x10e8] sm:$0xff] }
 0x10d   : > { %3502 = vmatprep.subr.bf16.mxu0 %v3501_v62  ;;  %v3521_v59 = vpack.c.bf16 %v1855_v56, %v1845_v54  ;;  %v1615_v62 = vld [vmem:[#allocation8 + $0x9b8] sm:$0xff] }
 0x10f   : > { %3452 = vmatpush1.bf16.msra.mxu1 %v3451_v58  ;;  %v1854_v58 = vld [vmem:[#allocation8 + $0x1130] sm:$0xff] }
 0x110   : > { %3504 = vmatpush1.bf16.msra.mxu0 %v3503_v63  ;;  %3454 = vmatprep.subr.bf16.mxu1 %v3453_v3  ;;  %v3523_v60 = vpack.c.bf16 %v1854_v58, %v1844_v57  ;;  %v3473_v63 = vpack.c.bf16 %v1615_v62, %v1605_v61  ;;  %v1865_v3 = vld [vmem:[#allocation8 + $0x1188] sm:$0xff] }
 0x111   : > { %3506 = vmatprep.subr.bf16.mxu0 %v3505_v12  ;;  %v3525_v9 = vpack.c.bf16 %v1875_v6, %v1865_v3  ;;  %v1317_v12 = vld [vmem:[#allocation8 + $0x68] sm:$0xff] }
 0x113   : > { %3456 = vmatpush1.bf16.msra.mxu1 %v3455_v8  ;;  %v1874_v8 = vld [vmem:[#allocation8 + $0x11d0] sm:$0xff] }
 0x114   : > { %3508 = vmatpush1.bf16.msra.mxu0 %v3507_v13  ;;  %3458 = vmatprep.subr.bf16.mxu1 %v3457_v15  ;;  %v3527_v10 = vpack.c.bf16 %v1874_v8, %v1864_v7  ;;  %v3541_v13 = vpack.c.bf16 %v1317_v12, %v1307_v11  ;;  %v3529_v15 = vpack.c.bf16 %v1895_v14, %v1885_v4 }
 0x115   : > { %3510 = vmatprep.subr.bf16.mxu0 %v3509_v23  ;;  %v1914_v23 = vld [vmem:[#allocation8 + $0x1310] sm:$0xff] }
 0x117   : > { %3460 = vmatpush1.bf16.msra.mxu1 %v3459_v19  ;;  %v1905_v19 = vld [vmem:[#allocation8 + $0x12c8] sm:$0xff] }
 0x118   : > { %3512 = vmatpush1.bf16.msra.mxu0 %v3511_v24  ;;  %3462 = vmatprep.subr.bf16.mxu1 %v3461_v27  ;;  %v3533_v21 = vpack.c.bf16 %v1915_v20, %v1905_v19  ;;  %v3535_v24 = vpack.c.bf16 %v1914_v23, %v1904_v22  ;;  %v3537_v27 = vpack.c.bf16 %v1935_v26, %v1925_v25 }
 0x119   : > { %3514 = vmatprep.subr.bf16.mxu0 %v3513_v35 }
 0x11b   : > { %3464 = vmatpush1.bf16.msra.mxu1 %v3463_v31  ;;  %v1309_v31 = vld [vmem:[#allocation8 + $0x28] sm:$0xff] }
 0x11c   : > { %3516 = vmatpush1.bf16.msra.mxu0 %v3515_v36  ;;  %3466 = vmatprep.subr.bf16.mxu1 %v3465_v39  ;;  %v3669_v33 = vpack.c.bf16 %v1319_v32, %v1309_v31 }
 0x11d   : > { %3518 = vmatprep.subr.bf16.mxu0 %v3517_v47 }
 0x11f   : > { %3468 = vmatpush1.bf16.msra.mxu1 %v3467_v43 }
 0x120   : > { %3520 = vmatpush1.bf16.msra.mxu0 %v3519_v48  ;;  %3470 = vmatprep.subr.bf16.mxu1 %v3469_v51 }
 0x121   : > { %3522 = vmatprep.subr.bf16.mxu0 %v3521_v59 }
 0x123   : > { %3472 = vmatpush1.bf16.msra.mxu1 %v3471_v55 }
 0x124   : > { %3524 = vmatpush1.bf16.msra.mxu0 %v3523_v60  ;;  %3474 = vmatprep.subr.bf16.mxu1 %v3473_v63 }
 0x125   : > { %3526 = vmatprep.subr.bf16.mxu0 %v3525_v9 }
 0x127   : > { %3476 = vmatpush1.bf16.msra.mxu1 %v3475_v5 }
 0x128   : > { %3528 = vmatpush1.bf16.msra.mxu0 %v3527_v10  ;;  %3542 = vmatprep.subr.bf16.mxu1 %v3541_v13 }
 0x129   : > { %3530 = vmatprep.subr.bf16.mxu0 %v3529_v15 }
 0x12c   : > { %3532 = vmatpush1.bf16.msra.mxu0 %v3531_v18 }
 0x12d   : > { %3534 = vmatprep.subr.bf16.mxu0 %v3533_v21 }
 0x130   : > { %3536 = vmatpush1.bf16.msra.mxu0 %v3535_v24 }
 0x131   : > { %3538 = vmatprep.subr.bf16.mxu0 %v3537_v27 }
 0x134   : > { %3540 = vmatpush1.bf16.msra.mxu0 %v3539_v30 }
 0x135   : > { %3670 = vmatprep.subr.bf16.mxu0 %v3669_v33 }
 0x169   : > { %v498_v44 = vpop.permute.xlu0 %497 }
 0x1b2   : > { %v570_v34 = vpop.f32.mrb[0].mxu0 }
 0x1b3   : > { %v572_v35 = vpop.f32.mrb[1].mxu0  ;;  %v4865_v49 = vadd.f32 %v570_v34, %v498_v44 }
 0x1b4   : > { %v925_v37 = vpop.f32.mrb[0].mxu1  ;;  %v4871_v54 = vadd.f32 %v572_v35, %v498_v44 }
 0x1b5   : > { %v927_v39 = vpop.f32.mrb[1].mxu1  ;;  %v4897_v13 = vadd.f32 %v925_v37, %v498_v44 }
 0x1b6   : > { %v641_v36 = vpop.f32.mrb[2].mxu0  ;;  %v4907_v19 = vadd.f32 %v927_v39, %v498_v44 }
 0x1b7   : > { %v643_v38 = vpop.f32.mrb[3].mxu0  ;;  %v4861_v45 = vadd.f32 %v641_v36, %v498_v44 }
 0x1b8   : > { %v1067_v41 = vpop.f32.mrb[2].mxu1  ;;  %v4863_v46 = vadd.f32 %v643_v38, %v498_v44 }
 0x1b9   : > { %v1069_v43 = vpop.f32.mrb[3].mxu1  ;;  %v1222_v57 = vmax.f32 %v4865_v49, %v4861_v45  ;;  %v1214_v14 = vadd.f32 %v4861_v45, %v4865_v49  ;;  %v4903_v17 = vadd.f32 %v1067_v41, %v498_v44 }
 0x1ba   : > { %v712_v40 = vpop.f32.mrb[4].mxu0  ;;  %v1223_v59 = vmax.f32 %v4871_v54, %v4863_v46  ;;  %v1215_v18 = vadd.f32 %v4863_v46, %v4871_v54  ;;  %v4911_v21 = vadd.f32 %v1069_v43, %v498_v44 }
 0x1bb   : > { %v714_v42 = vpop.f32.mrb[5].mxu0  ;;  %v4867_v50 = vadd.f32 %v712_v40, %v498_v44 }
 0x1bc   : > { %v1209_v48 = vpop.f32.mrb[4].mxu1  ;;  %v4873_v55 = vadd.f32 %v714_v42, %v498_v44 }
 0x1bd   : > { %v1211_v53 = vpop.f32.mrb[5].mxu1  ;;  %v4933_v38 = vadd.f32 %v1209_v48, %v498_v44 }
 0x1be   : > { %v783_v47 = vpop.f32.mrb[6].mxu0  ;;  %v4936_v42 = vadd.f32 %v1211_v53, %v498_v44  ;;  %v1327_v53 = vld [vmem:[#allocation8 + $0xb8] sm:$0xff] }
 0x1bf   : > { %v4869_v51 = vadd.f32 %v783_v47, %v498_v44  ;;  %v785_v52 = vpop.f32.mrb[7].mxu0 }
 0x1c0   : > { %v4875_v56 = vadd.f32 %v785_v52, %v498_v44 }
 0x1c1   : > { %v1224_v58 = vmax.f32 %v4867_v50, %v4869_v51  ;;  %v1216_v8 = vadd.f32 %v4869_v51, %v4867_v50 }
 0x1c2   : > { %v1225_v60 = vmax.f32 %v4873_v55, %v4875_v56  ;;  %v854_v61 = vpop.f32.mrb[8].mxu0  ;;  %v1217_v11 = vadd.f32 %v4875_v56, %v4873_v55 }
 0x1c3   : > { %v4885_v62 = vadd.f32 %v854_v61, %v498_v44  ;;  %v1226_v63 = vmax.f32 %v1222_v57, %v1224_v58  ;;  %v856_v1 = vpop.f32.mrb[9].mxu0  ;;  %v1218_v23 = vadd.f32 %v1216_v8, %v1214_v14 }
 0x1c4   : > { %v4887_v2 = vadd.f32 %v856_v1, %v498_v44  ;;  %v1227_v3 = vmax.f32 %v1223_v59, %v1225_v60  ;;  %v1219_v26 = vadd.f32 %v1217_v11, %v1215_v18  ;;  %v1316_v1 = vld [vmem:[#allocation8 + $0x60] sm:$0xff] }
 0x1c5   : > { %v1228_v5 = vmax.f32 %v1226_v63, %v4885_v62  ;;  %v1220_v52 = vadd.f32 %v1218_v23, %v4885_v62  ;;  %v1306_v63 = vld [vmem:[#allocation8 + $0x10] sm:$0xff] }
 0x1c6   : > { %v1229_v6 = vmax.f32 %v1227_v3, %v4887_v2  ;;  %v996_v7 = vpop.f32.mrb[10].mxu0  ;;  %v1221_v41 = vadd.f32 %v1219_v26, %v4887_v2  ;;  %v3543_v14 = vpack.c.bf16 %v1316_v1, %v1306_v63  ;;  %v1326_v23 = vld [vmem:[#allocation8 + $0xb0] sm:$0xff] }
 0x1c7   : > { %v1231_v9 = vsel %vm1230_vm1, %v1228_v5, -inf  ;;  %v998_v10 = vpop.f32.mrb[11].mxu0  ;;  %v4899_v4 = vadd.f32 %v996_v7, %v498_v44  ;;  %v1337_v5 = vld [vmem:[#allocation8 + $0x108] sm:$0xff] }
 0x1c8   : > { %v1238_v12 = vsel %vm1230_vm1, %v1229_v6, -inf  ;;  %v1232_v15 = vrot.slane %v1231_v9, 4  ;;  %v4909_v20 = vadd.f32 %v998_v10, %v498_v44  ;;  %v1280_v6 = vrot.slane %v1221_v41, 4 }
 0x1c9   : > { %v1239_v16 = vrot.slane %v1238_v12, 4  ;;  %v1245_v27 = vadd.f32 %v4899_v4, %v4897_v13  ;;  %v1253_v28 = vmax.f32 %v4897_v13, %v4899_v4  ;;  %v1279_v10 = vrot.slane %v1220_v52, 4 }
 0x1ca   : > { %v1138_v22 = vpop.f32.mrb[12].mxu0  ;;  %v1233_v30 = vmax.f32 %v1231_v9, %v1232_v15  ;;  %v1246_v34 = vadd.f32 %v4909_v20, %v4907_v19  ;;  %v1254_v35 = vmax.f32 %v4907_v19, %v4909_v20 }
 0x1cb   : > { %v4913_v24 = vadd.f32 %v1138_v22, %v498_v44  ;;  %v1140_v25 = vpop.f32.mrb[13].mxu0  ;;  %v1240_v31 = vmax.f32 %v1238_v12, %v1239_v16  ;;  %v3545_v22 = vpack.c.bf16 %v1337_v5, %v1327_v53  ;;  %v1318_v53 = vld [vmem:[#allocation8 + $0x70] sm:$0xff]  ;;  %v1387_v5 = vld [vmem:[#allocation8 + $0x298] sm:$0xff] }
 0x1cc   : > { %v4919_v29 = vadd.f32 %v1140_v25, %v498_v44  ;;  %v1234_v60 = vrot.slane %v1233_v30, 2  ;;  %v1336_v25 = vld [vmem:[#allocation8 + $0x100] sm:$0xff] }
 0x1cd   : > { %v1247_v32 = vadd.f32 %v4913_v24, %v4903_v17  ;;  %v1255_v33 = vmax.f32 %v4903_v17, %v4913_v24  ;;  %v1241_v57 = vrot.slane %v1240_v31, 2 }
 0x1ce   : > { %v1248_v36 = vadd.f32 %v4919_v29, %v4911_v21  ;;  %v1256_v37 = vmax.f32 %v4911_v21, %v4919_v29  ;;  %v1235_v15 = vmax.f32 %v1233_v30, %v1234_v60 }
 0x1cf   : > { %v1249_v39 = vadd.f32 %v1247_v32, %v1245_v27  ;;  %v1257_v40 = vmax.f32 %v1253_v28, %v1255_v33  ;;  %v1242_v11 = vmax.f32 %v1240_v31, %v1241_v57  ;;  %v1347_v28 = vld [vmem:[#allocation8 + $0x158] sm:$0xff]  ;;  %v1357_v32 = vld [vmem:[#allocation8 + $0x1a8] sm:$0xff] }
 0x1d0   : > { %v1250_v43 = vadd.f32 %v1248_v36, %v1246_v34  ;;  %v1258_v47 = vmax.f32 %v1254_v35, %v1256_v37  ;;  %v3547_v34 = vpack.c.bf16 %v1336_v25, %v1326_v23  ;;  %v1236_v35 = vrot.slane %v1235_v15, 1  ;;  %v1396_v23 = vld [vmem:[#allocation8 + $0x2e0] sm:$0xff] }
 0x1d1   : > { %v1251_v58 = vadd.f32 %v1249_v39, %v4933_v38  ;;  %v1259_v59 = vmax.f32 %v1257_v40, %v4933_v38  ;;  %v1243_v31 = vrot.slane %v1242_v11, 1  ;;  %v3549_v37 = vpack.c.bf16 %v1357_v32, %v1347_v28  ;;  %v1346_v39 = vld [vmem:[#allocation8 + $0x150] sm:$0xff]  ;;  %v1356_v40 = vld [vmem:[#allocation8 + $0x1a0] sm:$0xff] }
 0x1d2   : > { %v1252_v61 = vadd.f32 %v1250_v43, %v4936_v42  ;;  %v1260_v48 = vmax.f32 %v1258_v47, %v4936_v42  ;;  %v1367_v43 = vld [vmem:[#allocation8 + $0x1f8] sm:$0xff]  ;;  %v1377_v47 = vld [vmem:[#allocation8 + $0x248] sm:$0xff]  ;;  %v1237_v63 = vmax.f32 %v1235_v15, %v1236_v35  ;;  %v1328_v25 = vld [vmem:[#allocation8 + $0xc0] sm:$0xff] }
 0x1d3   : > { %v1261_v3 = vsel %vm1230_vm1, %v1259_v59, -inf  ;;  %v1291_v44 = vrot.slane %v1251_v58, 3  ;;  %v3551_v58 = vpack.c.bf16 %v1356_v40, %v1346_v39  ;;  %v1244_v59 = vmax.f32 %v1242_v11, %v1243_v31  ;;  %v1338_v32 = vld [vmem:[#allocation8 + $0x110] sm:$0xff]  ;;  %v1417_v31 = vld [vmem:[#allocation8 + $0x388] sm:$0xff]  ;;  %v1359_v35 = vld [vmem:[#allocation8 + $0x1b8] sm:$0xff] }
 0x1d4   : > { %v1262_v7 = vrot.slane %v1261_v3, 4  ;;  %v1268_v8 = vsel %vm1230_vm1, %v1260_v48, -inf  ;;  %v1292_v9 = vrot.slane %v1252_v61, 3  ;;  %v3553_v60 = vpack.c.bf16 %v1377_v47, %v1367_v43  ;;  %v1366_v61 = vld [vmem:[#allocation8 + $0x1f0] sm:$0xff]  ;;  %v1376_v48 = vld [vmem:[#allocation8 + $0x240] sm:$0xff] }
 0x1d5   : > { %v1269_v12 = vrot.slane %v1268_v8, 4  ;;  %v4950_v27 = vsel %vm1299_vm2, %v1279_v10, %v1291_v44  ;;  %v1308_v44 = vld [vmem:[#allocation8 + $0x20] sm:$0xff]  ;;  %v1282_v10 = vrot.slane %v1244_v59, 4  ;;  %v1281_v11 = vrot.slane %v1237_v63, 4  ;;  %v1406_v40 = vld [vmem:[#allocation8 + $0x330] sm:$0xff]  ;;  %v1369_v59 = vld [vmem:[#allocation8 + $0x208] sm:$0xff] }
 0x1d6   : > { %v1263_v16 = vmax.f32 %v1261_v3, %v1262_v7  ;;  %v4946_v18 = vsel %vm1299_vm2, %v1280_v6, %v1292_v9  ;;  %v1397_v7 = vld [vmem:[#allocation8 + $0x2e8] sm:$0xff]  ;;  %v1339_v9 = vld [vmem:[#allocation8 + $0x118] sm:$0xff]  ;;  %v1348_v43 = vld [vmem:[#allocation8 + $0x160] sm:$0xff] }
 0x1d7   : > { %v1270_v26 = vmax.f32 %v1268_v8, %v1269_v12  ;;  %2062 = vmatprep.mubr.f32.mxu1 %v4946_v18  ;;  %v1329_v8 = vld [vmem:[#allocation8 + $0xc8] sm:$0xff] }
 0x1d8   : > { %v1264_v33 = vrot.slane %v1263_v16, 2  ;;  %2063 = vmatmul.mubr.f32.vlgmr.msra.gmra.mrb[6].mxu1 %v4950_v27  ;;  %v3673_v28 = vpack.c.bf16 %v1339_v9, %v1329_v8  ;;  %v1389_v8 = vld [vmem:[#allocation8 + $0x2a8] sm:$0xff]  ;;  %v1399_v9 = vld [vmem:[#allocation8 + $0x2f8] sm:$0xff] }
 0x1d9   : > { %v1271_v30 = vrot.slane %v1270_v26, 2  ;;  %3544 = vmatpush1.bf16.msra.mxu1 %v3543_v14  ;;  %2204 = vmatprep.mubr.f32.mxu1 %v4946_v18  ;;  %v3555_v14 = vpack.c.bf16 %v1376_v48, %v1366_v61 }
 0x1da   : > { %v1265_v36 = vmax.f32 %v1263_v16, %v1264_v33  ;;  %3546 = vmatprep.subr.bf16.mxu1 %v3545_v22  ;;  %v3671_v16 = vpack.c.bf16 %v1318_v53, %v1308_v44  ;;  %v1386_v22 = vld [vmem:[#allocation8 + $0x290] sm:$0xff]  ;;  %v1407_v33 = vld [vmem:[#allocation8 + $0x338] sm:$0xff]  ;;  %v1368_v44 = vld [vmem:[#allocation8 + $0x200] sm:$0xff] }
 0x1db   : > { %v1272_v41 = vmax.f32 %v1270_v26, %v1271_v30  ;;  %v3557_v26 = vpack.c.bf16 %v1397_v7, %v1387_v5  ;;  %v3561_v39 = vpack.c.bf16 %v1417_v31, %v1407_v33  ;;  %v1378_v5 = vld [vmem:[#allocation8 + $0x250] sm:$0xff]  ;;  %v1457_v7 = vld [vmem:[#allocation8 + $0x4c8] sm:$0xff]  ;;  %v1419_v33 = vld [vmem:[#allocation8 + $0x398] sm:$0xff] }
 0x1dc   : > { %v1266_v52 = vrot.slane %v1265_v36, 1 }
 0x1dd   : > { %v1273_v57 = vrot.slane %v1272_v41, 1  ;;  %3548 = vmatpush1.bf16.msra.mxu1 %v3547_v34  ;;  %v1349_v34 = vld [vmem:[#allocation8 + $0x168] sm:$0xff] }
 0x1de   : > { %3550 = vmatprep.subr.bf16.mxu1 %v3549_v37  ;;  %v1267_v1 = vmax.f32 %v1265_v36, %v1266_v52  ;;  %v3559_v36 = vpack.c.bf16 %v1396_v23, %v1386_v22  ;;  %v3675_v37 = vpack.c.bf16 %v1338_v32, %v1328_v25  ;;  %v3677_v47 = vpack.c.bf16 %v1359_v35, %v1349_v34  ;;  %v1358_v52 = vld [vmem:[#allocation8 + $0x1b0] sm:$0xff]  ;;  %v1388_v22 = vld [vmem:[#allocation8 + $0x2a0] sm:$0xff]  ;;  %v1409_v32 = vld [vmem:[#allocation8 + $0x348] sm:$0xff] }
 0x1df   : > { %v1274_v3 = vmax.f32 %v1272_v41, %v1273_v57  ;;  %v1416_v41 = vld [vmem:[#allocation8 + $0x380] sm:$0xff]  ;;  %v1427_v57 = vld [vmem:[#allocation8 + $0x3d8] sm:$0xff]  ;;  %v3679_v48 = vpack.c.bf16 %v1358_v52, %v1348_v43  ;;  %v3685_v23 = vpack.c.bf16 %v1399_v9, %v1389_v8  ;;  %v1398_v25 = vld [vmem:[#allocation8 + $0x2f0] sm:$0xff] }
 0x1e0   : > { %v1293_v6 = vrot.slane %v1267_v1, 3  ;;  %v3563_v61 = vpack.c.bf16 %v1416_v41, %v1406_v40  ;;  %v1426_v1 = vld [vmem:[#allocation8 + $0x3d0] sm:$0xff]  ;;  %v3687_v34 = vpack.c.bf16 %v1398_v25, %v1388_v22  ;;  %v3689_v40 = vpack.c.bf16 %v1419_v33, %v1409_v32  ;;  %v1487_v43 = vld [vmem:[#allocation8 + $0x5b8] sm:$0xff]  ;;  %v1429_v52 = vld [vmem:[#allocation8 + $0x3e8] sm:$0xff] }
 0x1e1   : > { %3552 = vmatpush1.bf16.msra.mxu1 %v3551_v58  ;;  %v1294_v12 = vrot.slane %v1274_v3, 3  ;;  %v1437_v58 = vld [vmem:[#allocation8 + $0x428] sm:$0xff]  ;;  %v1436_v3 = vld [vmem:[#allocation8 + $0x420] sm:$0xff]  ;;  %v1418_v41 = vld [vmem:[#allocation8 + $0x390] sm:$0xff] }
 0x1e2   : > { %3554 = vmatprep.subr.bf16.mxu1 %v3553_v60  ;;  %v4959_v30 = vsel %vm1299_vm2, %v1281_v11, %v1293_v6  ;;  %v1379_v60 = vld [vmem:[#allocation8 + $0x258] sm:$0xff]  ;;  %v3565_v63 = vpack.c.bf16 %v1437_v58, %v1427_v57  ;;  %v1446_v11 = vld [vmem:[#allocation8 + $0x470] sm:$0xff]  ;;  %v1469_v25 = vld [vmem:[#allocation8 + $0x528] sm:$0xff] }
 0x1e3   : > { %v4955_v15 = vsel %vm1299_vm2, %v1282_v10, %v1294_v12  ;;  %v3681_v53 = vpack.c.bf16 %v1379_v60, %v1369_v59  ;;  %v1447_v6 = vld [vmem:[#allocation8 + $0x478] sm:$0xff]  ;;  %v3567_v10 = vpack.c.bf16 %v1436_v3, %v1426_v1  ;;  %v3683_v12 = vpack.c.bf16 %v1378_v5, %v1368_v44  ;;  %v1438_v3 = vld [vmem:[#allocation8 + $0x430] sm:$0xff]  ;;  %v1449_v5 = vld [vmem:[#allocation8 + $0x488] sm:$0xff] }
 0x1e4   : > { %2133 = vmatprep.mubr.f32.mxu0 %v4955_v15  ;;  %v1439_v57 = vld [vmem:[#allocation8 + $0x438] sm:$0xff] }
 0x1e5   : > { %3556 = vmatpush1.bf16.msra.mxu1 %v3555_v14  ;;  %2134 = vmatmul.mubr.f32.vlgmr.msra.gmra.mrb[14].mxu0 %v4959_v30  ;;  %v3569_v14 = vpack.c.bf16 %v1457_v7, %v1447_v6  ;;  %v3693_v1 = vpack.c.bf16 %v1439_v57, %v1429_v52  ;;  %v1507_v44 = vld [vmem:[#allocation8 + $0x658] sm:$0xff] }
 0x1e6   : > { %3672 = vmatpush1.bf16.msra.mxu0 %v3671_v16  ;;  %2346 = vmatprep.mubr.f32.mxu0 %v4946_v18  ;;  %v1456_v16 = vld [vmem:[#allocation8 + $0x4c0] sm:$0xff]  ;;  %v1459_v6 = vld [vmem:[#allocation8 + $0x4d8] sm:$0xff] }
 0x1e7   : > { %3558 = vmatprep.subr.bf16.mxu1 %v3557_v26  ;;  %3674 = vmatprep.subr.bf16.mxu0 %v3673_v28  ;;  %v1467_v26 = vld [vmem:[#allocation8 + $0x518] sm:$0xff]  ;;  %v1477_v28 = vld [vmem:[#allocation8 + $0x568] sm:$0xff]  ;;  %v3571_v31 = vpack.c.bf16 %v1456_v16, %v1446_v11  ;;  %v3697_v11 = vpack.c.bf16 %v1459_v6, %v1449_v5  ;;  %v1458_v16 = vld [vmem:[#allocation8 + $0x4d0] sm:$0xff] }
 0x1e8   : > { %v3573_v35 = vpack.c.bf16 %v1477_v28, %v1467_v26  ;;  %v1527_v22 = vld [vmem:[#allocation8 + $0x6f8] sm:$0xff] }
 0x1e9   : > { %3560 = vmatpush1.bf16.msra.mxu1 %v3559_v36  ;;  %v1466_v36 = vld [vmem:[#allocation8 + $0x510] sm:$0xff]  ;;  %v1479_v26 = vld [vmem:[#allocation8 + $0x578] sm:$0xff] }
 0x1ea   : > { %3676 = vmatpush1.bf16.msra.mxu0 %v3675_v37  ;;  %3562 = vmatprep.subr.bf16.mxu1 %v3561_v39  ;;  %v1476_v37 = vld [vmem:[#allocation8 + $0x560] sm:$0xff] }
 0x1eb   : > { %3678 = vmatprep.subr.bf16.mxu0 %v3677_v47  ;;  %v1408_v39 = vld [vmem:[#allocation8 + $0x340] sm:$0xff]  ;;  %v1497_v47 = vld [vmem:[#allocation8 + $0x608] sm:$0xff]  ;;  %v3575_v58 = vpack.c.bf16 %v1476_v37, %v1466_v36  ;;  %v3701_v36 = vpack.c.bf16 %v1479_v26, %v1469_v25  ;;  %v1478_v37 = vld [vmem:[#allocation8 + $0x570] sm:$0xff] }
 0x1ec   : > { %v3691_v59 = vpack.c.bf16 %v1418_v41, %v1408_v39  ;;  %v3577_v60 = vpack.c.bf16 %v1497_v47, %v1487_v43  ;;  %v1547_v39 = vld [vmem:[#allocation8 + $0x798] sm:$0xff]  ;;  %v1489_v41 = vld [vmem:[#allocation8 + $0x5c8] sm:$0xff] }
 0x1ed   : > { %3564 = vmatpush1.bf16.msra.mxu1 %v3563_v61  ;;  %v1486_v61 = vld [vmem:[#allocation8 + $0x5b0] sm:$0xff]  ;;  %v1499_v43 = vld [vmem:[#allocation8 + $0x618] sm:$0xff] }
 0x1ee   : > { %3680 = vmatpush1.bf16.msra.mxu0 %v3679_v48  ;;  %3566 = vmatprep.subr.bf16.mxu1 %v3565_v63  ;;  %v1496_v48 = vld [vmem:[#allocation8 + $0x600] sm:$0xff] }
 0x1ef   : > { %3682 = vmatprep.subr.bf16.mxu0 %v3681_v53  ;;  %v1428_v63 = vld [vmem:[#allocation8 + $0x3e0] sm:$0xff]  ;;  %v1517_v53 = vld [vmem:[#allocation8 + $0x6a8] sm:$0xff]  ;;  %v3579_v7 = vpack.c.bf16 %v1496_v48, %v1486_v61  ;;  %v3705_v61 = vpack.c.bf16 %v1499_v43, %v1489_v41  ;;  %v1498_v48 = vld [vmem:[#allocation8 + $0x610] sm:$0xff] }
 0x1f0   : > { %v3695_v8 = vpack.c.bf16 %v1438_v3, %v1428_v63  ;;  %v3581_v9 = vpack.c.bf16 %v1517_v53, %v1507_v44  ;;  %v1567_v63 = vld [vmem:[#allocation8 + $0x838] sm:$0xff]  ;;  %v1509_v3 = vld [vmem:[#allocation8 + $0x668] sm:$0xff] }
 0x1f1   : > { %3568 = vmatpush1.bf16.msra.mxu1 %v3567_v10  ;;  %v1506_v10 = vld [vmem:[#allocation8 + $0x650] sm:$0xff]  ;;  %v1519_v44 = vld [vmem:[#allocation8 + $0x6b8] sm:$0xff] }
 0x1f2   : > { %3684 = vmatpush1.bf16.msra.mxu0 %v3683_v12  ;;  %3570 = vmatprep.subr.bf16.mxu1 %v3569_v14  ;;  %v1516_v12 = vld [vmem:[#allocation8 + $0x6a0] sm:$0xff] }
 0x1f3   : > { %3686 = vmatprep.subr.bf16.mxu0 %v3685_v23  ;;  %v1448_v14 = vld [vmem:[#allocation8 + $0x480] sm:$0xff]  ;;  %v1537_v23 = vld [vmem:[#allocation8 + $0x748] sm:$0xff]  ;;  %v3583_v28 = vpack.c.bf16 %v1516_v12, %v1506_v10  ;;  %v3709_v10 = vpack.c.bf16 %v1519_v44, %v1509_v3  ;;  %v1518_v12 = vld [vmem:[#allocation8 + $0x6b0] sm:$0xff] }
 0x1f4   : > { %v3699_v32 = vpack.c.bf16 %v1458_v16, %v1448_v14  ;;  %v3585_v33 = vpack.c.bf16 %v1537_v23, %v1527_v22  ;;  %v1587_v14 = vld [vmem:[#allocation8 + $0x8d8] sm:$0xff]  ;;  %v1529_v16 = vld [vmem:[#allocation8 + $0x708] sm:$0xff] }
 0x1f5   : > { %3572 = vmatpush1.bf16.msra.mxu1 %v3571_v31  ;;  %v1526_v31 = vld [vmem:[#allocation8 + $0x6f0] sm:$0xff]  ;;  %v1539_v22 = vld [vmem:[#allocation8 + $0x758] sm:$0xff] }
 0x1f6   : > { %3688 = vmatpush1.bf16.msra.mxu0 %v3687_v34  ;;  %3574 = vmatprep.subr.bf16.mxu1 %v3573_v35  ;;  %v1536_v34 = vld [vmem:[#allocation8 + $0x740] sm:$0xff] }
 0x1f7   : > { %3690 = vmatprep.subr.bf16.mxu0 %v3689_v40  ;;  %v1468_v35 = vld [vmem:[#allocation8 + $0x520] sm:$0xff]  ;;  %v1557_v40 = vld [vmem:[#allocation8 + $0x7e8] sm:$0xff]  ;;  %v3587_v47 = vpack.c.bf16 %v1536_v34, %v1526_v31  ;;  %v3713_v31 = vpack.c.bf16 %v1539_v22, %v1529_v16  ;;  %v1538_v34 = vld [vmem:[#allocation8 + $0x750] sm:$0xff] }
 0x1f8   : > { %v3703_v52 = vpack.c.bf16 %v1478_v37, %v1468_v35  ;;  %v3589_v57 = vpack.c.bf16 %v1557_v40, %v1547_v39  ;;  %v1607_v35 = vld [vmem:[#allocation8 + $0x978] sm:$0xff]  ;;  %v1549_v37 = vld [vmem:[#allocation8 + $0x7a8] sm:$0xff] }
 0x1f9   : > { %3576 = vmatpush1.bf16.msra.mxu1 %v3575_v58  ;;  %v1546_v58 = vld [vmem:[#allocation8 + $0x790] sm:$0xff]  ;;  %v1559_v39 = vld [vmem:[#allocation8 + $0x7f8] sm:$0xff] }
 0x1fa   : > { %3692 = vmatpush1.bf16.msra.mxu0 %v3691_v59  ;;  %3578 = vmatprep.subr.bf16.mxu1 %v3577_v60  ;;  %v1556_v59 = vld [vmem:[#allocation8 + $0x7e0] sm:$0xff] }
 0x1fb   : > { %3694 = vmatprep.subr.bf16.mxu0 %v3693_v1  ;;  %v1488_v60 = vld [vmem:[#allocation8 + $0x5c0] sm:$0xff]  ;;  %v1577_v1 = vld [vmem:[#allocation8 + $0x888] sm:$0xff]  ;;  %v3591_v53 = vpack.c.bf16 %v1556_v59, %v1546_v58  ;;  %v3717_v58 = vpack.c.bf16 %v1559_v39, %v1549_v37  ;;  %v1558_v59 = vld [vmem:[#allocation8 + $0x7f0] sm:$0xff] }
 0x1fc   : > { %v3707_v5 = vpack.c.bf16 %v1498_v48, %v1488_v60  ;;  %v3593_v6 = vpack.c.bf16 %v1577_v1, %v1567_v63  ;;  %v1627_v60 = vld [vmem:[#allocation8 + $0xa18] sm:$0xff]  ;;  %v1569_v48 = vld [vmem:[#allocation8 + $0x848] sm:$0xff] }
 0x1fd   : > { %3580 = vmatpush1.bf16.msra.mxu1 %v3579_v7  ;;  %v1566_v7 = vld [vmem:[#allocation8 + $0x830] sm:$0xff]  ;;  %v1579_v63 = vld [vmem:[#allocation8 + $0x898] sm:$0xff] }
 0x1fe   : > { %3696 = vmatpush1.bf16.msra.mxu0 %v3695_v8  ;;  %3582 = vmatprep.subr.bf16.mxu1 %v3581_v9  ;;  %v1576_v8 = vld [vmem:[#allocation8 + $0x880] sm:$0xff] }
 0x1ff   : > { %3698 = vmatprep.subr.bf16.mxu0 %v3697_v11  ;;  %v1508_v9 = vld [vmem:[#allocation8 + $0x660] sm:$0xff]  ;;  %v1597_v11 = vld [vmem:[#allocation8 + $0x928] sm:$0xff]  ;;  %v3595_v23 = vpack.c.bf16 %v1576_v8, %v1566_v7  ;;  %v3721_v7 = vpack.c.bf16 %v1579_v63, %v1569_v48  ;;  %v1578_v8 = vld [vmem:[#allocation8 + $0x890] sm:$0xff] }
 0x200   : > { %v3711_v25 = vpack.c.bf16 %v1518_v12, %v1508_v9  ;;  %v3597_v26 = vpack.c.bf16 %v1597_v11, %v1587_v14  ;;  %v1647_v9 = vld [vmem:[#allocation8 + $0xab8] sm:$0xff]  ;;  %v1589_v12 = vld [vmem:[#allocation8 + $0x8e8] sm:$0xff] }
 0x201   : > { %3584 = vmatpush1.bf16.msra.mxu1 %v3583_v28  ;;  %v1586_v28 = vld [vmem:[#allocation8 + $0x8d0] sm:$0xff]  ;;  %v1599_v14 = vld [vmem:[#allocation8 + $0x938] sm:$0xff] }
 0x202   : > { %3700 = vmatpush1.bf16.msra.mxu0 %v3699_v32  ;;  %3586 = vmatprep.subr.bf16.mxu1 %v3585_v33  ;;  %v1596_v32 = vld [vmem:[#allocation8 + $0x920] sm:$0xff] }
 0x203   : > { %3702 = vmatprep.subr.bf16.mxu0 %v3701_v36  ;;  %v1528_v33 = vld [vmem:[#allocation8 + $0x700] sm:$0xff]  ;;  %v1617_v36 = vld [vmem:[#allocation8 + $0x9c8] sm:$0xff]  ;;  %v3599_v40 = vpack.c.bf16 %v1596_v32, %v1586_v28  ;;  %v3725_v28 = vpack.c.bf16 %v1599_v14, %v1589_v12  ;;  %v1598_v32 = vld [vmem:[#allocation8 + $0x930] sm:$0xff] }
 0x204   : > { %v3715_v41 = vpack.c.bf16 %v1538_v34, %v1528_v33  ;;  %v3601_v43 = vpack.c.bf16 %v1617_v36, %v1607_v35  ;;  %v1667_v33 = vld [vmem:[#allocation8 + $0xb58] sm:$0xff]  ;;  %v1609_v34 = vld [vmem:[#allocation8 + $0x988] sm:$0xff]  ;;  %v1706_v14 = vld [vmem:[#allocation8 + $0xc90] sm:$0xff] }
 0x205   : > { %3588 = vmatpush1.bf16.msra.mxu1 %v3587_v47  ;;  %v1606_v47 = vld [vmem:[#allocation8 + $0x970] sm:$0xff]  ;;  %v1619_v35 = vld [vmem:[#allocation8 + $0x9d8] sm:$0xff] }
 0x206   : > { %3704 = vmatpush1.bf16.msra.mxu0 %v3703_v52  ;;  %3590 = vmatprep.subr.bf16.mxu1 %v3589_v57  ;;  %v1616_v52 = vld [vmem:[#allocation8 + $0x9c0] sm:$0xff] }
 0x207   : > { %3706 = vmatprep.subr.bf16.mxu0 %v3705_v61  ;;  %v1548_v57 = vld [vmem:[#allocation8 + $0x7a0] sm:$0xff]  ;;  %v1637_v61 = vld [vmem:[#allocation8 + $0xa68] sm:$0xff]  ;;  %v3603_v1 = vpack.c.bf16 %v1616_v52, %v1606_v47  ;;  %v3729_v47 = vpack.c.bf16 %v1619_v35, %v1609_v34  ;;  %v1618_v52 = vld [vmem:[#allocation8 + $0x9d0] sm:$0xff] }
 0x208   : > { %v3719_v3 = vpack.c.bf16 %v1558_v59, %v1548_v57  ;;  %v3605_v44 = vpack.c.bf16 %v1637_v61, %v1627_v60  ;;  %v1687_v57 = vld [vmem:[#allocation8 + $0xbf8] sm:$0xff]  ;;  %v1629_v59 = vld [vmem:[#allocation8 + $0xa28] sm:$0xff] }
 0x209   : > { %3592 = vmatpush1.bf16.msra.mxu1 %v3591_v53  ;;  %v1626_v53 = vld [vmem:[#allocation8 + $0xa10] sm:$0xff]  ;;  %v1639_v60 = vld [vmem:[#allocation8 + $0xa78] sm:$0xff] }
 0x20a   : > { %3708 = vmatpush1.bf16.msra.mxu0 %v3707_v5  ;;  %3594 = vmatprep.subr.bf16.mxu1 %v3593_v6  ;;  %v1636_v5 = vld [vmem:[#allocation8 + $0xa60] sm:$0xff] }
 0x20b   : > { %3710 = vmatprep.subr.bf16.mxu0 %v3709_v10  ;;  %v1568_v6 = vld [vmem:[#allocation8 + $0x840] sm:$0xff]  ;;  %v1657_v10 = vld [vmem:[#allocation8 + $0xb08] sm:$0xff]  ;;  %v3607_v11 = vpack.c.bf16 %v1636_v5, %v1626_v53  ;;  %v1638_v5 = vld [vmem:[#allocation8 + $0xa70] sm:$0xff] }
 0x20c   : > { %v3723_v16 = vpack.c.bf16 %v1578_v8, %v1568_v6  ;;  %v3609_v22 = vpack.c.bf16 %v1657_v10, %v1647_v9  ;;  %v1628_v53 = vld [vmem:[#allocation8 + $0xa20] sm:$0xff]  ;;  %v1707_v6 = vld [vmem:[#allocation8 + $0xc98] sm:$0xff]  ;;  %v1649_v8 = vld [vmem:[#allocation8 + $0xac8] sm:$0xff] }
 0x20d   : > { %3596 = vmatpush1.bf16.msra.mxu1 %v3595_v23  ;;  %v1646_v23 = vld [vmem:[#allocation8 + $0xab0] sm:$0xff]  ;;  %v1659_v9 = vld [vmem:[#allocation8 + $0xb18] sm:$0xff]  ;;  %v3735_v12 = vpack.c.bf16 %v1638_v5, %v1628_v53  ;;  %v1777_v53 = vld [vmem:[#allocation8 + $0xec8] sm:$0xff] }
 0x20e   : > { %3712 = vmatpush1.bf16.msra.mxu0 %v3711_v25  ;;  %3598 = vmatprep.subr.bf16.mxu1 %v3597_v26  ;;  %v1656_v25 = vld [vmem:[#allocation8 + $0xb00] sm:$0xff]  ;;  %v1709_v5 = vld [vmem:[#allocation8 + $0xca8] sm:$0xff] }
 0x20f   : > { %3714 = vmatprep.subr.bf16.mxu0 %v3713_v31  ;;  %v1588_v26 = vld [vmem:[#allocation8 + $0x8e0] sm:$0xff]  ;;  %v1677_v31 = vld [vmem:[#allocation8 + $0xba8] sm:$0xff]  ;;  %v3611_v36 = vpack.c.bf16 %v1656_v25, %v1646_v23  ;;  %v3737_v23 = vpack.c.bf16 %v1659_v9, %v1649_v8  ;;  %v1658_v25 = vld [vmem:[#allocation8 + $0xb10] sm:$0xff] }
 0x210   : > { %v3727_v37 = vpack.c.bf16 %v1598_v32, %v1588_v26  ;;  %v3613_v39 = vpack.c.bf16 %v1677_v31, %v1667_v33  ;;  %v1727_v26 = vld [vmem:[#allocation8 + $0xd38] sm:$0xff]  ;;  %v1669_v32 = vld [vmem:[#allocation8 + $0xb68] sm:$0xff] }
 0x211   : > { %3600 = vmatpush1.bf16.msra.mxu1 %v3599_v40  ;;  %v1666_v40 = vld [vmem:[#allocation8 + $0xb50] sm:$0xff]  ;;  %v1679_v33 = vld [vmem:[#allocation8 + $0xbb8] sm:$0xff] }
 0x212   : > { %3716 = vmatpush1.bf16.msra.mxu0 %v3715_v41  ;;  %3602 = vmatprep.subr.bf16.mxu1 %v3601_v43  ;;  %v1676_v41 = vld [vmem:[#allocation8 + $0xba0] sm:$0xff] }
 0x213   : > { %3718 = vmatprep.subr.bf16.mxu0 %v3717_v58  ;;  %v1608_v43 = vld [vmem:[#allocation8 + $0x980] sm:$0xff]  ;;  %v1697_v58 = vld [vmem:[#allocation8 + $0xc48] sm:$0xff]  ;;  %v3615_v61 = vpack.c.bf16 %v1676_v41, %v1666_v40  ;;  %v3741_v40 = vpack.c.bf16 %v1679_v33, %v1669_v32  ;;  %v1678_v41 = vld [vmem:[#allocation8 + $0xbb0] sm:$0xff] }
 0x214   : > { %v3731_v48 = vpack.c.bf16 %v1618_v52, %v1608_v43  ;;  %v3617_v63 = vpack.c.bf16 %v1697_v58, %v1687_v57  ;;  %v1747_v43 = vld [vmem:[#allocation8 + $0xdd8] sm:$0xff]  ;;  %v1689_v52 = vld [vmem:[#allocation8 + $0xc08] sm:$0xff] }
 0x215   : > { %3604 = vmatpush1.bf16.msra.mxu1 %v3603_v1  ;;  %v1686_v1 = vld [vmem:[#allocation8 + $0xbf0] sm:$0xff]  ;;  %v1699_v57 = vld [vmem:[#allocation8 + $0xc58] sm:$0xff] }
 0x216   : > { %3720 = vmatpush1.bf16.msra.mxu0 %v3719_v3  ;;  %3606 = vmatprep.subr.bf16.mxu1 %v3605_v44  ;;  %v1696_v3 = vld [vmem:[#allocation8 + $0xc40] sm:$0xff]  ;;  %v3733_v44 = vpack.c.bf16 %v1639_v60, %v1629_v59 }
 0x217   : > { %3722 = vmatprep.subr.bf16.mxu0 %v3721_v7  ;;  %v1717_v7 = vld [vmem:[#allocation8 + $0xce8] sm:$0xff]  ;;  %v3619_v10 = vpack.c.bf16 %v1696_v3, %v1686_v1  ;;  %v3745_v1 = vpack.c.bf16 %v1699_v57, %v1689_v52  ;;  %v1698_v3 = vld [vmem:[#allocation8 + $0xc50] sm:$0xff] }
 0x218   : > { %2205 = vmatmul.mubr.f32.vlgmr.msra.gmra.mrb[8].mxu1 %v4950_v27 }
 0x219   : > { %3608 = vmatpush1.bf16.msra.mxu1 %v3607_v11  ;;  %2275 = vmatprep.mubr.f32.mxu1 %v4955_v15  ;;  %v1716_v11 = vld [vmem:[#allocation8 + $0xce0] sm:$0xff] }
 0x21a   : > { %3724 = vmatpush1.bf16.msra.mxu0 %v3723_v16  ;;  %3610 = vmatprep.subr.bf16.mxu1 %v3609_v22  ;;  %v1648_v16 = vld [vmem:[#allocation8 + $0xac0] sm:$0xff]  ;;  %v3621_v22 = vpack.c.bf16 %v1717_v7, %v1707_v6  ;;  %v3623_v31 = vpack.c.bf16 %v1716_v11, %v1706_v14  ;;  %v1719_v6 = vld [vmem:[#allocation8 + $0xcf8] sm:$0xff] }
 0x21b   : > { %3726 = vmatprep.subr.bf16.mxu0 %v3725_v28  ;;  %v1737_v28 = vld [vmem:[#allocation8 + $0xd88] sm:$0xff]  ;;  %v3739_v34 = vpack.c.bf16 %v1658_v25, %v1648_v16  ;;  %v1708_v14 = vld [vmem:[#allocation8 + $0xca0] sm:$0xff]  ;;  %v3749_v11 = vpack.c.bf16 %v1719_v6, %v1709_v5  ;;  %v1718_v16 = vld [vmem:[#allocation8 + $0xcf0] sm:$0xff] }
 0x21c   : > { %v3625_v35 = vpack.c.bf16 %v1737_v28, %v1727_v26  ;;  %v1729_v25 = vld [vmem:[#allocation8 + $0xd48] sm:$0xff]  ;;  %v1739_v26 = vld [vmem:[#allocation8 + $0xd98] sm:$0xff]  ;;  %v3751_v32 = vpack.c.bf16 %v1718_v16, %v1708_v14 }
 0x21d   : > { %3612 = vmatpush1.bf16.msra.mxu1 %v3611_v36  ;;  %v1726_v36 = vld [vmem:[#allocation8 + $0xd30] sm:$0xff]  ;;  %v1847_v14 = vld [vmem:[#allocation8 + $0x10f8] sm:$0xff]  ;;  %v1789_v16 = vld [vmem:[#allocation8 + $0xf28] sm:$0xff] }
 0x21e   : > { %3728 = vmatpush1.bf16.msra.mxu0 %v3727_v37  ;;  %3614 = vmatprep.subr.bf16.mxu1 %v3613_v39  ;;  %v1736_v37 = vld [vmem:[#allocation8 + $0xd80] sm:$0xff] }
 0x21f   : > { %3730 = vmatprep.subr.bf16.mxu0 %v3729_v47  ;;  %v1668_v39 = vld [vmem:[#allocation8 + $0xb60] sm:$0xff]  ;;  %v1757_v47 = vld [vmem:[#allocation8 + $0xe28] sm:$0xff]  ;;  %v3627_v58 = vpack.c.bf16 %v1736_v37, %v1726_v36  ;;  %v3753_v36 = vpack.c.bf16 %v1739_v26, %v1729_v25  ;;  %v1738_v37 = vld [vmem:[#allocation8 + $0xd90] sm:$0xff] }
 0x220   : > { %v3743_v59 = vpack.c.bf16 %v1678_v41, %v1668_v39  ;;  %v3629_v60 = vpack.c.bf16 %v1757_v47, %v1747_v43  ;;  %v1807_v39 = vld [vmem:[#allocation8 + $0xfb8] sm:$0xff]  ;;  %v1749_v41 = vld [vmem:[#allocation8 + $0xde8] sm:$0xff] }
 0x221   : > { %3616 = vmatpush1.bf16.msra.mxu1 %v3615_v61  ;;  %v1746_v61 = vld [vmem:[#allocation8 + $0xdd0] sm:$0xff]  ;;  %v1759_v43 = vld [vmem:[#allocation8 + $0xe38] sm:$0xff] }
 0x222   : > { %3732 = vmatpush1.bf16.msra.mxu0 %v3731_v48  ;;  %3618 = vmatprep.subr.bf16.mxu1 %v3617_v63  ;;  %v1756_v48 = vld [vmem:[#allocation8 + $0xe20] sm:$0xff] }
 0x223   : > { %3734 = vmatprep.subr.bf16.mxu0 %v3733_v44  ;;  %v1688_v63 = vld [vmem:[#allocation8 + $0xc00] sm:$0xff]  ;;  %v1767_v44 = vld [vmem:[#allocation8 + $0xe78] sm:$0xff]  ;;  %v3631_v7 = vpack.c.bf16 %v1756_v48, %v1746_v61  ;;  %v3757_v61 = vpack.c.bf16 %v1759_v43, %v1749_v41  ;;  %v1758_v48 = vld [vmem:[#allocation8 + $0xe30] sm:$0xff] }
 0x224   : > { %v3747_v8 = vpack.c.bf16 %v1698_v3, %v1688_v63  ;;  %v3633_v9 = vpack.c.bf16 %v1777_v53, %v1767_v44  ;;  %v1827_v63 = vld [vmem:[#allocation8 + $0x1058] sm:$0xff]  ;;  %v1769_v3 = vld [vmem:[#allocation8 + $0xe88] sm:$0xff] }
 0x225   : > { %3620 = vmatpush1.bf16.msra.mxu1 %v3619_v10  ;;  %2347 = vmatmul.mubr.f32.vlgmr.msra.gmra.mrb[16].mxu0 %v4950_v27  ;;  %v1766_v10 = vld [vmem:[#allocation8 + $0xe70] sm:$0xff]  ;;  %v1779_v44 = vld [vmem:[#allocation8 + $0xed8] sm:$0xff] }
 0x226   : > { %3736 = vmatpush1.bf16.msra.mxu0 %v3735_v12  ;;  %2417 = vmatprep.mubr.f32.mxu0 %v4955_v15  ;;  %v1776_v12 = vld [vmem:[#allocation8 + $0xec0] sm:$0xff] }
 0x227   : > { %3622 = vmatprep.subr.bf16.mxu1 %v3621_v22  ;;  %3738 = vmatprep.subr.bf16.mxu0 %v3737_v23  ;;  %v1787_v22 = vld [vmem:[#allocation8 + $0xf18] sm:$0xff]  ;;  %v1797_v23 = vld [vmem:[#allocation8 + $0xf68] sm:$0xff]  ;;  %v3635_v28 = vpack.c.bf16 %v1776_v12, %v1766_v10  ;;  %v3761_v10 = vpack.c.bf16 %v1779_v44, %v1769_v3  ;;  %v1778_v12 = vld [vmem:[#allocation8 + $0xed0] sm:$0xff] }
 0x228   : > { %v3637_v33 = vpack.c.bf16 %v1797_v23, %v1787_v22  ;;  %v1799_v22 = vld [vmem:[#allocation8 + $0xf78] sm:$0xff] }
 0x229   : > { %3624 = vmatpush1.bf16.msra.mxu1 %v3623_v31  ;;  %v1786_v31 = vld [vmem:[#allocation8 + $0xf10] sm:$0xff] }
 0x22a   : > { %3740 = vmatpush1.bf16.msra.mxu0 %v3739_v34  ;;  %3626 = vmatprep.subr.bf16.mxu1 %v3625_v35  ;;  %v1796_v34 = vld [vmem:[#allocation8 + $0xf60] sm:$0xff] }
 0x22b   : > { %3742 = vmatprep.subr.bf16.mxu0 %v3741_v40  ;;  %v1728_v35 = vld [vmem:[#allocation8 + $0xd40] sm:$0xff]  ;;  %v1817_v40 = vld [vmem:[#allocation8 + $0x1008] sm:$0xff]  ;;  %v3639_v47 = vpack.c.bf16 %v1796_v34, %v1786_v31  ;;  %v3765_v31 = vpack.c.bf16 %v1799_v22, %v1789_v16  ;;  %v1798_v34 = vld [vmem:[#allocation8 + $0xf70] sm:$0xff] }
 0x22c   : > { %v3755_v52 = vpack.c.bf16 %v1738_v37, %v1728_v35  ;;  %v3641_v57 = vpack.c.bf16 %v1817_v40, %v1807_v39  ;;  %v1867_v35 = vld [vmem:[#allocation8 + $0x1198] sm:$0xff]  ;;  %v1809_v37 = vld [vmem:[#allocation8 + $0xfc8] sm:$0xff] }
 0x22d   : > { %3628 = vmatpush1.bf16.msra.mxu1 %v3627_v58  ;;  %v1806_v58 = vld [vmem:[#allocation8 + $0xfb0] sm:$0xff]  ;;  %v1819_v39 = vld [vmem:[#allocation8 + $0x1018] sm:$0xff] }
 0x22e   : > { %3744 = vmatpush1.bf16.msra.mxu0 %v3743_v59  ;;  %3630 = vmatprep.subr.bf16.mxu1 %v3629_v60  ;;  %v1816_v59 = vld [vmem:[#allocation8 + $0x1000] sm:$0xff] }
 0x22f   : > { %3746 = vmatprep.subr.bf16.mxu0 %v3745_v1  ;;  %v1748_v60 = vld [vmem:[#allocation8 + $0xde0] sm:$0xff]  ;;  %v1837_v1 = vld [vmem:[#allocation8 + $0x10a8] sm:$0xff]  ;;  %v3643_v53 = vpack.c.bf16 %v1816_v59, %v1806_v58  ;;  %v3769_v58 = vpack.c.bf16 %v1819_v39, %v1809_v37  ;;  %v1818_v59 = vld [vmem:[#allocation8 + $0x1010] sm:$0xff] }
 0x230   : > { %v3759_v5 = vpack.c.bf16 %v1758_v48, %v1748_v60  ;;  %v3645_v6 = vpack.c.bf16 %v1837_v1, %v1827_v63  ;;  %v1887_v60 = vld [vmem:[#allocation8 + $0x1238] sm:$0xff]  ;;  %v1829_v48 = vld [vmem:[#allocation8 + $0x1068] sm:$0xff] }
 0x231   : > { %3632 = vmatpush1.bf16.msra.mxu1 %v3631_v7  ;;  %v1826_v7 = vld [vmem:[#allocation8 + $0x1050] sm:$0xff]  ;;  %v1839_v63 = vld [vmem:[#allocation8 + $0x10b8] sm:$0xff] }
 0x232   : > { %3748 = vmatpush1.bf16.msra.mxu0 %v3747_v8  ;;  %3634 = vmatprep.subr.bf16.mxu1 %v3633_v9  ;;  %v1836_v8 = vld [vmem:[#allocation8 + $0x10a0] sm:$0xff] }
 0x233   : > { %3750 = vmatprep.subr.bf16.mxu0 %v3749_v11  ;;  %v1768_v9 = vld [vmem:[#allocation8 + $0xe80] sm:$0xff]  ;;  %v1857_v11 = vld [vmem:[#allocation8 + $0x1148] sm:$0xff]  ;;  %v3647_v23 = vpack.c.bf16 %v1836_v8, %v1826_v7  ;;  %v3773_v7 = vpack.c.bf16 %v1839_v63, %v1829_v48  ;;  %v1838_v8 = vld [vmem:[#allocation8 + $0x10b0] sm:$0xff] }
 0x234   : > { %v3763_v25 = vpack.c.bf16 %v1778_v12, %v1768_v9  ;;  %v3649_v26 = vpack.c.bf16 %v1857_v11, %v1847_v14  ;;  %v1907_v9 = vld [vmem:[#allocation8 + $0x12d8] sm:$0xff]  ;;  %v1849_v12 = vld [vmem:[#allocation8 + $0x1108] sm:$0xff] }
 0x235   : > { %3636 = vmatpush1.bf16.msra.mxu1 %v3635_v28  ;;  %v1846_v28 = vld [vmem:[#allocation8 + $0x10f0] sm:$0xff]  ;;  %v1859_v14 = vld [vmem:[#allocation8 + $0x1158] sm:$0xff] }
 0x236   : > { %3752 = vmatpush1.bf16.msra.mxu0 %v3751_v32  ;;  %3638 = vmatprep.subr.bf16.mxu1 %v3637_v33  ;;  %v1856_v32 = vld [vmem:[#allocation8 + $0x1140] sm:$0xff] }
 0x237   : > { %3754 = vmatprep.subr.bf16.mxu0 %v3753_v36  ;;  %v1788_v33 = vld [vmem:[#allocation8 + $0xf20] sm:$0xff]  ;;  %v1877_v36 = vld [vmem:[#allocation8 + $0x11e8] sm:$0xff]  ;;  %v3651_v40 = vpack.c.bf16 %v1856_v32, %v1846_v28  ;;  %v3777_v28 = vpack.c.bf16 %v1859_v14, %v1849_v12  ;;  %v1858_v32 = vld [vmem:[#allocation8 + $0x1150] sm:$0xff] }
 0x238   : > { %v3767_v41 = vpack.c.bf16 %v1798_v34, %v1788_v33  ;;  %v3653_v43 = vpack.c.bf16 %v1877_v36, %v1867_v35  ;;  %v1927_v33 = vld [vmem:[#allocation8 + $0x1378] sm:$0xff]  ;;  %v1869_v34 = vld [vmem:[#allocation8 + $0x11a8] sm:$0xff] }
 0x239   : > { %3640 = vmatpush1.bf16.msra.mxu1 %v3639_v47  ;;  %v1866_v47 = vld [vmem:[#allocation8 + $0x1190] sm:$0xff]  ;;  %v1879_v35 = vld [vmem:[#allocation8 + $0x11f8] sm:$0xff] }
 0x23a   : > { %3756 = vmatpush1.bf16.msra.mxu0 %v3755_v52  ;;  %3642 = vmatprep.subr.bf16.mxu1 %v3641_v57  ;;  %v1876_v52 = vld [vmem:[#allocation8 + $0x11e0] sm:$0xff] }
 0x23b   : > { %3758 = vmatprep.subr.bf16.mxu0 %v3757_v61  ;;  %v1808_v57 = vld [vmem:[#allocation8 + $0xfc0] sm:$0xff]  ;;  %v1897_v61 = vld [vmem:[#allocation8 + $0x1288] sm:$0xff]  ;;  %v3655_v1 = vpack.c.bf16 %v1876_v52, %v1866_v47  ;;  %v3781_v47 = vpack.c.bf16 %v1879_v35, %v1869_v34  ;;  %v1878_v52 = vld [vmem:[#allocation8 + $0x11f0] sm:$0xff] }
 0x23c   : > { %v3771_v3 = vpack.c.bf16 %v1818_v59, %v1808_v57  ;;  %v3657_v44 = vpack.c.bf16 %v1897_v61, %v1887_v60  ;;  %v1311_v57 = vld [vmem:[#allocation8 + $0x38] sm:$0xff]  ;;  %v1889_v59 = vld [vmem:[#allocation8 + $0x1248] sm:$0xff] }
 0x23d   : > { %3644 = vmatpush1.bf16.msra.mxu1 %v3643_v53  ;;  %v1886_v53 = vld [vmem:[#allocation8 + $0x1230] sm:$0xff]  ;;  %v1899_v60 = vld [vmem:[#allocation8 + $0x1298] sm:$0xff] }
 0x23e   : > { %3760 = vmatpush1.bf16.msra.mxu0 %v3759_v5  ;;  %3646 = vmatprep.subr.bf16.mxu1 %v3645_v6  ;;  %v1896_v5 = vld [vmem:[#allocation8 + $0x1280] sm:$0xff] }
 0x23f   : > { %3762 = vmatprep.subr.bf16.mxu0 %v3761_v10  ;;  %v1828_v6 = vld [vmem:[#allocation8 + $0x1060] sm:$0xff]  ;;  %v1917_v10 = vld [vmem:[#allocation8 + $0x1328] sm:$0xff]  ;;  %v3659_v11 = vpack.c.bf16 %v1896_v5, %v1886_v53  ;;  %v3785_v53 = vpack.c.bf16 %v1899_v60, %v1889_v59  ;;  %v1898_v5 = vld [vmem:[#allocation8 + $0x1290] sm:$0xff] }
 0x240   : > { %v3775_v16 = vpack.c.bf16 %v1838_v8, %v1828_v6  ;;  %v3661_v22 = vpack.c.bf16 %v1917_v10, %v1907_v9  ;;  %v1331_v6 = vld [vmem:[#allocation8 + $0xd8] sm:$0xff]  ;;  %v1909_v8 = vld [vmem:[#allocation8 + $0x12e8] sm:$0xff] }
 0x241   : > { %3648 = vmatpush1.bf16.msra.mxu1 %v3647_v23  ;;  %v1906_v23 = vld [vmem:[#allocation8 + $0x12d0] sm:$0xff]  ;;  %v1919_v9 = vld [vmem:[#allocation8 + $0x1338] sm:$0xff] }
 0x242   : > { %3764 = vmatpush1.bf16.msra.mxu0 %v3763_v25  ;;  %3650 = vmatprep.subr.bf16.mxu1 %v3649_v26  ;;  %v1916_v25 = vld [vmem:[#allocation8 + $0x1320] sm:$0xff] }
 0x243   : > { %3766 = vmatprep.subr.bf16.mxu0 %v3765_v31  ;;  %v1848_v26 = vld [vmem:[#allocation8 + $0x1100] sm:$0xff]  ;;  %v1937_v31 = vld [vmem:[#allocation8 + $0x13c8] sm:$0xff]  ;;  %v3663_v36 = vpack.c.bf16 %v1916_v25, %v1906_v23  ;;  %v3789_v23 = vpack.c.bf16 %v1919_v9, %v1909_v8  ;;  %v1918_v25 = vld [vmem:[#allocation8 + $0x1330] sm:$0xff] }
 0x244   : > { %v3779_v37 = vpack.c.bf16 %v1858_v32, %v1848_v26  ;;  %v3665_v39 = vpack.c.bf16 %v1937_v31, %v1927_v33  ;;  %v1351_v26 = vld [vmem:[#allocation8 + $0x178] sm:$0xff]  ;;  %v1929_v32 = vld [vmem:[#allocation8 + $0x1388] sm:$0xff]  ;;  %v1390_v9 = vld [vmem:[#allocation8 + $0x2b0] sm:$0xff] }
 0x245   : > { %3652 = vmatpush1.bf16.msra.mxu1 %v3651_v40  ;;  %v1926_v40 = vld [vmem:[#allocation8 + $0x1370] sm:$0xff]  ;;  %v1939_v33 = vld [vmem:[#allocation8 + $0x13d8] sm:$0xff] }
 0x246   : > { %3768 = vmatpush1.bf16.msra.mxu0 %v3767_v41  ;;  %3654 = vmatprep.subr.bf16.mxu1 %v3653_v43  ;;  %v1936_v41 = vld [vmem:[#allocation8 + $0x13c0] sm:$0xff] }
 0x247   : > { %3770 = vmatprep.subr.bf16.mxu0 %v3769_v58  ;;  %v1868_v43 = vld [vmem:[#allocation8 + $0x11a0] sm:$0xff]  ;;  %v1321_v58 = vld [vmem:[#allocation8 + $0x88] sm:$0xff]  ;;  %v3667_v61 = vpack.c.bf16 %v1936_v41, %v1926_v40  ;;  %v3793_v40 = vpack.c.bf16 %v1939_v33, %v1929_v32  ;;  %v1938_v41 = vld [vmem:[#allocation8 + $0x13d0] sm:$0xff] }
 0x248   : > { %v3783_v48 = vpack.c.bf16 %v1878_v52, %v1868_v43  ;;  %v3797_v63 = vpack.c.bf16 %v1321_v58, %v1311_v57  ;;  %v1371_v43 = vld [vmem:[#allocation8 + $0x218] sm:$0xff]  ;;  %v1313_v52 = vld [vmem:[#allocation8 + $0x48] sm:$0xff] }
 0x249   : > { %3656 = vmatpush1.bf16.msra.mxu1 %v3655_v1  ;;  %v1310_v1 = vld [vmem:[#allocation8 + $0x30] sm:$0xff]  ;;  %v1323_v57 = vld [vmem:[#allocation8 + $0x98] sm:$0xff] }
 0x24a   : > { %3772 = vmatpush1.bf16.msra.mxu0 %v3771_v3  ;;  %3658 = vmatprep.subr.bf16.mxu1 %v3657_v44  ;;  %v1320_v3 = vld [vmem:[#allocation8 + $0x80] sm:$0xff] }
 0x24b   : > { %3774 = vmatprep.subr.bf16.mxu0 %v3773_v7  ;;  %v1888_v44 = vld [vmem:[#allocation8 + $0x1240] sm:$0xff]  ;;  %v1341_v7 = vld [vmem:[#allocation8 + $0x128] sm:$0xff]  ;;  %v3799_v10 = vpack.c.bf16 %v1320_v3, %v1310_v1  ;;  %v1322_v3 = vld [vmem:[#allocation8 + $0x90] sm:$0xff] }
 0x24c   : > { %v3787_v12 = vpack.c.bf16 %v1898_v5, %v1888_v44  ;;  %v3801_v14 = vpack.c.bf16 %v1341_v7, %v1331_v6  ;;  %v1312_v1 = vld [vmem:[#allocation8 + $0x40] sm:$0xff]  ;;  %v1391_v44 = vld [vmem:[#allocation8 + $0x2b8] sm:$0xff]  ;;  %v1333_v5 = vld [vmem:[#allocation8 + $0xe8] sm:$0xff] }
 0x24d   : > { %3660 = vmatpush1.bf16.msra.mxu1 %v3659_v11  ;;  %v1330_v11 = vld [vmem:[#allocation8 + $0xd0] sm:$0xff]  ;;  %v1343_v6 = vld [vmem:[#allocation8 + $0x138] sm:$0xff]  ;;  %v3927_v8 = vpack.c.bf16 %v1322_v3, %v1312_v1  ;;  %v1393_v1 = vld [vmem:[#allocation8 + $0x2c8] sm:$0xff] }
 0x24e   : > { %3776 = vmatpush1.bf16.msra.mxu0 %v3775_v16  ;;  %3662 = vmatprep.subr.bf16.mxu1 %v3661_v22  ;;  %v1340_v16 = vld [vmem:[#allocation8 + $0x120] sm:$0xff]  ;;  %v1403_v3 = vld [vmem:[#allocation8 + $0x318] sm:$0xff] }
 0x24f   : > { %3778 = vmatprep.subr.bf16.mxu0 %v3777_v28  ;;  %v1908_v22 = vld [vmem:[#allocation8 + $0x12e0] sm:$0xff]  ;;  %v1361_v28 = vld [vmem:[#allocation8 + $0x1c8] sm:$0xff]  ;;  %v3803_v31 = vpack.c.bf16 %v1340_v16, %v1330_v11  ;;  %v3929_v11 = vpack.c.bf16 %v1343_v6, %v1333_v5  ;;  %v1342_v16 = vld [vmem:[#allocation8 + $0x130] sm:$0xff] }
 0x250   : > { %v3791_v34 = vpack.c.bf16 %v1918_v25, %v1908_v22  ;;  %v3805_v35 = vpack.c.bf16 %v1361_v28, %v1351_v26  ;;  %v1411_v22 = vld [vmem:[#allocation8 + $0x358] sm:$0xff]  ;;  %v1353_v25 = vld [vmem:[#allocation8 + $0x188] sm:$0xff]  ;;  %v1450_v6 = vld [vmem:[#allocation8 + $0x490] sm:$0xff] }
 0x251   : > { %3664 = vmatpush1.bf16.msra.mxu1 %v3663_v36  ;;  %v1350_v36 = vld [vmem:[#allocation8 + $0x170] sm:$0xff]  ;;  %v1363_v26 = vld [vmem:[#allocation8 + $0x1d8] sm:$0xff] }
 0x252   : > { %3780 = vmatpush1.bf16.msra.mxu0 %v3779_v37  ;;  %3666 = vmatprep.subr.bf16.mxu1 %v3665_v39  ;;  %v1360_v37 = vld [vmem:[#allocation8 + $0x1c0] sm:$0xff] }
 0x253   : > { %3782 = vmatprep.subr.bf16.mxu0 %v3781_v47  ;;  %v1928_v39 = vld [vmem:[#allocation8 + $0x1380] sm:$0xff]  ;;  %v1381_v47 = vld [vmem:[#allocation8 + $0x268] sm:$0xff]  ;;  %v3807_v58 = vpack.c.bf16 %v1360_v37, %v1350_v36  ;;  %v3933_v36 = vpack.c.bf16 %v1363_v26, %v1353_v25  ;;  %v1362_v37 = vld [vmem:[#allocation8 + $0x1d0] sm:$0xff] }
 0x254   : > { %v3795_v59 = vpack.c.bf16 %v1938_v41, %v1928_v39  ;;  %v3809_v60 = vpack.c.bf16 %v1381_v47, %v1371_v43  ;;  %v1431_v39 = vld [vmem:[#allocation8 + $0x3f8] sm:$0xff]  ;;  %v1373_v41 = vld [vmem:[#allocation8 + $0x228] sm:$0xff]  ;;  %v1470_v26 = vld [vmem:[#allocation8 + $0x530] sm:$0xff] }
 0x255   : > { %3668 = vmatpush1.bf16.msra.mxu1 %v3667_v61  ;;  %v1370_v61 = vld [vmem:[#allocation8 + $0x210] sm:$0xff]  ;;  %v1383_v43 = vld [vmem:[#allocation8 + $0x278] sm:$0xff] }
 0x256   : > { %3784 = vmatpush1.bf16.msra.mxu0 %v3783_v48  ;;  %3798 = vmatprep.subr.bf16.mxu1 %v3797_v63  ;;  %v1380_v48 = vld [vmem:[#allocation8 + $0x260] sm:$0xff]  ;;  %v3925_v63 = vpack.c.bf16 %v1323_v57, %v1313_v52 }
 0x257   : > { %3786 = vmatprep.subr.bf16.mxu0 %v3785_v53  ;;  %v1401_v53 = vld [vmem:[#allocation8 + $0x308] sm:$0xff]  ;;  %v3811_v7 = vpack.c.bf16 %v1380_v48, %v1370_v61  ;;  %v1382_v61 = vld [vmem:[#allocation8 + $0x270] sm:$0xff]  ;;  %v1451_v48 = vld [vmem:[#allocation8 + $0x498] sm:$0xff] }
 0x258   : > { %2276 = vmatmul.mubr.f32.vlgmr.msra.gmra.mrb[8].mxu1 %v4959_v30 }
 0x259   : > { %3800 = vmatpush1.bf16.msra.mxu1 %v3799_v10  ;;  %2488 = vmatprep.mubr.f32.mxu1 %v4946_v18  ;;  %v1400_v10 = vld [vmem:[#allocation8 + $0x300] sm:$0xff] }
 0x25a   : > { %3788 = vmatpush1.bf16.msra.mxu0 %v3787_v12  ;;  %3802 = vmatprep.subr.bf16.mxu1 %v3801_v14  ;;  %v1332_v12 = vld [vmem:[#allocation8 + $0xe0] sm:$0xff]  ;;  %v3813_v14 = vpack.c.bf16 %v1401_v53, %v1391_v44  ;;  %v3815_v28 = vpack.c.bf16 %v1400_v10, %v1390_v9  ;;  %v3941_v9 = vpack.c.bf16 %v1403_v3, %v1393_v1  ;;  %v1402_v10 = vld [vmem:[#allocation8 + $0x310] sm:$0xff] }
 0x25b   : > { %3790 = vmatprep.subr.bf16.mxu0 %v3789_v23  ;;  %v1421_v23 = vld [vmem:[#allocation8 + $0x3a8] sm:$0xff]  ;;  %v3931_v32 = vpack.c.bf16 %v1342_v16, %v1332_v12  ;;  %v1471_v12 = vld [vmem:[#allocation8 + $0x538] sm:$0xff]  ;;  %v1510_v3 = vld [vmem:[#allocation8 + $0x670] sm:$0xff] }
 0x25c   : > { %v3817_v33 = vpack.c.bf16 %v1421_v23, %v1411_v22  ;;  %v1423_v16 = vld [vmem:[#allocation8 + $0x3b8] sm:$0xff] }
 0x25d   : > { %3804 = vmatpush1.bf16.msra.mxu1 %v3803_v31  ;;  %v1410_v31 = vld [vmem:[#allocation8 + $0x350] sm:$0xff] }
 0x25e   : > { %3792 = vmatpush1.bf16.msra.mxu0 %v3791_v34  ;;  %3806 = vmatprep.subr.bf16.mxu1 %v3805_v35  ;;  %v1420_v34 = vld [vmem:[#allocation8 + $0x3a0] sm:$0xff] }
 0x25f   : > { %3794 = vmatprep.subr.bf16.mxu0 %v3793_v40  ;;  %v1352_v35 = vld [vmem:[#allocation8 + $0x180] sm:$0xff]  ;;  %v1441_v40 = vld [vmem:[#allocation8 + $0x448] sm:$0xff]  ;;  %v3819_v47 = vpack.c.bf16 %v1420_v34, %v1410_v31  ;;  %v1422_v31 = vld [vmem:[#allocation8 + $0x3b0] sm:$0xff] }
 0x260   : > { %v3935_v52 = vpack.c.bf16 %v1362_v37, %v1352_v35  ;;  %v3821_v57 = vpack.c.bf16 %v1441_v40, %v1431_v39  ;;  %v1491_v34 = vld [vmem:[#allocation8 + $0x5d8] sm:$0xff]  ;;  %v1501_v35 = vld [vmem:[#allocation8 + $0x628] sm:$0xff] }
 0x261   : > { %3808 = vmatpush1.bf16.msra.mxu1 %v3807_v58  ;;  %v1440_v58 = vld [vmem:[#allocation8 + $0x440] sm:$0xff]  ;;  %v1443_v37 = vld [vmem:[#allocation8 + $0x458] sm:$0xff] }
 0x262   : > { %3796 = vmatpush1.bf16.msra.mxu0 %v3795_v59  ;;  %3810 = vmatprep.subr.bf16.mxu1 %v3809_v60  ;;  %v1372_v59 = vld [vmem:[#allocation8 + $0x220] sm:$0xff]  ;;  %v3937_v60 = vpack.c.bf16 %v1383_v43, %v1373_v41  ;;  %v3833_v41 = vpack.c.bf16 %v1501_v35, %v1491_v34  ;;  %v1490_v43 = vld [vmem:[#allocation8 + $0x5d0] sm:$0xff] }
 0x263   : > { %3926 = vmatprep.subr.bf16.mxu0 %v3925_v63  ;;  %v1461_v63 = vld [vmem:[#allocation8 + $0x4e8] sm:$0xff]  ;;  %v3939_v53 = vpack.c.bf16 %v1382_v61, %v1372_v59  ;;  %v1463_v61 = vld [vmem:[#allocation8 + $0x4f8] sm:$0xff] }
 0x264   : > { %v3825_v5 = vpack.c.bf16 %v1461_v63, %v1451_v48  ;;  %v1521_v59 = vld [vmem:[#allocation8 + $0x6c8] sm:$0xff] }
 0x265   : > { %2418 = vmatmul.mubr.f32.vlgmr.msra.gmra.mrb[16].mxu0 %v4959_v30  ;;  %3812 = vmatpush1.bf16.msra.mxu1 %v3811_v7  ;;  %v1460_v7 = vld [vmem:[#allocation8 + $0x4e0] sm:$0xff] }
 0x266   : > { %3928 = vmatpush1.bf16.msra.mxu0 %v3927_v8  ;;  %2630 = vmatprep.mubr.f32.mxu0 %v4946_v18  ;;  %v1430_v18 = vld [vmem:[#allocation8 + $0x3f0] sm:$0xff]  ;;  %v1392_v8 = vld [vmem:[#allocation8 + $0x2c0] sm:$0xff]  ;;  %v3827_v22 = vpack.c.bf16 %v1460_v7, %v1450_v6  ;;  %v1531_v7 = vld [vmem:[#allocation8 + $0x718] sm:$0xff] }
 0x267   : > { %3814 = vmatprep.subr.bf16.mxu1 %v3813_v14  ;;  %3930 = vmatprep.subr.bf16.mxu0 %v3929_v11  ;;  %v3823_v44 = vpack.c.bf16 %v1440_v58, %v1430_v18  ;;  %v1481_v14 = vld [vmem:[#allocation8 + $0x588] sm:$0xff]  ;;  %v3943_v23 = vpack.c.bf16 %v1402_v10, %v1392_v8  ;;  %v1442_v18 = vld [vmem:[#allocation8 + $0x450] sm:$0xff]  ;;  %v1511_v58 = vld [vmem:[#allocation8 + $0x678] sm:$0xff] }
 0x268   : > { %v1413_v11 = vld [vmem:[#allocation8 + $0x368] sm:$0xff]  ;;  %v3829_v25 = vpack.c.bf16 %v1481_v14, %v1471_v12  ;;  %v3837_v1 = vpack.c.bf16 %v1521_v59, %v1511_v58  ;;  %v1462_v6 = vld [vmem:[#allocation8 + $0x4f0] sm:$0xff]  ;;  %v1483_v10 = vld [vmem:[#allocation8 + $0x598] sm:$0xff] }
 0x269   : > { %3816 = vmatpush1.bf16.msra.mxu1 %v3815_v28  ;;  %v1480_v28 = vld [vmem:[#allocation8 + $0x580] sm:$0xff]  ;;  %v1541_v8 = vld [vmem:[#allocation8 + $0x768] sm:$0xff] }
 0x26a   : > { %3932 = vmatpush1.bf16.msra.mxu0 %v3931_v32  ;;  %3818 = vmatprep.subr.bf16.mxu1 %v3817_v33  ;;  %v1412_v32 = vld [vmem:[#allocation8 + $0x360] sm:$0xff]  ;;  %v3945_v33 = vpack.c.bf16 %v1423_v16, %v1413_v11  ;;  %v3831_v39 = vpack.c.bf16 %v1480_v28, %v1470_v26  ;;  %v3841_v11 = vpack.c.bf16 %v1541_v8, %v1531_v7  ;;  %v1530_v16 = vld [vmem:[#allocation8 + $0x710] sm:$0xff]  ;;  %v1551_v28 = vld [vmem:[#allocation8 + $0x7b8] sm:$0xff] }
 0x26b   : > { %3934 = vmatprep.subr.bf16.mxu0 %v3933_v36  ;;  %v1433_v36 = vld [vmem:[#allocation8 + $0x408] sm:$0xff]  ;;  %v3947_v40 = vpack.c.bf16 %v1422_v31, %v1412_v32  ;;  %v1482_v26 = vld [vmem:[#allocation8 + $0x590] sm:$0xff]  ;;  %v1503_v31 = vld [vmem:[#allocation8 + $0x638] sm:$0xff] }
 0x26c   : > { %v1561_v32 = vld [vmem:[#allocation8 + $0x808] sm:$0xff] }
 0x26d   : > { %3820 = vmatpush1.bf16.msra.mxu1 %v3819_v47  ;;  %v1500_v47 = vld [vmem:[#allocation8 + $0x620] sm:$0xff] }
 0x26e   : > { %3936 = vmatpush1.bf16.msra.mxu0 %v3935_v52  ;;  %3822 = vmatprep.subr.bf16.mxu1 %v3821_v57  ;;  %v1432_v52 = vld [vmem:[#allocation8 + $0x400] sm:$0xff]  ;;  %v3949_v57 = vpack.c.bf16 %v1443_v37, %v1433_v36  ;;  %v3835_v48 = vpack.c.bf16 %v1500_v47, %v1490_v43  ;;  %v3845_v36 = vpack.c.bf16 %v1561_v32, %v1551_v28  ;;  %v1550_v37 = vld [vmem:[#allocation8 + $0x7b0] sm:$0xff]  ;;  %v1571_v47 = vld [vmem:[#allocation8 + $0x858] sm:$0xff] }
 0x26f   : > { %3938 = vmatprep.subr.bf16.mxu0 %v3937_v60  ;;  %v1453_v60 = vld [vmem:[#allocation8 + $0x4a8] sm:$0xff]  ;;  %v3951_v63 = vpack.c.bf16 %v1442_v18, %v1432_v52  ;;  %v1502_v43 = vld [vmem:[#allocation8 + $0x630] sm:$0xff]  ;;  %v1523_v18 = vld [vmem:[#allocation8 + $0x6d8] sm:$0xff] }
 0x270   : > { %v1581_v52 = vld [vmem:[#allocation8 + $0x8a8] sm:$0xff] }
 0x271   : > { %3824 = vmatpush1.bf16.msra.mxu1 %v3823_v44  ;;  %v1520_v44 = vld [vmem:[#allocation8 + $0x6c0] sm:$0xff] }
 0x272   : > { %3940 = vmatpush1.bf16.msra.mxu0 %v3939_v53  ;;  %3826 = vmatprep.subr.bf16.mxu1 %v3825_v5  ;;  %v1452_v53 = vld [vmem:[#allocation8 + $0x4a0] sm:$0xff]  ;;  %v3953_v5 = vpack.c.bf16 %v1463_v61, %v1453_v60  ;;  %v3839_v12 = vpack.c.bf16 %v1520_v44, %v1510_v3  ;;  %v3849_v60 = vpack.c.bf16 %v1581_v52, %v1571_v47  ;;  %v1570_v61 = vld [vmem:[#allocation8 + $0x850] sm:$0xff]  ;;  %v1591_v44 = vld [vmem:[#allocation8 + $0x8f8] sm:$0xff] }
 0x273   : > { %3942 = vmatprep.subr.bf16.mxu0 %v3941_v9  ;;  %v1473_v9 = vld [vmem:[#allocation8 + $0x548] sm:$0xff]  ;;  %v3955_v14 = vpack.c.bf16 %v1462_v6, %v1452_v53  ;;  %v1522_v3 = vld [vmem:[#allocation8 + $0x6d0] sm:$0xff]  ;;  %v1543_v6 = vld [vmem:[#allocation8 + $0x778] sm:$0xff] }
 0x274   : > { %v1601_v53 = vld [vmem:[#allocation8 + $0x948] sm:$0xff] }
 0x275   : > { %3828 = vmatpush1.bf16.msra.mxu1 %v3827_v22  ;;  %v1540_v22 = vld [vmem:[#allocation8 + $0x760] sm:$0xff] }
 0x276   : > { %3944 = vmatpush1.bf16.msra.mxu0 %v3943_v23  ;;  %3830 = vmatprep.subr.bf16.mxu1 %v3829_v25  ;;  %v1472_v23 = vld [vmem:[#allocation8 + $0x540] sm:$0xff]  ;;  %v3957_v25 = vpack.c.bf16 %v1483_v10, %v1473_v9  ;;  %v3843_v34 = vpack.c.bf16 %v1540_v22, %v1530_v16  ;;  %v3853_v9 = vpack.c.bf16 %v1601_v53, %v1591_v44  ;;  %v1590_v10 = vld [vmem:[#allocation8 + $0x8f0] sm:$0xff]  ;;  %v1611_v22 = vld [vmem:[#allocation8 + $0x998] sm:$0xff] }
 0x277   : > { %3946 = vmatprep.subr.bf16.mxu0 %v3945_v33  ;;  %v1493_v33 = vld [vmem:[#allocation8 + $0x5e8] sm:$0xff]  ;;  %v3959_v35 = vpack.c.bf16 %v1482_v26, %v1472_v23  ;;  %v1542_v16 = vld [vmem:[#allocation8 + $0x770] sm:$0xff]  ;;  %v1563_v26 = vld [vmem:[#allocation8 + $0x818] sm:$0xff] }
 0x278   : > { %v1621_v23 = vld [vmem:[#allocation8 + $0x9e8] sm:$0xff] }
 0x279   : > { %3832 = vmatpush1.bf16.msra.mxu1 %v3831_v39  ;;  %v1560_v39 = vld [vmem:[#allocation8 + $0x800] sm:$0xff] }
 0x27a   : > { %3948 = vmatpush1.bf16.msra.mxu0 %v3947_v40  ;;  %3834 = vmatprep.subr.bf16.mxu1 %v3833_v41  ;;  %v1492_v40 = vld [vmem:[#allocation8 + $0x5e0] sm:$0xff]  ;;  %v3961_v41 = vpack.c.bf16 %v1503_v31, %v1493_v33  ;;  %v3847_v58 = vpack.c.bf16 %v1560_v39, %v1550_v37  ;;  %v3857_v33 = vpack.c.bf16 %v1621_v23, %v1611_v22  ;;  %v1610_v31 = vld [vmem:[#allocation8 + $0x990] sm:$0xff]  ;;  %v1631_v39 = vld [vmem:[#allocation8 + $0xa38] sm:$0xff] }
 0x27b   : > { %3950 = vmatprep.subr.bf16.mxu0 %v3949_v57  ;;  %v1513_v57 = vld [vmem:[#allocation8 + $0x688] sm:$0xff]  ;;  %v3963_v59 = vpack.c.bf16 %v1502_v43, %v1492_v40  ;;  %v1562_v37 = vld [vmem:[#allocation8 + $0x810] sm:$0xff]  ;;  %v1583_v43 = vld [vmem:[#allocation8 + $0x8b8] sm:$0xff] }
 0x27c   : > { %v1641_v40 = vld [vmem:[#allocation8 + $0xa88] sm:$0xff] }
 0x27d   : > { %3836 = vmatpush1.bf16.msra.mxu1 %v3835_v48  ;;  %v1580_v48 = vld [vmem:[#allocation8 + $0x8a0] sm:$0xff] }
 0x27e   : > { %3952 = vmatpush1.bf16.msra.mxu0 %v3951_v63  ;;  %3838 = vmatprep.subr.bf16.mxu1 %v3837_v1  ;;  %v1512_v63 = vld [vmem:[#allocation8 + $0x680] sm:$0xff]  ;;  %v3965_v1 = vpack.c.bf16 %v1523_v18, %v1513_v57  ;;  %v3851_v7 = vpack.c.bf16 %v1580_v48, %v1570_v61  ;;  %v3861_v57 = vpack.c.bf16 %v1641_v40, %v1631_v39  ;;  %v1630_v18 = vld [vmem:[#allocation8 + $0xa30] sm:$0xff]  ;;  %v1651_v48 = vld [vmem:[#allocation8 + $0xad8] sm:$0xff] }
 0x27f   : > { %3954 = vmatprep.subr.bf16.mxu0 %v3953_v5  ;;  %v1533_v5 = vld [vmem:[#allocation8 + $0x728] sm:$0xff]  ;;  %v3967_v8 = vpack.c.bf16 %v1522_v3, %v1512_v63  ;;  %v1582_v61 = vld [vmem:[#allocation8 + $0x8b0] sm:$0xff]  ;;  %v1603_v3 = vld [vmem:[#allocation8 + $0x958] sm:$0xff] }
 0x280   : > { %v1661_v63 = vld [vmem:[#allocation8 + $0xb28] sm:$0xff] }
 0x281   : > { %3840 = vmatpush1.bf16.msra.mxu1 %v3839_v12  ;;  %v1600_v12 = vld [vmem:[#allocation8 + $0x940] sm:$0xff] }
 0x282   : > { %3956 = vmatpush1.bf16.msra.mxu0 %v3955_v14  ;;  %3842 = vmatprep.subr.bf16.mxu1 %v3841_v11  ;;  %v1532_v14 = vld [vmem:[#allocation8 + $0x720] sm:$0xff]  ;;  %v3969_v11 = vpack.c.bf16 %v1543_v6, %v1533_v5  ;;  %v3855_v28 = vpack.c.bf16 %v1600_v12, %v1590_v10  ;;  %v3865_v5 = vpack.c.bf16 %v1661_v63, %v1651_v48  ;;  %v1650_v6 = vld [vmem:[#allocation8 + $0xad0] sm:$0xff]  ;;  %v1671_v12 = vld [vmem:[#allocation8 + $0xb78] sm:$0xff] }
 0x283   : > { %3958 = vmatprep.subr.bf16.mxu0 %v3957_v25  ;;  %v1553_v25 = vld [vmem:[#allocation8 + $0x7c8] sm:$0xff]  ;;  %v3971_v32 = vpack.c.bf16 %v1542_v16, %v1532_v14  ;;  %v1602_v10 = vld [vmem:[#allocation8 + $0x950] sm:$0xff]  ;;  %v1623_v16 = vld [vmem:[#allocation8 + $0x9f8] sm:$0xff] }
 0x284   : > { %v1681_v14 = vld [vmem:[#allocation8 + $0xbc8] sm:$0xff] }
 0x285   : > { %3844 = vmatpush1.bf16.msra.mxu1 %v3843_v34  ;;  %v1620_v34 = vld [vmem:[#allocation8 + $0x9e0] sm:$0xff] }
 0x286   : > { %3960 = vmatpush1.bf16.msra.mxu0 %v3959_v35  ;;  %3846 = vmatprep.subr.bf16.mxu1 %v3845_v36  ;;  %v1552_v35 = vld [vmem:[#allocation8 + $0x7c0] sm:$0xff]  ;;  %v3973_v36 = vpack.c.bf16 %v1563_v26, %v1553_v25  ;;  %v3859_v47 = vpack.c.bf16 %v1620_v34, %v1610_v31  ;;  %v3869_v25 = vpack.c.bf16 %v1681_v14, %v1671_v12  ;;  %v1670_v26 = vld [vmem:[#allocation8 + $0xb70] sm:$0xff]  ;;  %v1691_v34 = vld [vmem:[#allocation8 + $0xc18] sm:$0xff] }
 0x287   : > { %3962 = vmatprep.subr.bf16.mxu0 %v3961_v41  ;;  %v1573_v41 = vld [vmem:[#allocation8 + $0x868] sm:$0xff]  ;;  %v3975_v52 = vpack.c.bf16 %v1562_v37, %v1552_v35  ;;  %v1622_v31 = vld [vmem:[#allocation8 + $0x9f0] sm:$0xff]  ;;  %v1643_v37 = vld [vmem:[#allocation8 + $0xa98] sm:$0xff] }
 0x288   : > { %v1701_v35 = vld [vmem:[#allocation8 + $0xc68] sm:$0xff] }
 0x289   : > { %3848 = vmatpush1.bf16.msra.mxu1 %v3847_v58  ;;  %v1640_v58 = vld [vmem:[#allocation8 + $0xa80] sm:$0xff] }
 0x28a   : > { %3964 = vmatpush1.bf16.msra.mxu0 %v3963_v59  ;;  %3850 = vmatprep.subr.bf16.mxu1 %v3849_v60  ;;  %v1572_v59 = vld [vmem:[#allocation8 + $0x860] sm:$0xff]  ;;  %v3977_v60 = vpack.c.bf16 %v1583_v43, %v1573_v41  ;;  %v3863_v44 = vpack.c.bf16 %v1640_v58, %v1630_v18  ;;  %v3873_v41 = vpack.c.bf16 %v1701_v35, %v1691_v34  ;;  %v1690_v43 = vld [vmem:[#allocation8 + $0xc10] sm:$0xff]  ;;  %v1711_v58 = vld [vmem:[#allocation8 + $0xcb8] sm:$0xff] }
 0x28b   : > { %3966 = vmatprep.subr.bf16.mxu0 %v3965_v1  ;;  %v1593_v1 = vld [vmem:[#allocation8 + $0x908] sm:$0xff]  ;;  %v3979_v53 = vpack.c.bf16 %v1582_v61, %v1572_v59  ;;  %v1642_v18 = vld [vmem:[#allocation8 + $0xa90] sm:$0xff]  ;;  %v1663_v61 = vld [vmem:[#allocation8 + $0xb38] sm:$0xff] }
 0x28c   : > { %v1721_v59 = vld [vmem:[#allocation8 + $0xd08] sm:$0xff]  ;;  %v1703_v34 = vld [vmem:[#allocation8 + $0xc78] sm:$0xff] }
 0x28d   : > { %3852 = vmatpush1.bf16.msra.mxu1 %v3851_v7  ;;  %v1660_v7 = vld [vmem:[#allocation8 + $0xb20] sm:$0xff] }
 0x28e   : > { %3968 = vmatpush1.bf16.msra.mxu0 %v3967_v8  ;;  %3854 = vmatprep.subr.bf16.mxu1 %v3853_v9  ;;  %v1592_v8 = vld [vmem:[#allocation8 + $0x900] sm:$0xff]  ;;  %v3981_v9 = vpack.c.bf16 %v1603_v3, %v1593_v1  ;;  %v3867_v22 = vpack.c.bf16 %v1660_v7, %v1650_v6  ;;  %v1710_v1 = vld [vmem:[#allocation8 + $0xcb0] sm:$0xff]  ;;  %v1731_v7 = vld [vmem:[#allocation8 + $0xd58] sm:$0xff] }
 0x28f   : > { %3970 = vmatprep.subr.bf16.mxu0 %v3969_v11  ;;  %v1613_v11 = vld [vmem:[#allocation8 + $0x9a8] sm:$0xff]  ;;  %v3983_v23 = vpack.c.bf16 %v1602_v10, %v1592_v8  ;;  %v1720_v3 = vld [vmem:[#allocation8 + $0xd00] sm:$0xff]  ;;  %v1662_v6 = vld [vmem:[#allocation8 + $0xb30] sm:$0xff] }
 0x290   : > { %v1741_v8 = vld [vmem:[#allocation8 + $0xda8] sm:$0xff]  ;;  %v1683_v10 = vld [vmem:[#allocation8 + $0xbd8] sm:$0xff]  ;;  %v3879_v12 = vpack.c.bf16 %v1720_v3, %v1710_v1  ;;  %v1780_v1 = vld [vmem:[#allocation8 + $0xee0] sm:$0xff] }
 0x291   : > { %3856 = vmatpush1.bf16.msra.mxu1 %v3855_v28  ;;  %v1680_v28 = vld [vmem:[#allocation8 + $0xbc0] sm:$0xff] }
 0x292   : > { %3972 = vmatpush1.bf16.msra.mxu0 %v3971_v32  ;;  %3858 = vmatprep.subr.bf16.mxu1 %v3857_v33  ;;  %v1612_v32 = vld [vmem:[#allocation8 + $0x9a0] sm:$0xff]  ;;  %v3985_v33 = vpack.c.bf16 %v1623_v16, %v1613_v11  ;;  %v3871_v39 = vpack.c.bf16 %v1680_v28, %v1670_v26  ;;  %v3881_v11 = vpack.c.bf16 %v1741_v8, %v1731_v7  ;;  %v1730_v16 = vld [vmem:[#allocation8 + $0xd50] sm:$0xff]  ;;  %v1801_v7 = vld [vmem:[#allocation8 + $0xf88] sm:$0xff] }
 0x293   : > { %3974 = vmatprep.subr.bf16.mxu0 %v3973_v36  ;;  %v1633_v36 = vld [vmem:[#allocation8 + $0xa48] sm:$0xff]  ;;  %v3987_v40 = vpack.c.bf16 %v1622_v31, %v1612_v32  ;;  %v1682_v28 = vld [vmem:[#allocation8 + $0xbd0] sm:$0xff]  ;;  %v1751_v32 = vld [vmem:[#allocation8 + $0xdf8] sm:$0xff] }
 0x294   : > { %v1693_v31 = vld [vmem:[#allocation8 + $0xc28] sm:$0xff]  ;;  %v1712_v3 = vld [vmem:[#allocation8 + $0xcc0] sm:$0xff] }
 0x295   : > { %3860 = vmatpush1.bf16.msra.mxu1 %v3859_v47  ;;  %v1700_v47 = vld [vmem:[#allocation8 + $0xc60] sm:$0xff] }
 0x296   : > { %3976 = vmatpush1.bf16.msra.mxu0 %v3975_v52  ;;  %3862 = vmatprep.subr.bf16.mxu1 %v3861_v57  ;;  %v3989_v52 = vpack.c.bf16 %v1643_v37, %v1633_v36  ;;  %v1632_v57 = vld [vmem:[#allocation8 + $0xa40] sm:$0xff]  ;;  %v3875_v48 = vpack.c.bf16 %v1700_v47, %v1690_v43  ;;  %v1750_v36 = vld [vmem:[#allocation8 + $0xdf0] sm:$0xff]  ;;  %v4001_v43 = vpack.c.bf16 %v1703_v34, %v1693_v31  ;;  %v1821_v31 = vld [vmem:[#allocation8 + $0x1028] sm:$0xff] }
 0x297   : > { %3978 = vmatprep.subr.bf16.mxu0 %v3977_v60  ;;  %v1653_v60 = vld [vmem:[#allocation8 + $0xae8] sm:$0xff]  ;;  %v3991_v63 = vpack.c.bf16 %v1642_v18, %v1632_v57  ;;  %v1760_v37 = vld [vmem:[#allocation8 + $0xe40] sm:$0xff]  ;;  %v1702_v47 = vld [vmem:[#allocation8 + $0xc70] sm:$0xff] }
 0x298   : > { %2489 = vmatmul.mubr.f32.vlgmr.msra.gmra.mrb[10].mxu1 %v4950_v27  ;;  %v1781_v57 = vld [vmem:[#allocation8 + $0xee8] sm:$0xff]  ;;  %v4980_v8 = vld [vmem:[#allocation10] sm:$0xff] }
 0x299   : > { %3864 = vmatpush1.bf16.msra.mxu1 %v3863_v44  ;;  %2559 = vmatprep.mubr.f32.mxu1 %v4955_v15  ;;  %v1652_v44 = vld [vmem:[#allocation8 + $0xae0] sm:$0xff] }
 0x29a   : > { %3980 = vmatpush1.bf16.msra.mxu0 %v3979_v53  ;;  %3866 = vmatprep.subr.bf16.mxu1 %v3865_v5  ;;  %v3877_v53 = vpack.c.bf16 %v1721_v59, %v1711_v58  ;;  %v3993_v5 = vpack.c.bf16 %v1663_v61, %v1653_v60  ;;  %v3995_v14 = vpack.c.bf16 %v1662_v6, %v1652_v44  ;;  %v1713_v58 = vld [vmem:[#allocation8 + $0xcc8] sm:$0xff]  ;;  %v1723_v59 = vld [vmem:[#allocation8 + $0xd18] sm:$0xff] }
 0x29b   : > { %3982 = vmatprep.subr.bf16.mxu0 %v3981_v9  ;;  %v1673_v9 = vld [vmem:[#allocation8 + $0xb88] sm:$0xff]  ;;  %v3887_v60 = vpack.c.bf16 %v1760_v37, %v1750_v36  ;;  %v1791_v6 = vld [vmem:[#allocation8 + $0xf38] sm:$0xff] }
 0x29c   : > { %v3997_v26 = vpack.c.bf16 %v1683_v10, %v1673_v9  ;;  %v1733_v10 = vld [vmem:[#allocation8 + $0xd68] sm:$0xff] }
 0x29d   : > { %3868 = vmatpush1.bf16.msra.mxu1 %v3867_v22  ;;  %v1740_v22 = vld [vmem:[#allocation8 + $0xda0] sm:$0xff] }
 0x29e   : > { %3984 = vmatpush1.bf16.msra.mxu0 %v3983_v23  ;;  %3870 = vmatprep.subr.bf16.mxu1 %v3869_v25  ;;  %v1672_v23 = vld [vmem:[#allocation8 + $0xb80] sm:$0xff]  ;;  %v1948_v25 = vlaneseq }
 0x29f   : > { %3986 = vmatprep.subr.bf16.mxu0 %v3985_v33  ;;  %v1761_v33 = vld [vmem:[#allocation8 + $0xe48] sm:$0xff]  ;;  %v3999_v35 = vpack.c.bf16 %v1682_v28, %v1672_v23  ;;  %v1800_v23 = vld [vmem:[#allocation8 + $0xf80] sm:$0xff] }
 0x2a1   : > { %3872 = vmatpush1.bf16.msra.mxu1 %v3871_v39  ;;  %v1692_v39 = vld [vmem:[#allocation8 + $0xc20] sm:$0xff] }
 0x2a2   : > { %3988 = vmatpush1.bf16.msra.mxu0 %v3987_v40  ;;  %3874 = vmatprep.subr.bf16.mxu1 %v3873_v41  ;;  %v4975_v40 = vshrl.u32 %v1948_v25, 7  ;;  %v4003_v61 = vpack.c.bf16 %v1702_v47, %v1692_v39  ;;  %v1732_v25 = vld [vmem:[#allocation8 + $0xd60] sm:$0xff]  ;;  %v1810_v39 = vld [vmem:[#allocation8 + $0xfd0] sm:$0xff] }
 0x2a3   : > { %3990 = vmatprep.subr.bf16.mxu0 %v3989_v52  ;;  %v1771_v52 = vld [vmem:[#allocation8 + $0xe98] sm:$0xff]  ;;  %v1752_v47 = vld [vmem:[#allocation8 + $0xe00] sm:$0xff] }
 0x2a4   : > { %v4978_v44 = vsub.s32 0, %v4975_v40  ;;  %v4983_v9 = vsub.s32 1, %v4975_v40 }
 0x2a5   : > { %3876 = vmatpush1.bf16.msra.mxu1 %v3875_v48  ;;  %2631 = vmatmul.mubr.f32.vlgmr.msra.gmra.mrb[18].mxu0 %v4950_v27  ;;  %v3883_v27 = vpack.c.bf16 %v1740_v22, %v1730_v16  ;;  %v3889_v48 = vpack.c.bf16 %v1781_v57, %v1771_v52  ;;  %v3893_v16 = vpack.c.bf16 %v1801_v7, %v1791_v6  ;;  %v1790_v22 = vld [vmem:[#allocation8 + $0xf30] sm:$0xff] }
 0x2a6   : > { %3992 = vmatpush1.bf16.msra.mxu0 %v3991_v63  ;;  %2701 = vmatprep.mubr.f32.mxu0 %v4955_v15  ;;  %v3885_v15 = vpack.c.bf16 %v1761_v33, %v1751_v32  ;;  %v1770_v63 = vld [vmem:[#allocation8 + $0xe90] sm:$0xff]  ;;  %v1811_v33 = vld [vmem:[#allocation8 + $0xfd8] sm:$0xff]  ;;  %v1955_v34 = vrot.slane %v4980_v8, %v4983_v9 }
 0x2a7   : > { %3878 = vmatprep.subr.bf16.mxu1 %v3877_v53  ;;  %3994 = vmatprep.subr.bf16.mxu0 %v3993_v5  ;;  %v4005_v53 = vpack.c.bf16 %v1723_v59, %v1713_v58  ;;  %v1722_v5 = vld [vmem:[#allocation8 + $0xd10] sm:$0xff]  ;;  %v3897_v37 = vpack.c.bf16 %v1821_v31, %v1811_v33  ;;  %v1831_v59 = vld [vmem:[#allocation8 + $0x1078] sm:$0xff]  ;;  %v1860_v31 = vld [vmem:[#allocation8 + $0x1160] sm:$0xff] }
 0x2a8   : > { %v1742_v32 = vld [vmem:[#allocation8 + $0xdb0] sm:$0xff] }
 0x2a9   : > { %3880 = vmatpush1.bf16.msra.mxu1 %v3879_v12  ;;  %v1743_v12 = vld [vmem:[#allocation8 + $0xdb8] sm:$0xff]  ;;  %v4011_v36 = vpack.c.bf16 %v1742_v32, %v1732_v25  ;;  %v1762_v58 = vld [vmem:[#allocation8 + $0xe50] sm:$0xff] }
 0x2aa   : > { %3996 = vmatpush1.bf16.msra.mxu0 %v3995_v14  ;;  %3882 = vmatprep.subr.bf16.mxu1 %v3881_v11  ;;  %v3891_v14 = vpack.c.bf16 %v1780_v1, %v1770_v63  ;;  %v4007_v11 = vpack.c.bf16 %v1722_v5, %v1712_v3  ;;  %v4009_v28 = vpack.c.bf16 %v1743_v12, %v1733_v10  ;;  %v1773_v63 = vld [vmem:[#allocation8 + $0xea8] sm:$0xff]  ;;  %v1783_v1 = vld [vmem:[#allocation8 + $0xef8] sm:$0xff]  ;;  %v1830_v10 = vld [vmem:[#allocation8 + $0x1070] sm:$0xff] }
 0x2ab   : > { %v2064_v41 = vpop.f32.mrb[6].mxu1  ;;  %3998 = vmatprep.subr.bf16.mxu0 %v3997_v26  ;;  %v1951_v26 = vrot.slane %v4980_v8, %v4978_v44  ;;  %v4015_v7 = vpack.c.bf16 %v1762_v58, %v1752_v47  ;;  %v1840_v12 = vld [vmem:[#allocation8 + $0x10c0] sm:$0xff]  ;;  %v1803_v25 = vld [vmem:[#allocation8 + $0xf98] sm:$0xff]  ;;  %v1850_v33 = vld [vmem:[#allocation8 + $0x1110] sm:$0xff] }
 0x2ac   : > { %v2066_v18 = vpop.f32.mrb[7].mxu1  ;;  %v1880_v58 = vld [vmem:[#allocation8 + $0x1200] sm:$0xff] }
 0x2ad   : > { %3884 = vmatpush1.bf16.msra.mxu1 %v3883_v27  ;;  %v1753_v27 = vld [vmem:[#allocation8 + $0xe08] sm:$0xff]  ;;  %v2065_v52 = vadd.f32 %v2064_v41, %v1951_v26  ;;  %v3903_v26 = vpack.c.bf16 %v1840_v12, %v1830_v10  ;;  %v1890_v10 = vld [vmem:[#allocation8 + $0x1250] sm:$0xff]  ;;  %v1900_v12 = vld [vmem:[#allocation8 + $0x12a0] sm:$0xff] }
 0x2ae   : > { %4000 = vmatpush1.bf16.msra.mxu0 %v3999_v35  ;;  %3886 = vmatprep.subr.bf16.mxu1 %v3885_v15  ;;  %v1763_v35 = vld [vmem:[#allocation8 + $0xe58] sm:$0xff]  ;;  %v3895_v15 = vpack.c.bf16 %v1800_v23, %v1790_v22  ;;  %v1861_v22 = vld [vmem:[#allocation8 + $0x1168] sm:$0xff] }
 0x2af   : > { %4002 = vmatprep.subr.bf16.mxu0 %v4001_v43  ;;  %v1820_v43 = vld [vmem:[#allocation8 + $0x1020] sm:$0xff]  ;;  %v4013_v57 = vpack.c.bf16 %v1763_v35, %v1753_v27  ;;  %v1793_v23 = vld [vmem:[#allocation8 + $0xf48] sm:$0xff]  ;;  %v1802_v35 = vld [vmem:[#allocation8 + $0xf90] sm:$0xff] }
 0x2b0   : > { %v3899_v5 = vpack.c.bf16 %v1820_v43, %v1810_v39  ;;  %v4021_v27 = vpack.c.bf16 %v1803_v25, %v1793_v23  ;;  %v1823_v39 = vld [vmem:[#allocation8 + $0x1038] sm:$0xff]  ;;  %v3907_v43 = vpack.c.bf16 %v1860_v31, %v1850_v33  ;;  %v1853_v23 = vld [vmem:[#allocation8 + $0x1128] sm:$0xff]  ;;  %v1910_v33 = vld [vmem:[#allocation8 + $0x12f0] sm:$0xff] }
 0x2b1   : > { %3888 = vmatpush1.bf16.msra.mxu1 %v3887_v60  ;;  %v1841_v60 = vld [vmem:[#allocation8 + $0x10c8] sm:$0xff]  ;;  %v1863_v25 = vld [vmem:[#allocation8 + $0x1178] sm:$0xff]  ;;  %v1920_v31 = vld [vmem:[#allocation8 + $0x1340] sm:$0xff] }
 0x2b2   : > { %4004 = vmatpush1.bf16.msra.mxu0 %v4003_v61  ;;  %3890 = vmatprep.subr.bf16.mxu1 %v3889_v48  ;;  %v2067_v61 = vadd.f32 %v2066_v18, %v1955_v34  ;;  %v3901_v41 = vpack.c.bf16 %v1841_v60, %v1831_v59  ;;  %v1782_v18 = vld [vmem:[#allocation8 + $0xef0] sm:$0xff]  ;;  %v1792_v34 = vld [vmem:[#allocation8 + $0xf40] sm:$0xff] }
 0x2b3   : > { %4006 = vmatprep.subr.bf16.mxu0 %v4005_v53  ;;  %v4023_v47 = vpack.c.bf16 %v1802_v35, %v1792_v34  ;;  %v1812_v59 = vld [vmem:[#allocation8 + $0xfe0] sm:$0xff]  ;;  %v1862_v35 = vld [vmem:[#allocation8 + $0x1170] sm:$0xff] }
 0x2b4   : > { %v1852_v34 = vld [vmem:[#allocation8 + $0x1120] sm:$0xff] }
 0x2b5   : > { %3892 = vmatpush1.bf16.msra.mxu1 %v3891_v14  ;;  %v1772_v14 = vld [vmem:[#allocation8 + $0xea0] sm:$0xff] }
 0x2b6   : > { %4008 = vmatpush1.bf16.msra.mxu0 %v4007_v11  ;;  %3894 = vmatprep.subr.bf16.mxu1 %v3893_v16  ;;  %v4017_v11 = vpack.c.bf16 %v1783_v1, %v1773_v63  ;;  %v1851_v16 = vld [vmem:[#allocation8 + $0x1118] sm:$0xff]  ;;  %v1901_v63 = vld [vmem:[#allocation8 + $0x12a8] sm:$0xff] }
 0x2b7   : > { %4010 = vmatprep.subr.bf16.mxu0 %v4009_v28  ;;  %v4019_v28 = vpack.c.bf16 %v1782_v18, %v1772_v14  ;;  %v3905_v32 = vpack.c.bf16 %v1861_v22, %v1851_v16  ;;  %v1833_v1 = vld [vmem:[#allocation8 + $0x1088] sm:$0xff]  ;;  %v1832_v14 = vld [vmem:[#allocation8 + $0x1080] sm:$0xff]  ;;  %v1842_v18 = vld [vmem:[#allocation8 + $0x10d0] sm:$0xff] }
 0x2b8   : > { %v2135_v48 = vpop.f32.mrb[14].mxu0  ;;  %v1911_v16 = vld [vmem:[#allocation8 + $0x12f8] sm:$0xff]  ;;  %v1921_v22 = vld [vmem:[#allocation8 + $0x1348] sm:$0xff] }
 0x2b9   : > { %v4989_v3 = vadd.f32 %v2135_v48, %v2065_v52  ;;  %3896 = vmatpush1.bf16.msra.mxu1 %v3895_v15  ;;  %v2137_v53 = vpop.f32.mrb[15].mxu0  ;;  %v1871_v15 = vld [vmem:[#allocation8 + $0x11b8] sm:$0xff] }
 0x2ba   : > { %v4991_v6 = vadd.f32 %v2137_v53, %v2067_v61  ;;  %4012 = vmatpush1.bf16.msra.mxu0 %v4011_v36  ;;  %3898 = vmatprep.subr.bf16.mxu1 %v3897_v37  ;;  %v1881_v36 = vld [vmem:[#allocation8 + $0x1208] sm:$0xff]  ;;  %v1822_v61 = vld [vmem:[#allocation8 + $0x1030] sm:$0xff]  ;;  %v1891_v48 = vld [vmem:[#allocation8 + $0x1258] sm:$0xff] }
 0x2bb   : > { %4014 = vmatprep.subr.bf16.mxu0 %v4013_v57  ;;  %v1813_v37 = vld [vmem:[#allocation8 + $0xfe8] sm:$0xff]  ;;  %v3909_v52 = vpack.c.bf16 %v1881_v36, %v1871_v15  ;;  %v1870_v57 = vld [vmem:[#allocation8 + $0x11b0] sm:$0xff]  ;;  %v1843_v53 = vld [vmem:[#allocation8 + $0x10d8] sm:$0xff] }
 0x2bc   : > { %v4025_v60 = vpack.c.bf16 %v1823_v39, %v1813_v37  ;;  %v1931_v15 = vld [vmem:[#allocation8 + $0x1398] sm:$0xff]  ;;  %v1941_v36 = vld [vmem:[#allocation8 + $0x13e8] sm:$0xff] }
 0x2bd   : > { %3900 = vmatpush1.bf16.msra.mxu1 %v3899_v5  ;;  %v3911_v5 = vpack.c.bf16 %v1880_v58, %v1870_v57  ;;  %v1873_v37 = vld [vmem:[#allocation8 + $0x11c8] sm:$0xff]  ;;  %v1883_v39 = vld [vmem:[#allocation8 + $0x1218] sm:$0xff]  ;;  %v1930_v57 = vld [vmem:[#allocation8 + $0x1390] sm:$0xff] }
 0x2be   : > { %4016 = vmatpush1.bf16.msra.mxu0 %v4015_v7  ;;  %3902 = vmatprep.subr.bf16.mxu1 %v3901_v41  ;;  %v4027_v7 = vpack.c.bf16 %v1822_v61, %v1812_v59  ;;  %v3913_v41 = vpack.c.bf16 %v1901_v63, %v1891_v48  ;;  %v1940_v58 = vld [vmem:[#allocation8 + $0x13e0] sm:$0xff]  ;;  %v4037_v59 = vpack.c.bf16 %v1883_v39, %v1873_v37  ;;  %v1882_v61 = vld [vmem:[#allocation8 + $0x1210] sm:$0xff]  ;;  %v1893_v48 = vld [vmem:[#allocation8 + $0x1268] sm:$0xff] }
 0x2bf   : > { %4018 = vmatprep.subr.bf16.mxu0 %v4017_v11  ;;  %v4029_v11 = vpack.c.bf16 %v1843_v53, %v1833_v1  ;;  %v1903_v63 = vld [vmem:[#allocation8 + $0x12b8] sm:$0xff]  ;;  %v3923_v1 = vpack.c.bf16 %v1940_v58, %v1930_v57 }
 0x2c1   : > { %3904 = vmatpush1.bf16.msra.mxu1 %v3903_v26  ;;  %v3915_v26 = vpack.c.bf16 %v1900_v12, %v1890_v10  ;;  %v1913_v10 = vld [vmem:[#allocation8 + $0x1308] sm:$0xff]  ;;  %v1923_v12 = vld [vmem:[#allocation8 + $0x1358] sm:$0xff] }
 0x2c2   : > { %4020 = vmatpush1.bf16.msra.mxu0 %v4019_v28  ;;  %3906 = vmatprep.subr.bf16.mxu1 %v3905_v32  ;;  %v4031_v28 = vpack.c.bf16 %v1842_v18, %v1832_v14  ;;  %v3917_v32 = vpack.c.bf16 %v1921_v22, %v1911_v16  ;;  %v1912_v18 = vld [vmem:[#allocation8 + $0x1300] sm:$0xff]  ;;  %v1922_v16 = vld [vmem:[#allocation8 + $0x1350] sm:$0xff]  ;;  %v1933_v22 = vld [vmem:[#allocation8 + $0x13a8] sm:$0xff] }
 0x2c3   : > { %4022 = vmatprep.subr.bf16.mxu0 %v4021_v27  ;;  %v4033_v27 = vpack.c.bf16 %v1863_v25, %v1853_v23  ;;  %v1943_v23 = vld [vmem:[#allocation8 + $0x13f8] sm:$0xff]  ;;  %v4047_v25 = vpack.c.bf16 %v1922_v16, %v1912_v18 }
 0x2c5   : > { %3908 = vmatpush1.bf16.msra.mxu1 %v3907_v43  ;;  %v3919_v43 = vpack.c.bf16 %v1920_v31, %v1910_v33  ;;  %v3387_v31 = vmul.f32 -1.442695, %v4989_v3 }
 0x2c6   : > { %4024 = vmatpush1.bf16.msra.mxu0 %v4023_v47  ;;  %3910 = vmatprep.subr.bf16.mxu1 %v3909_v52  ;;  %v4035_v47 = vpack.c.bf16 %v1862_v35, %v1852_v34  ;;  %v3921_v52 = vpack.c.bf16 %v1941_v36, %v1931_v15  ;;  %v1958_v34 = vsub.s32 2, %v4975_v40  ;;  %v1962_v35 = vsub.s32 3, %v4975_v40 }
 0x2c7   : > { %4026 = vmatprep.subr.bf16.mxu0 %v4025_v60  ;;  %v1872_v60 = vld [vmem:[#allocation8 + $0x11c0] sm:$0xff]  ;;  %4173 = vpow2.f32 %v3387_v31 }
 0x2c8   : > { %v4039_v53 = vpack.c.bf16 %v1882_v61, %v1872_v60  ;;  %v1959_v15 = vrot.slane %v4980_v8, %v1958_v34  ;;  %v1963_v36 = vrot.slane %v4980_v8, %v1962_v35 }
 0x2c9   : > { %3912 = vmatpush1.bf16.msra.mxu1 %v3911_v5  ;;  %v4041_v5 = vpack.c.bf16 %v1903_v63, %v1893_v48 }
 0x2ca   : > { %4028 = vmatpush1.bf16.msra.mxu0 %v4027_v7  ;;  %3914 = vmatprep.subr.bf16.mxu1 %v3913_v41  ;;  %v1892_v7 = vld [vmem:[#allocation8 + $0x1260] sm:$0xff]  ;;  %v1902_v41 = vld [vmem:[#allocation8 + $0x12b0] sm:$0xff] }
 0x2cb   : > { %4030 = vmatprep.subr.bf16.mxu0 %v4029_v11  ;;  %v4043_v14 = vpack.c.bf16 %v1902_v41, %v1892_v7  ;;  %v4045_v11 = vpack.c.bf16 %v1923_v12, %v1913_v10 }
 0x2cd   : > { %3916 = vmatpush1.bf16.msra.mxu1 %v3915_v26  ;;  %v4049_v26 = vpack.c.bf16 %v1943_v23, %v1933_v22 }
 0x2ce   : > { %4032 = vmatpush1.bf16.msra.mxu0 %v4031_v28  ;;  %3918 = vmatprep.subr.bf16.mxu1 %v3917_v32  ;;  %v1932_v28 = vld [vmem:[#allocation8 + $0x13a0] sm:$0xff]  ;;  %v1942_v32 = vld [vmem:[#allocation8 + $0x13f0] sm:$0xff] }
 0x2cf   : > { %4034 = vmatprep.subr.bf16.mxu0 %v4033_v27  ;;  %v4051_v33 = vpack.c.bf16 %v1942_v32, %v1932_v28  ;;  %v3388_v27 = vmul.f32 -1.442695, %v4991_v6 }
 0x2d1   : > { %3920 = vmatpush1.bf16.msra.mxu1 %v3919_v43  ;;  %4175 = vpow2.f32 %v3388_v27  ;;  %v4174_v3 = vpop.eup %4173 }
 0x2d2   : > { %4036 = vmatpush1.bf16.msra.mxu0 %v4035_v47  ;;  %3922 = vmatprep.subr.bf16.mxu1 %v3921_v52  ;;  %v2738_v58 = vadd.f32 1.0, %v4174_v3 }
 0x2d3   : > { %4038 = vmatprep.subr.bf16.mxu0 %v4037_v59 }
 0x2d5   : > { %3924 = vmatpush1.bf16.msra.mxu1 %v3923_v1 }
 0x2d6   : > { %4040 = vmatpush1.bf16.msra.mxu0 %v4039_v53 }
 0x2d7   : > { %4042 = vmatprep.subr.bf16.mxu0 %v4041_v5 }
 0x2d8   : > { %2560 = vmatmul.mubr.f32.vlgmr.msra.gmra.mrb[10].mxu1 %v4959_v30 }
 0x2d9   : > { %2971 = vmatprep.mubr.f32.mxu1 %v4477_v0 }
 0x2da   : > { %4044 = vmatpush1.bf16.msra.mxu0 %v4043_v14 }
 0x2db   : > { %4046 = vmatprep.subr.bf16.mxu0 %v4045_v11  ;;  %v4176_v57 = vpop.eup %4175 }
 0x2dc   : > { %v2739_v6 = vadd.f32 1.0, %v4176_v57 }
 0x2de   : > { %4048 = vmatpush1.bf16.msra.mxu0 %v4047_v25 }
 0x2df   : > { %4050 = vmatprep.subr.bf16.mxu0 %v4049_v26 }
 0x2e2   : > { %4052 = vmatpush1.bf16.msra.mxu0 %v4051_v33 }
 0x2e5   : > { %2702 = vmatmul.mubr.f32.vlgmr.msra.gmra.mrb[18].mxu0 %v4959_v30 }
 0x32b   : > { %v2277_v37 = vpop.f32.mrb[8].mxu1 }
 0x32c   : > { %v4057_v39 = vadd.f32 %v2277_v37, %v1959_v15  ;;  %v2279_v43 = vpop.f32.mrb[9].mxu1 }
 0x32d   : > { %v4058_v47 = vadd.f32 %v2279_v43, %v1963_v36  ;;  %v1978_v43 = vsub.s32 7, %v4975_v40 }
 0x32e   : > { %v3389_v52 = vmul.f32 -1.442695, %v4057_v39  ;;  %v1974_v39 = vsub.s32 6, %v4975_v40 }
 0x32f   : > { %v3390_v30 = vmul.f32 -1.442695, %v4058_v47 }
 0x330   : > { %4177 = vpow2.f32 %v3389_v52  ;;  %v1975_v47 = vrot.slane %v4980_v8, %v1974_v39  ;;  %v1979_v52 = vrot.slane %v4980_v8, %v1978_v43 }
 0x331   : > { %4179 = vpow2.f32 %v3390_v30 }
 0x332   : > { %4181 = vrcp.f32 %v2738_v58 }
 0x333   : > { %4183 = vrcp.f32 %v2739_v6 }
 0x338   : > { %v2419_v59 = vpop.f32.mrb[16].mxu0 }
 0x339   : > { %v2421_v60 = vpop.f32.mrb[17].mxu0 }
 0x33a   : > { %v4178_v61 = vpop.eup %4177 }
 0x33b   : > { %v4180_v48 = vpop.eup %4179  ;;  %v2740_v63 = vadd.f32 1.0, %v4178_v61 }
 0x33c   : > { %v2741_v1 = vadd.f32 1.0, %v4180_v48  ;;  %v4182_v53 = vpop.eup %4181  ;;  %v1945_v48 = vld [vmem:[#allocation10 + $0x8] sm:$0x3] }
 0x33d   : > { %4185 = vrcp.f32 %v2740_v63  ;;  %v4184_v5 = vpop.eup %4183  ;;  %v2771_v7 = vrot.slane %v4182_v53, %v4978_v44  ;;  %v2829_v41 = vrot.slane %v4182_v53, %v4983_v9  ;;  %v1987_v53 = vrot.slane %v1945_v48, %v4983_v9 }
 0x33e   : > { %4187 = vrcp.f32 %v2741_v1  ;;  %v2775_v12 = vrot.slane %v4184_v5, %v4978_v44  ;;  %v2833_v14 = vrot.slane %v4184_v5, %v4983_v9 }
 0x33f   : > { %v2776_v25 = vmul.f32 %v2771_v7, %v4865_v49  ;;  %v2834_v26 = vmul.f32 %v2829_v41, %v4897_v13  ;;  %v1970_v13 = vsub.s32 5, %v4975_v40 }
 0x340   : > { %v2777_v33 = vmul.f32 %v2775_v12, %v4871_v54  ;;  %v2835_v34 = vmul.f32 %v2833_v14, %v4907_v19 }
 0x347   : > { %v4186_v10 = vpop.eup %4185 }
 0x348   : > { %v4188_v11 = vpop.eup %4187  ;;  %v2781_v18 = vrot.slane %v4186_v10, %v4978_v44  ;;  %v2839_v16 = vrot.slane %v4186_v10, %v4983_v9 }
 0x349   : > { %v2785_v22 = vrot.slane %v4188_v11, %v4978_v44  ;;  %v2843_v23 = vrot.slane %v4188_v11, %v4983_v9 }
 0x34a   : > { %v2786_v28 = vmul.f32 %v2781_v18, %v4861_v45  ;;  %v2844_v32 = vmul.f32 %v2839_v16, %v4899_v4  ;;  %v1966_v45 = vsub.s32 4, %v4975_v40  ;;  %v1983_v40 = vrot.slane %v1945_v48, %v4978_v44 }
 0x34b   : > { %v2787_v31 = vmul.f32 %v2785_v22, %v4863_v46  ;;  %v2845_v27 = vmul.f32 %v2843_v23, %v4909_v20  ;;  %v1971_v46 = vrot.slane %v4980_v8, %v1970_v13 }
 0x34c   : > { %v5018_v35 = vadd.f32 %v2786_v28, %v2776_v25  ;;  %v5020_v15 = vadd.f32 %v2844_v32, %v2834_v26  ;;  %v1967_v54 = vrot.slane %v4980_v8, %v1966_v45 }
 0x34d   : > { %v5022_v36 = vadd.f32 %v2787_v31, %v2777_v33  ;;  %v5024_v49 = vadd.f32 %v2845_v27, %v2835_v34  ;;  %v4060_v19 = vadd.f32 %v2421_v60, %v1971_v46 }
 0x34e   : > { %v4059_v4 = vadd.f32 %v2419_v59, %v1967_v54 }
 0x34f   : > { %v3392_v20 = vmul.f32 -1.442695, %v4060_v19 }
 0x350   : > { %v3391_v37 = vmul.f32 -1.442695, %v4059_v4 }
 0x352   : > { %4189 = vpow2.f32 %v3391_v37 }
 0x353   : > { %4191 = vpow2.f32 %v3392_v20 }
 0x35c   : > { %v4190_v59 = vpop.eup %4189 }
 0x35d   : > { %v4192_v60 = vpop.eup %4191  ;;  %v2742_v63 = vadd.f32 1.0, %v4190_v59 }
 0x35e   : > { %v2743_v1 = vadd.f32 1.0, %v4192_v60 }
 0x3ab   : > { %v2561_v30 = vpop.f32.mrb[10].mxu1 }
 0x3ac   : > { %v4061_v3 = vadd.f32 %v2561_v30, %v1975_v47  ;;  %v2563_v57 = vpop.f32.mrb[11].mxu1 }
 0x3ad   : > { %v4062_v58 = vadd.f32 %v2563_v57, %v1979_v52 }
 0x3ae   : > { %v3393_v6 = vmul.f32 -1.442695, %v4061_v3 }
 0x3af   : > { %v3394_v61 = vmul.f32 -1.442695, %v4062_v58 }
 0x3b0   : > { %4193 = vpow2.f32 %v3393_v6 }
 0x3b1   : > { %4195 = vpow2.f32 %v3394_v61 }
 0x3b2   : > { %4197 = vrcp.f32 %v2742_v63 }
 0x3b3   : > { %4199 = vrcp.f32 %v2743_v1 }
 0x3b8   : > { %v2703_v5 = vpop.f32.mrb[18].mxu0 }
 0x3b9   : > { %v4063_v8 = vadd.f32 %v2703_v5, %v1983_v40  ;;  %v2705_v7 = vpop.f32.mrb[19].mxu0  ;;  %v489_v5 = vld [vmem:[%s4785_s24] sm:$0xff] }
 0x3ba   : > { %v4194_v41 = vpop.eup %4193  ;;  %v4064_v10 = vadd.f32 %v2705_v7, %v1987_v53  ;;  %v2884_v53 = vld [vmem:[%s5139_s6] sm:$0xff] }
 0x3bb   : > { %v4196_v12 = vpop.eup %4195  ;;  %v2744_v14 = vadd.f32 1.0, %v4194_v41  ;;  %v3395_v11 = vmul.f32 -1.442695, %v4063_v8 }
 0x3bc   : > { %v2745_v18 = vadd.f32 1.0, %v4196_v12  ;;  %v3396_v16 = vmul.f32 -1.442695, %v4064_v10  ;;  %v4198_v22 = vpop.eup %4197 }
 0x3bd   : > { %4201 = vrcp.f32 %v2744_v14  ;;  %v4200_v23 = vpop.eup %4199  ;;  %v2791_v25 = vrot.slane %v4198_v22, %v4978_v44  ;;  %v2849_v26 = vrot.slane %v4198_v22, %v4983_v9  ;;  %v492_v14 = vld [vmem:[%s4785_s24 + $0x18] sm:$0xff] }
 0x3be   : > { %4203 = vrcp.f32 %v2745_v18  ;;  %v2795_v28 = vrot.slane %v4200_v23, %v4978_v44  ;;  %v2853_v33 = vrot.slane %v4200_v23, %v4983_v9  ;;  %v3053_v18 = vld [vmem:[#allocation11] sm:$0xff] }
 0x3bf   : > { %4205 = vpow2.f32 %v3395_v11  ;;  %v2796_v13 = vmul.f32 %v2791_v25, %v4867_v50  ;;  %v2854_v54 = vmul.f32 %v2849_v26, %v4903_v17 }
 0x3c0   : > { %4207 = vpow2.f32 %v3396_v16  ;;  %v2797_v43 = vmul.f32 %v2795_v28, %v4873_v55  ;;  %v2855_v30 = vmul.f32 %v2853_v33, %v4911_v21  ;;  %v491_v16 = vld [vmem:[%s4785_s24 + $0x10] sm:$0xff] }
 0x3c7   : > { %v4202_v32 = vpop.eup %4201 }
 0x3c8   : > { %v4204_v31 = vpop.eup %4203  ;;  %v2801_v34 = vrot.slane %v4202_v32, %v4978_v44  ;;  %v2859_v27 = vrot.slane %v4202_v32, %v4983_v9 }
 0x3c9   : > { %v4206_v45 = vpop.eup %4205  ;;  %v2805_v46 = vrot.slane %v4204_v31, %v4978_v44  ;;  %v2863_v4 = vrot.slane %v4204_v31, %v4983_v9 }
 0x3ca   : > { %v4208_v19 = vpop.eup %4207  ;;  %v2806_v37 = vmul.f32 %v2801_v34, %v4869_v51  ;;  %v2864_v20 = vmul.f32 %v2859_v27, %v4913_v24  ;;  %v2746_v39 = vadd.f32 1.0, %v4206_v45 }
 0x3cb   : > { %v2747_v47 = vadd.f32 1.0, %v4208_v19  ;;  %v2807_v52 = vmul.f32 %v2805_v46, %v4875_v56  ;;  %v2865_v50 = vmul.f32 %v2863_v4, %v4919_v29 }
 0x3cc   : > { %4209 = vrcp.f32 %v2746_v39  ;;  %v2820_v17 = vadd.f32 %v2806_v37, %v2796_v13  ;;  %v2878_v3 = vadd.f32 %v2864_v20, %v2854_v54 }
 0x3cd   : > { %4211 = vrcp.f32 %v2747_v47  ;;  %v2821_v57 = vadd.f32 %v2807_v52, %v2797_v43  ;;  %v2879_v58 = vadd.f32 %v2865_v50, %v2855_v30 }
 0x3ce   : > { %v2822_v51 = vadd.f32 %v2820_v17, %v5018_v35  ;;  %v2880_v24 = vadd.f32 %v2878_v3, %v5020_v15 }
 0x3cf   : > { %v2823_v6 = vadd.f32 %v2821_v57, %v5022_v36  ;;  %v2881_v55 = vadd.f32 %v2879_v58, %v5024_v49 }
 0x3d6   : > { %v4210_v61 = vpop.eup %4209 }
 0x3d7   : > { %v4212_v56 = vpop.eup %4211  ;;  %v2811_v21 = vrot.slane %v4210_v61, %v4978_v44  ;;  %v2869_v29 = vrot.slane %v4210_v61, %v4983_v9 }
 0x3d8   : > { %v2815_v59 = vrot.slane %v4212_v56, %v4978_v44  ;;  %v2873_v60 = vrot.slane %v4212_v56, %v4983_v9  ;;  %v490_v44 = vld [vmem:[%s4785_s24 + $0x8] sm:$0xff]  ;;  %s4385_s24 = scalar_lea.vmem %s5091_s4, 512 }
 0x3d9   : > { %v2816_v48 = vmul.f32 %v2811_v21, %v4885_v62  ;;  %v2874_v35 = vmul.f32 %v2869_v29, %v4933_v38  ;;  %v3054_v62 = vld [vmem:[%s5142_s9] sm:$0xff]  ;;  %p4386_p1 = scmp.ne.s32.totalorder %s5091_s4, %s4385_s24  ;;  %p4393_p11 = scmp.lt.s32.totalorder %s4391_s22, %s4385_s24 }
 0x3da   : > { %v2817_v15 = vmul.f32 %v2815_v59, %v4887_v2  ;;  %v2875_v36 = vmul.f32 %v2873_v60, %v4936_v42  ;;  %3057 = vperm.xlu1 %4172, %v3054_v62   ;;  %v2889_v2 = vpop.permute.xlu0 %2888 }
 0x3db   : > { %v2824_v63 = vadd.f32 %v2822_v51, %v2816_v48  ;;  %v2882_v49 = vadd.f32 %v2880_v24, %v2874_v35  ;;  %p4387_p13 = pnand %p4386_p1, %p5176_p3  ;;  %p4394_p9 = por %p4393_p11, %p4392_p6 }
 0x3dc   : > { %v2825_v1 = vadd.f32 %v2823_v6, %v2817_v15  ;;  %v2883_v40 = vadd.f32 %v2881_v55, %v2875_v36 }
 0x3dd   : > { %p4388_p0 = pneg %p4387_p13 }
 0x3de   : > { %3397 = vmatprep.subr.msk.mxu1 %vm1230_vm1, %v2825_v1 }
 0x3df   : > { %3398 = vmatpush1.msk.msra.mxu1 %vm1230_vm1, %v2824_v63  ;;  %p4395_p10 = pnand %p4394_p9, %p4388_p0 }
 0x3e0   : > { %3399 = vmatmul.mubr.msk.f32.vlgmr.msra.gmra.mrb[12].mxu1 %vm2891_vm3, %v2884_v53  ;;  %3400 = vmatprep.subr.msk.mxu1 %vm1230_vm1, %v2883_v40 }
 0x3e1   : > { %3401 = vmatpush1.msk.msra.mxu1 %vm1230_vm1, %v2882_v49  ;;  %3042 = vmatprep.mubr.f32.mxu1 %v4477_v0 }
 0x3e4   : > { %3402 = vmatmul.mubr.msk.f32.vlgmr.msra.gmra.mrb[14].mxu1 %vm2891_vm3, %v2884_v53 }
 0x3e5   : > { %3127 = vmatprep.mubr.f32.mxu1 %v4477_v0 }
 0x459   : > { %v3058_v26 = vpop.permute.xlu1 %3057 }
 0x4b3   : > { %v2973_v38 = vpop.f32.mrb[12].mxu1 }
 0x4b4   : > { %v2974_v42 = vadd.f32 %v2973_v38, %v2889_v2  ;;  %v2975_v9 = vpop.f32.mrb[13].mxu1 }
 0x4b5   : > { %v2976_v8 = vadd.f32 %v2975_v9, %v2889_v2 }
 0x4b6   : > { %v3049_v10 = vmul.f32 %v2974_v42, %v489_v5 }
 0x4b7   : > { %v3050_v7 = vmul.f32 %v2976_v8, %v490_v44  ;;  %v3044_v41 = vpop.f32.mrb[14].mxu1 }
 0x4b8   : > { %v3045_v12 = vadd.f32 %v3044_v41, %v2889_v2  ;;  %v3046_v11 = vpop.f32.mrb[15].mxu1 }
 0x4b9   : > { %v3047_v22 = vadd.f32 %v3046_v11, %v2889_v2  ;;  %3063 = vmatprep.subr.mxu1 %v3050_v7 }
 0x4ba   : > { %3064 = vmatpush1.msra.mxu1 %v3049_v10  ;;  %v3051_v25 = vmul.f32 %v3045_v12, %v491_v16 }
 0x4bb   : > { %v3052_v23 = vmul.f32 %v3047_v22, %v492_v14  ;;  %3403 = vmatmul.mubr.msk.f32.vlgmr.msra.gmra.mrb[16].mxu1 %vm500_vm0, %v3053_v18 }
 0x4bc   : > { %3198 = vmatprep.mubr.f32.mxu1 %v4477_v0 }
 0x4bd   : > { %3134 = vmatprep.subr.mxu1 %v3052_v23 }
 0x4be   : > { %3135 = vmatpush1.msra.mxu1 %v3051_v25 }
 0x4bf   : > { %3404 = vmatmul.mubr.msk.f32.vlgmr.msra.gmra.mrb[18].mxu1 %vm500_vm0, %v3053_v18 }
 0x58e   : > { %v3129_v28 = vpop.f32.mrb[16].mxu1 }
 0x58f   : > { %v3130_v32 = vadd.f32 %v3129_v28, %v3058_v26  ;;  %v3131_v33 = vpop.f32.mrb[17].mxu1 }
 0x590   : > { %v3132_v31 = vadd.f32 %v3131_v33, %v3058_v26 }
 0x591   : > { %v3205_v34 = vadd.f32 %v3130_v32, %v489_v5 }
 0x592   : > { %v3206_v27 = vadd.f32 %v3132_v31, %v490_v44  ;;  %v3200_v45 = vpop.f32.mrb[18].mxu1 }
 0x593   : > { %3209 = vst [vmem:[%s465_s17] sm:$0xff] %v3205_v34  ;;  %v3201_v13 = vadd.f32 %v3200_v45, %v3058_v26  ;;  %v3202_v0 = vpop.f32.mrb[19].mxu1 }
 0x594   : > { %3210 = vst [vmem:[%s465_s17 + $0x8] sm:$0xff] %v3206_v27  ;;  %v3203_v54 = vadd.f32 %v3202_v0, %v3058_v26 }
 0x595   : > { %v3207_v46 = vadd.f32 %v3201_v13, %v491_v16 }
 0x596   : > { %v3208_v4 = vadd.f32 %v3203_v54, %v492_v14 }
 0x597   : > { %3211 = vst [vmem:[%s465_s17 + $0x10] sm:$0xff] %v3207_v46 }
 0x598   : > { %3212 = vst [vmem:[%s465_s17 + $0x18] sm:$0xff] %v3208_v4 }
 0x599   : > { %4398 = shalt.err (!%p4395_p10)
}
 0x59a   : > { %s4399_s28 = scalar_lea.hbm %s5089_s18, 512  ;;  %s4403_s25 = scalar_lea.hbm %s5143_s10, 1024 }
 0x59b   : > { %p4400_p2 = scmp.ne.s32.totalorder %s5089_s18, %s4399_s28  ;;  %p4404_p5 = scmp.lt.u32.totalorder %s5089_s18, %s5143_s10 }
 0x59c   : > { %p4405_p7 = scmp.lt.u32.totalorder %s4403_s25, %s4399_s28  ;;  %p4407_p1 = scmp.lt.u32.totalorder %s4399_s28, %s5089_s18 }
 0x59d   : > { %p4401_p8 = pnand %p4400_p2, %p5176_p3 }
 0x59e   : > { %p4406_p4 = por %p4405_p7, %p4404_p5 }
 0x59f   : > { %p4402_p12 = pneg %p4401_p8 }
 0x5a0   : > { %p4408_p13 = por %p4407_p1, %p4406_p4 }
 0x5a2   : > { %p4409_p0 = pnand %p4408_p13, %p4402_p12 }
 0x5a4   : > { %4412 = shalt.err (!%p4409_p0)
}
 0x5a5   : > { %4095 = dma.vmem_to_hbm [thread:$0]  (%p5176_p3), %s5091_s4, 512, %s5089_s18, %s3214_s20  }
 0x5a6 PF: > { %s3240_s2 = sand.u32 1, %s4455_s13   ;;  %p5177_p6 = scmp.ne.s32.totalorder %s5164_s12, 0 }
 0x5a7   : > { %p5178_p11 = scmp.ge.s32.totalorder %s4467_s16, 2  ;;  %s3241_s17 = scalar_lea.sflag [#allocation4], %s3240_s2 }
 0x5a9   : > { %p4118_p9 = pnand %p5178_p11, %p5177_p6 }
 0x5ab   : > { %4450 = dma.done.wait (!%p4118_p9), %s3241_s17, 512  }
 0x5ac   : > { %4452 = vsyncadd (!%p4118_p9), %s3241_s17, 4294966784  ;;  %s5179_s8 = sld [smem:[#allocation20_spill]]  ;;  %p28_p10 = scmp.ge.s32.totalorder %s4668_s23, 4  }
 0x5ad   : > { %s5180_s13 = smov %s4459_s14  ;;  %s5181_s14 = smov %s4463_s15 }
 0x5ae   : > { %s5183_s16 = smov %s4668_s23  ;;  %30 = sbr.rel (!%p28_p10) target bundleno = 15 (0xf), region = 134 }
 0x5b2   : > { %s5182_s15 = smov %s5179_s8 }
 0x5b5   :  { %3246 = vsyncpa [#allocation3], 1 }
 0x5b6   :  { %3248 = vsyncpa [#allocation3 + $0x1], 1 }
 0x5b7   :  { %3249 = vsyncpa [#allocation6], 1 }
 0x5b8   :  { %3251 = vsyncpa [#allocation6 + $0x1], 1 }
 0x5b9   :  { %3252 = vsyncpa [#allocation9], 1 }
 0x5ba   :  { %3253 = vsyncpa [#allocation12], 1 }
 0x5bb   :  { %3254 = vsyncpa [#allocation4], 1 }
 0x5bc   :  { %3256 = vsyncpa [#allocation4 + $0x1], 1 }

</bundles_post_ra>
